<compile_context>
chip_gen: v7x
topology: tpu7x:2x2x1
jax: 0.10.0
libtpu: 0.0.40
codegen_flags: <defaults>
</compile_context>

<pallas_src>
import jax
import jax.numpy as jnp
from jax.experimental import pallas as pl
from jax.experimental.pallas import tpu as pltpu

LRELU_SLOPE = 0.01          # nn.LeakyReLU() default
BN_EPS = 1e-5               # nn.BatchNorm2d default
VMEM_LIMIT = 48 * 1024 * 1024


def _ceil(a, b):
    return -(-a // b) * b


def _tile_bytes(rows, cols, itemsize):
    sub = 16 if itemsize == 2 else 8
    return _ceil(max(rows, 1), sub) * _ceil(max(cols, 1), 128) * itemsize


# ---------------------------------------------------------------------------
# Fused conv(3x3) + bias + LeakyReLU + BN-partial-stats kernel (per image)
# ---------------------------------------------------------------------------
def _make_conv_kernel(row_off, m_full, wf, w_valid, cout):
    """row_off[t]: static row offset of tap t inside the flattened padded image.
    Output rows R = ho*wf + wo span the full padded width wf; columns
    wo >= w_valid are wrap-around garbage (masked out of the BN stats and
    sliced away by the consumer)."""
    n_taps = len(row_off)

    def kernel(x_ref, w_ref, b_ref, y_ref, sum_ref, sq_ref):
        acc = jnp.zeros((m_full, cout), jnp.float32)
        for t in range(n_taps):                       # static 9 (s1) / 6 (s2) taps
            slab = x_ref[0, pl.ds(row_off[t], m_full), :]      # contiguous window
            acc = acc + jnp.dot(slab, w_ref[t],
                                preferred_element_type=jnp.float32)
        acc = acc + b_ref[...]                                   # (1, cout) bias
        y = jnp.where(acc >= 0, acc, LRELU_SLOPE * acc)          # LeakyReLU
        y_ref[0] = y.astype(y_ref.dtype)

        # BN batch statistics fused into the epilogue; garbage columns masked.
        col = jax.lax.broadcasted_iota(jnp.int32, (m_full, cout), 0) % wf
        ym = jnp.where(col < w_valid, y, 0.0)
        if m_full % 8 == 0:
            yg = ym.reshape(m_full // 8, 8, cout)     # genuine per-sublane partials
            sum_ref[...] = jnp.sum(yg, axis=0)
            sq_ref[...] = jnp.sum(yg * yg, axis=0)
        else:
            z7 = jnp.zeros((7, cout), jnp.float32)
            sum_ref[...] = jnp.concatenate(
                [jnp.sum(ym, axis=0, keepdims=True), z7], axis=0)
            sq_ref[...] = jnp.concatenate(
                [jnp.sum(ym * ym, axis=0, keepdims=True), z7], axis=0)

    return kernel


def _conv_stage(x_flat, w_taps, bias, *, row_off, m_full, wf, w_valid, cout,
                out_dtype):
    """x_flat: (N, L, Ce) flattened padded image (bf16/f32 streaming operand).
    Returns (y_full (N, m_full, cout), sum partials (8N, cout), sq (8N, cout))."""
    n, l, ce = x_flat.shape
    n_taps = w_taps.shape[0]

    est = (2 * _tile_bytes(l, ce, x_flat.dtype.itemsize)
           + 2 * _tile_bytes(m_full, cout, jnp.dtype(out_dtype).itemsize)
           + 4 * _tile_bytes(8, cout, 4)
           + _tile_bytes(n_taps * ce, cout, w_taps.dtype.itemsize)
           + 2 * _tile_bytes(m_full, cout, 4))
    if est > VMEM_LIMIT // 2:
        # TODO(synk): row-tile large images with halo'd slab reads.
        raise NotImplementedError("per-image block exceeds the VMEM budget")

    kernel = _make_conv_kernel(row_off, m_full, wf, w_valid, cout)
    return pl.pallas_call(
        kernel,
        out_shape=(
            jax.ShapeDtypeStruct((n, m_full, cout), out_dtype),
            jax.ShapeDtypeStruct((8 * n, cout), jnp.float32),
            jax.ShapeDtypeStruct((8 * n, cout), jnp.float32),
        ),
        grid=(n,),
        in_specs=[
            pl.BlockSpec((1, l, ce), lambda i: (i, 0, 0)),        # image block
            pl.BlockSpec((n_taps, ce, cout), lambda i: (0, 0, 0)),  # resident W
            pl.BlockSpec((1, cout), lambda i: (0, 0)),            # resident bias
        ],
        out_specs=(
            pl.BlockSpec((1, m_full, cout), lambda i: (i, 0, 0)),
            pl.BlockSpec((8, cout), lambda i: (i, 0)),            # per-step partials
            pl.BlockSpec((8, cout), lambda i: (i, 0)),
        ),
        compiler_params=pltpu.CompilerParams(
            dimension_semantics=("parallel",),
            vmem_limit_bytes=VMEM_LIMIT),
    )(x_flat, w_taps, bias)


# ---------------------------------------------------------------------------
# Weight / BN helpers (tiny XLA-side prep)
# ---------------------------------------------------------------------------
def _w_taps_s1(w, dtype):
    """OIHW (Cout, Cin, 3, 3) -> (9, Cin, Cout), tap t = 3*kh + kw."""
    cout, cin = w.shape[0], w.shape[1]
    return w.transpose(2, 3, 1, 0).reshape(9, cin, cout).astype(dtype)


def _w_taps_s2(w, dtype):
    """Stride-2 taps over column-paired (2C) channels: (6, 2C, Cout).
    Tap order per kh: [kw0|kw1 stacked], [kw2 | zeros]."""
    cout, c = w.shape[0], w.shape[1]
    wt = w.transpose(2, 3, 1, 0)                      # (3, 3, C, Cout)
    z = jnp.zeros((c, cout), w.dtype)
    taps = []
    for kh in range(3):
        taps.append(jnp.concatenate([wt[kh, 0], wt[kh, 1]], axis=0))
        taps.append(jnp.concatenate([wt[kh, 2], z], axis=0))
    return jnp.stack(taps, axis=0).astype(dtype)


def _bn_scale_shift(psum, psq, count, gamma, beta):
    s = jnp.sum(psum, axis=0)
    q = jnp.sum(psq, axis=0)
    mean = s / count
    # NOTE: E[x^2]-E[x]^2 in f32; fine at these magnitudes/sizes (see review).
    var = jnp.maximum(q / count - mean * mean, 0.0)
    scale = gamma * jax.lax.rsqrt(var + BN_EPS)
    shift = beta - mean * scale
    return scale, shift


# ---------------------------------------------------------------------------
# Full block
# ---------------------------------------------------------------------------
def _convolution_block(x_nchw, params, *, compute_dtype=jnp.bfloat16):
    n, cin, h, w = x_nchw.shape
    cout = params["w1"].shape[0]

    # single NCHW -> NHWC layout change at entry
    xh = jnp.transpose(x_nchw, (0, 2, 3, 1)).astype(jnp.float32)

    # ---- stage 1: Conv3x3 p1 s1 + LeakyReLU + fused BN stats -----------------
    wp1 = w + 2
    # pad 1 top / 2 bottom rows (extra bottom row keeps wrap-around taps in
    # bounds), 1/1 cols; cast to the bf16 streaming dtype in the same pass.
    xp1 = jnp.pad(xh, ((0, 0), (1, 2), (1, 1), (0, 0))).astype(compute_dtype)
    x1 = xp1.reshape(n, (h + 3) * wp1, cin)                     # free reshape
    row_off1 = [kh * wp1 + kw for kh in range(3) for kw in range(3)]
    m1_full = h * wp1
    y1f, s1, q1 = _conv_stage(
        x1, _w_taps_s1(params["w1"], compute_dtype),
        params["b1"].reshape(1, cout).astype(jnp.float32),
        row_off=row_off1, m_full=m1_full, wf=wp1, w_valid=w, cout=cout,
        out_dtype=compute_dtype)
    scale1, shift1 = _bn_scale_shift(s1, q1, n * h * w,
                                     params["g1"], params["be1"])

    # ---- stage-2 prep: BN1 affine + zero pad, one fused XLA pass -------------
    # Affine applied to the *unpadded* activation (exact w.r.t. zero padding),
    # fused with the pad conv2 needs anyway, cast to bf16 in the same pass.
    # TODO(synk): move the padding itself into the stage-2 kernel (halo DMA).
    y1 = y1f.reshape(n, h, wp1, cout)[:, :, :w, :].astype(jnp.float32)
    y1n = y1 * scale1 + shift1
    w2e = w + (w % 2)                                           # even width for pairing
    pad_bot = 2 + (h % 2)
    xp2 = jnp.pad(y1n, ((0, 0), (1, pad_bot), (1, 1 + (w2e - w)), (0, 0))
                  ).astype(compute_dtype)
    hp2, wp2 = h + 1 + pad_bot, w2e + 2
    wq = wp2 // 2
    # free reshape: pair adjacent columns into channels -> stride-2 taps become
    # contiguous windows over (row * paired-col, 2*Cout).
    x2 = xp2.reshape(n, hp2 * wq, 2 * cout)

    # ---- stage 2: Conv3x3 p1 s2 + LeakyReLU + fused BN stats -----------------
    ho2 = (h - 1) // 2 + 1
    wo2 = (w - 1) // 2 + 1
    m2_full = ho2 * wp2
    row_off2 = []
    for kh in range(3):
        row_off2 += [kh * wq, kh * wq + 1]
    y2f, s2, q2 = _conv_stage(
        x2, _w_taps_s2(params["w2"], compute_dtype),
        params["b2"].reshape(1, cout).astype(jnp.float32),
        row_off=row_off2, m_full=m2_full, wf=wp2, w_valid=wo2, cout=cout,
        out_dtype=jnp.float32)
    scale2, shift2 = _bn_scale_shift(s2, q2, n * ho2 * wo2,
                                     params["g2"], params["be2"])

    # final BN affine fused by XLA with the single NHWC -> NCHW exit transpose
    y2 = y2f.reshape(n, ho2, wp2, cout)[:, :, :wo2, :]
    y2 = y2 * scale2 + shift2
    return jnp.transpose(y2, (0, 3, 1, 2))


convolution_block = jax.jit(_convolution_block, static_argnames=("compute_dtype",))


# ---------------------------------------------------------------------------
# Pure-JAX reference (correctness check)
# ---------------------------------------------------------------------------
def ref_convolution_block(x, params):
    def conv(x, w, b, stride):
        y = jax.lax.conv_general_dilated(
            x, w, (stride, stride), ((1, 1), (1, 1)),
            dimension_numbers=("NCHW", "OIHW", "NCHW"))
        return y + b.reshape(1, -1, 1, 1)

    def lrelu(x):
        return jnp.where(x >= 0, x, LRELU_SLOPE * x)

    def bn(x, g, be):
        mean = x.mean(axis=(0, 2, 3), keepdims=True)
        var = x.var(axis=(0, 2, 3), keepdims=True)   # biased (train-mode norm)
        return (x - mean) / jnp.sqrt(var + BN_EPS) * g.reshape(1, -1, 1, 1) \
            + be.reshape(1, -1, 1, 1)

    y = bn(lrelu(conv(x, params["w1"], params["b1"], 1)), params["g1"], params["be1"])
    y = bn(lrelu(conv(y, params["w2"], params["b2"], 2)), params["g2"], params["be2"])
    return y


# ---------------------------------------------------------------------------
if __name__ == "__main__":
    N, Cin, Cout, H, W = 2, 4, 8, 16, 16

    key = jax.random.PRNGKey(0)
    k = jax.random.split(key, 9)
    params = {
        "w1": 0.1 * jax.random.normal(k[0], (Cout, Cin, 3, 3), jnp.float32),
        "b1": 0.1 * jax.random.normal(k[1], (Cout,), jnp.float32),
        "g1": 1.0 + 0.1 * jax.random.normal(k[2], (Cout,), jnp.float32),
        "be1": 0.1 * jax.random.normal(k[3], (Cout,), jnp.float32),
        "w2": 0.1 * jax.random.normal(k[4], (Cout, Cout, 3, 3), jnp.float32),
        "b2": 0.1 * jax.random.normal(k[5], (Cout,), jnp.float32),
        "g2": 1.0 + 0.1 * jax.random.normal(k[6], (Cout,), jnp.float32),
        "be2": 0.1 * jax.random.normal(k[7], (Cout,), jnp.float32),
    }
    x = jax.random.normal(k[8], (N, Cin, H, W), jnp.float32)

    ref = ref_convolution_block(x, params)

    # f32 path: tight check of the kernel math itself
    out_f32 = jax.block_until_ready(
        convolution_block(x, params, compute_dtype=jnp.float32))
    assert out_f32.shape == (N, Cout, H // 2, W // 2), out_f32.shape
    assert jnp.allclose(out_f32, ref, atol=1e-3, rtol=1e-3), \
        float(jnp.max(jnp.abs(out_f32 - ref)))

    # default perf path: bf16 streaming operands, f32 accumulation/epilogue
    # (looser tolerance accounts for bf16 operand quantization)
    out = jax.block_until_ready(
        convolution_block(x, params, compute_dtype=jnp.bfloat16))
    assert out.shape == (N, Cout, H // 2, W // 2), out.shape
    assert jnp.allclose(out, ref, atol=5e-2, rtol=5e-2), \
        float(jnp.max(jnp.abs(out - ref)))

    print("KERNEL_OK")
</pallas_src>

<mosaic_0001>
module attributes {stable_mosaic.version = 11 : i64} {
  func.func @kernel(%arg0: i32, %arg1: memref<1x342x4xf32, #tpu.memory_space<vmem>>, %arg2: memref<9x4x8xf32, #tpu.memory_space<vmem>>, %arg3: memref<1x8xf32, #tpu.memory_space<vmem>>, %arg4: memref<1x288x8xf32, #tpu.memory_space<vmem>>, %arg5: memref<8x8xf32, #tpu.memory_space<vmem>>, %arg6: memref<8x8xf32, #tpu.memory_space<vmem>>) attributes {dimension_semantics = [#tpu.dimension_semantics<parallel>], iteration_bounds = array<i64: 2>, scalar_prefetch = 0 : i64, scratch_operands = 0 : i64, tpu.core_type = #tpu.core_type<tc>, window_params = [{transform_indices = @transform_0, window_bounds = array<i64: 1, 342, 4>}, {pipeline_mode = #tpu.pipeline_mode<synchronous>, transform_indices = @transform_1, window_bounds = array<i64: 9, 4, 8>}, {pipeline_mode = #tpu.pipeline_mode<synchronous>, transform_indices = @transform_2, window_bounds = array<i64: 1, 8>}, {transform_indices = @transform_3, window_bounds = array<i64: 1, 288, 8>}, {transform_indices = @transform_4, window_bounds = array<i64: 8, 8>}, {transform_indices = @transform_5, window_bounds = array<i64: 8, 8>}]} {
    %cst = arith.constant 0.000000e+00 : f32
    %0 = vector.broadcast %cst : f32 to vector<288x8xf32>
    %c0 = arith.constant 0 : index
    %c0_0 = arith.constant 0 : index
    %c0_1 = arith.constant 0 : index
    %1 = vector.load %arg1[%c0, %c0_0, %c0_1] : memref<1x342x4xf32, #tpu.memory_space<vmem>>, vector<1x288x4xf32>
    %2 = vector.shape_cast %1 : vector<1x288x4xf32> to vector<288x4xf32>
    %c0_2 = arith.constant 0 : index
    %c0_3 = arith.constant 0 : index
    %c0_4 = arith.constant 0 : index
    %3 = vector.load %arg2[%c0_2, %c0_3, %c0_4] : memref<9x4x8xf32, #tpu.memory_space<vmem>>, vector<1x4x8xf32>
    %4 = vector.shape_cast %3 : vector<1x4x8xf32> to vector<4x8xf32>
    %cst_5 = arith.constant dense<0.000000e+00> : vector<288x8xf32>
    %5 = tpu.matmul %2, %4, %cst_5 {dimension_numbers = #tpu.dot_dimension_numbers<[1], [0], [0], [1], [0, 0, 1, 1], [], []>} : vector<288x4xf32>, vector<4x8xf32>, vector<288x8xf32> -> vector<288x8xf32>
    %6 = arith.addf %0, %5 : vector<288x8xf32>
    %c0_6 = arith.constant 0 : index
    %c1 = arith.constant 1 : index
    %c0_7 = arith.constant 0 : index
    %7 = vector.load %arg1[%c0_6, %c1, %c0_7] : memref<1x342x4xf32, #tpu.memory_space<vmem>>, vector<1x288x4xf32>
    %8 = vector.shape_cast %7 : vector<1x288x4xf32> to vector<288x4xf32>
    %c1_8 = arith.constant 1 : index
    %c0_9 = arith.constant 0 : index
    %c0_10 = arith.constant 0 : index
    %9 = vector.load %arg2[%c1_8, %c0_9, %c0_10] : memref<9x4x8xf32, #tpu.memory_space<vmem>>, vector<1x4x8xf32>
    %10 = vector.shape_cast %9 : vector<1x4x8xf32> to vector<4x8xf32>
    %cst_11 = arith.constant dense<0.000000e+00> : vector<288x8xf32>
    %11 = tpu.matmul %8, %10, %cst_11 {dimension_numbers = #tpu.dot_dimension_numbers<[1], [0], [0], [1], [0, 0, 1, 1], [], []>} : vector<288x4xf32>, vector<4x8xf32>, vector<288x8xf32> -> vector<288x8xf32>
    %12 = arith.addf %6, %11 : vector<288x8xf32>
    %c0_12 = arith.constant 0 : index
    %c2 = arith.constant 2 : index
    %c0_13 = arith.constant 0 : index
    %13 = vector.load %arg1[%c0_12, %c2, %c0_13] : memref<1x342x4xf32, #tpu.memory_space<vmem>>, vector<1x288x4xf32>
    %14 = vector.shape_cast %13 : vector<1x288x4xf32> to vector<288x4xf32>
    %c2_14 = arith.constant 2 : index
    %c0_15 = arith.constant 0 : index
    %c0_16 = arith.constant 0 : index
    %15 = vector.load %arg2[%c2_14, %c0_15, %c0_16] : memref<9x4x8xf32, #tpu.memory_space<vmem>>, vector<1x4x8xf32>
    %16 = vector.shape_cast %15 : vector<1x4x8xf32> to vector<4x8xf32>
    %cst_17 = arith.constant dense<0.000000e+00> : vector<288x8xf32>
    %17 = tpu.matmul %14, %16, %cst_17 {dimension_numbers = #tpu.dot_dimension_numbers<[1], [0], [0], [1], [0, 0, 1, 1], [], []>} : vector<288x4xf32>, vector<4x8xf32>, vector<288x8xf32> -> vector<288x8xf32>
    %18 = arith.addf %12, %17 : vector<288x8xf32>
    %c0_18 = arith.constant 0 : index
    %c18 = arith.constant 18 : index
    %c0_19 = arith.constant 0 : index
    %19 = vector.load %arg1[%c0_18, %c18, %c0_19] : memref<1x342x4xf32, #tpu.memory_space<vmem>>, vector<1x288x4xf32>
    %20 = vector.shape_cast %19 : vector<1x288x4xf32> to vector<288x4xf32>
    %c3 = arith.constant 3 : index
    %c0_20 = arith.constant 0 : index
    %c0_21 = arith.constant 0 : index
    %21 = vector.load %arg2[%c3, %c0_20, %c0_21] : memref<9x4x8xf32, #tpu.memory_space<vmem>>, vector<1x4x8xf32>
    %22 = vector.shape_cast %21 : vector<1x4x8xf32> to vector<4x8xf32>
    %cst_22 = arith.constant dense<0.000000e+00> : vector<288x8xf32>
    %23 = tpu.matmul %20, %22, %cst_22 {dimension_numbers = #tpu.dot_dimension_numbers<[1], [0], [0], [1], [0, 0, 1, 1], [], []>} : vector<288x4xf32>, vector<4x8xf32>, vector<288x8xf32> -> vector<288x8xf32>
    %24 = arith.addf %18, %23 : vector<288x8xf32>
    %c0_23 = arith.constant 0 : index
    %c19 = arith.constant 19 : index
    %c0_24 = arith.constant 0 : index
    %25 = vector.load %arg1[%c0_23, %c19, %c0_24] : memref<1x342x4xf32, #tpu.memory_space<vmem>>, vector<1x288x4xf32>
    %26 = vector.shape_cast %25 : vector<1x288x4xf32> to vector<288x4xf32>
    %c4 = arith.constant 4 : index
    %c0_25 = arith.constant 0 : index
    %c0_26 = arith.constant 0 : index
    %27 = vector.load %arg2[%c4, %c0_25, %c0_26] : memref<9x4x8xf32, #tpu.memory_space<vmem>>, vector<1x4x8xf32>
    %28 = vector.shape_cast %27 : vector<1x4x8xf32> to vector<4x8xf32>
    %cst_27 = arith.constant dense<0.000000e+00> : vector<288x8xf32>
    %29 = tpu.matmul %26, %28, %cst_27 {dimension_numbers = #tpu.dot_dimension_numbers<[1], [0], [0], [1], [0, 0, 1, 1], [], []>} : vector<288x4xf32>, vector<4x8xf32>, vector<288x8xf32> -> vector<288x8xf32>
    %30 = arith.addf %24, %29 : vector<288x8xf32>
    %c0_28 = arith.constant 0 : index
    %c20 = arith.constant 20 : index
    %c0_29 = arith.constant 0 : index
    %31 = vector.load %arg1[%c0_28, %c20, %c0_29] : memref<1x342x4xf32, #tpu.memory_space<vmem>>, vector<1x288x4xf32>
    %32 = vector.shape_cast %31 : vector<1x288x4xf32> to vector<288x4xf32>
    %c5 = arith.constant 5 : index
    %c0_30 = arith.constant 0 : index
    %c0_31 = arith.constant 0 : index
    %33 = vector.load %arg2[%c5, %c0_30, %c0_31] : memref<9x4x8xf32, #tpu.memory_space<vmem>>, vector<1x4x8xf32>
    %34 = vector.shape_cast %33 : vector<1x4x8xf32> to vector<4x8xf32>
    %cst_32 = arith.constant dense<0.000000e+00> : vector<288x8xf32>
    %35 = tpu.matmul %32, %34, %cst_32 {dimension_numbers = #tpu.dot_dimension_numbers<[1], [0], [0], [1], [0, 0, 1, 1], [], []>} : vector<288x4xf32>, vector<4x8xf32>, vector<288x8xf32> -> vector<288x8xf32>
    %36 = arith.addf %30, %35 : vector<288x8xf32>
    %c0_33 = arith.constant 0 : index
    %c36 = arith.constant 36 : index
    %c0_34 = arith.constant 0 : index
    %37 = vector.load %arg1[%c0_33, %c36, %c0_34] : memref<1x342x4xf32, #tpu.memory_space<vmem>>, vector<1x288x4xf32>
    %38 = vector.shape_cast %37 : vector<1x288x4xf32> to vector<288x4xf32>
    %c6 = arith.constant 6 : index
    %c0_35 = arith.constant 0 : index
    %c0_36 = arith.constant 0 : index
    %39 = vector.load %arg2[%c6, %c0_35, %c0_36] : memref<9x4x8xf32, #tpu.memory_space<vmem>>, vector<1x4x8xf32>
    %40 = vector.shape_cast %39 : vector<1x4x8xf32> to vector<4x8xf32>
    %cst_37 = arith.constant dense<0.000000e+00> : vector<288x8xf32>
    %41 = tpu.matmul %38, %40, %cst_37 {dimension_numbers = #tpu.dot_dimension_numbers<[1], [0], [0], [1], [0, 0, 1, 1], [], []>} : vector<288x4xf32>, vector<4x8xf32>, vector<288x8xf32> -> vector<288x8xf32>
    %42 = arith.addf %36, %41 : vector<288x8xf32>
    %c0_38 = arith.constant 0 : index
    %c37 = arith.constant 37 : index
    %c0_39 = arith.constant 0 : index
    %43 = vector.load %arg1[%c0_38, %c37, %c0_39] : memref<1x342x4xf32, #tpu.memory_space<vmem>>, vector<1x288x4xf32>
    %44 = vector.shape_cast %43 : vector<1x288x4xf32> to vector<288x4xf32>
    %c7 = arith.constant 7 : index
    %c0_40 = arith.constant 0 : index
    %c0_41 = arith.constant 0 : index
    %45 = vector.load %arg2[%c7, %c0_40, %c0_41] : memref<9x4x8xf32, #tpu.memory_space<vmem>>, vector<1x4x8xf32>
    %46 = vector.shape_cast %45 : vector<1x4x8xf32> to vector<4x8xf32>
    %cst_42 = arith.constant dense<0.000000e+00> : vector<288x8xf32>
    %47 = tpu.matmul %44, %46, %cst_42 {dimension_numbers = #tpu.dot_dimension_numbers<[1], [0], [0], [1], [0, 0, 1, 1], [], []>} : vector<288x4xf32>, vector<4x8xf32>, vector<288x8xf32> -> vector<288x8xf32>
    %48 = arith.addf %42, %47 : vector<288x8xf32>
    %c0_43 = arith.constant 0 : index
    %c38 = arith.constant 38 : index
    %c0_44 = arith.constant 0 : index
    %49 = vector.load %arg1[%c0_43, %c38, %c0_44] : memref<1x342x4xf32, #tpu.memory_space<vmem>>, vector<1x288x4xf32>
    %50 = vector.shape_cast %49 : vector<1x288x4xf32> to vector<288x4xf32>
    %c8 = arith.constant 8 : index
    %c0_45 = arith.constant 0 : index
    %c0_46 = arith.constant 0 : index
    %51 = vector.load %arg2[%c8, %c0_45, %c0_46] : memref<9x4x8xf32, #tpu.memory_space<vmem>>, vector<1x4x8xf32>
    %52 = vector.shape_cast %51 : vector<1x4x8xf32> to vector<4x8xf32>
    %cst_47 = arith.constant dense<0.000000e+00> : vector<288x8xf32>
    %53 = tpu.matmul %50, %52, %cst_47 {dimension_numbers = #tpu.dot_dimension_numbers<[1], [0], [0], [1], [0, 0, 1, 1], [], []>} : vector<288x4xf32>, vector<4x8xf32>, vector<288x8xf32> -> vector<288x8xf32>
    %54 = arith.addf %48, %53 : vector<288x8xf32>
    %c0_48 = arith.constant 0 : index
    %c0_49 = arith.constant 0 : index
    %55 = vector.load %arg3[%c0_48, %c0_49] : memref<1x8xf32, #tpu.memory_space<vmem>>, vector<1x8xf32>
    %56 = vector.broadcast %55 : vector<1x8xf32> to vector<288x8xf32>
    %57 = arith.addf %54, %56 : vector<288x8xf32>
    %cst_50 = arith.constant 0.000000e+00 : f32
    %58 = vector.broadcast %cst_50 : f32 to vector<288x8xf32>
    %59 = arith.cmpf oge, %57, %58 : vector<288x8xf32>
    %cst_51 = arith.constant 0.00999999977 : f32
    %60 = vector.broadcast %cst_51 : f32 to vector<288x8xf32>
    %61 = arith.mulf %60, %57 : vector<288x8xf32>
    %62 = arith.select %59, %57, %61 : vector<288x8xi1>, vector<288x8xf32>
    %c0_52 = arith.constant 0 : index
    %c0_53 = arith.constant 0 : index
    %c0_54 = arith.constant 0 : index
    %63 = vector.load %arg4[%c0_52, %c0_53, %c0_54] : memref<1x288x8xf32, #tpu.memory_space<vmem>>, vector<1x288x8xf32>
    %64 = vector.shape_cast %63 : vector<1x288x8xf32> to vector<288x8xf32>
    %65 = vector.shape_cast %62 : vector<288x8xf32> to vector<1x288x8xf32>
    tpu.vector_store %arg4[%c0_52, %c0_53, %c0_54], %65 {strides = array<i32>} : memref<1x288x8xf32, #tpu.memory_space<vmem>>, vector<1x288x8xf32>,
    %66 = tpu.iota {dimensions = array<i32: 0>} : vector<288x8xi32>
    %c18_i32 = arith.constant 18 : i32
    %c0_i32 = arith.constant 0 : i32
    %67 = arith.cmpi eq, %c18_i32, %c0_i32 : i32
    %c1_i32 = arith.constant 1 : i32
    %68 = arith.select %67, %c1_i32, %c18_i32 : i32
    %69 = vector.broadcast %68 : i32 to vector<288x8xi32>
    %70 = arith.remsi %66, %69 : vector<288x8xi32>
    %c0_i32_55 = arith.constant 0 : i32
    %71 = vector.broadcast %c0_i32_55 : i32 to vector<288x8xi32>
    %72 = arith.cmpi ne, %70, %71 : vector<288x8xi32>
    %c0_i32_56 = arith.constant 0 : i32
    %73 = vector.broadcast %c0_i32_56 : i32 to vector<288x8xi32>
    %74 = arith.cmpi slt, %70, %73 : vector<288x8xi32>
    %c0_i32_57 = arith.constant 0 : i32
    %75 = arith.cmpi slt, %68, %c0_i32_57 : i32
    %76 = vector.broadcast %75 : i1 to vector<288x8xi1>
    %77 = vector.broadcast %76 : vector<288x8xi1> to vector<288x8xi1>
    %78 = arith.xori %74, %77 : vector<288x8xi1>
    %79 = arith.andi %78, %72 : vector<288x8xi1>
    %80 = vector.broadcast %68 : i32 to vector<288x8xi32>
    %81 = arith.addi %70, %80 : vector<288x8xi32>
    %82 = arith.select %79, %81, %70 : vector<288x8xi1>, vector<288x8xi32>
    %c16_i32 = arith.constant 16 : i32
    %83 = vector.broadcast %c16_i32 : i32 to vector<288x8xi32>
    %84 = arith.cmpi slt, %82, %83 : vector<288x8xi32>
    %cst_58 = arith.constant 0.000000e+00 : f32
    %85 = vector.broadcast %cst_58 : f32 to vector<288x8xf32>
    %86 = arith.select %84, %62, %85 : vector<288x8xi1>, vector<288x8xf32>
    %87 = vector.shape_cast %86 : vector<288x8xf32> to vector<36x8x8xf32>
    %cst_59 = arith.constant dense<0.000000e+00> : vector<8x8xf32>
    %88 = vector.multi_reduction <add>, %87, %cst_59 [0] : vector<36x8x8xf32> to vector<8x8xf32>
    %c0_60 = arith.constant 0 : index
    %c0_61 = arith.constant 0 : index
    %89 = vector.load %arg5[%c0_60, %c0_61] : memref<8x8xf32, #tpu.memory_space<vmem>>, vector<8x8xf32>
    tpu.vector_store %arg5[%c0_60, %c0_61], %88 {strides = array<i32>} : memref<8x8xf32, #tpu.memory_space<vmem>>, vector<8x8xf32>,
    %90 = arith.mulf %87, %87 : vector<36x8x8xf32>
    %cst_62 = arith.constant dense<0.000000e+00> : vector<8x8xf32>
    %91 = vector.multi_reduction <add>, %90, %cst_62 [0] : vector<36x8x8xf32> to vector<8x8xf32>
    %c0_63 = arith.constant 0 : index
    %c0_64 = arith.constant 0 : index
    %92 = vector.load %arg6[%c0_63, %c0_64] : memref<8x8xf32, #tpu.memory_space<vmem>>, vector<8x8xf32>
    tpu.vector_store %arg6[%c0_63, %c0_64], %91 {strides = array<i32>} : memref<8x8xf32, #tpu.memory_space<vmem>>, vector<8x8xf32>,
    return
  }
  func.func @transform_0(%arg0: i32) -> (i32, i32, i32) {
    %c0_i32 = arith.constant 0 : i32
    %c0_i32_0 = arith.constant 0 : i32
    %c0_i32_1 = arith.constant 0 : i32
    return %arg0, %c0_i32, %c0_i32_0 : i32, i32, i32
  }
  func.func @transform_1(%arg0: i32) -> (i32, i32, i32) {
    %c0_i32 = arith.constant 0 : i32
    %c0_i32_0 = arith.constant 0 : i32
    %c0_i32_1 = arith.constant 0 : i32
    %c0_i32_2 = arith.constant 0 : i32
    return %c0_i32, %c0_i32_0, %c0_i32_1 : i32, i32, i32
  }
  func.func @transform_2(%arg0: i32) -> (i32, i32) {
    %c0_i32 = arith.constant 0 : i32
    %c0_i32_0 = arith.constant 0 : i32
    %c0_i32_1 = arith.constant 0 : i32
    return %c0_i32, %c0_i32_0 : i32, i32
  }
  func.func @transform_3(%arg0: i32) -> (i32, i32, i32) {
    %c0_i32 = arith.constant 0 : i32
    %c0_i32_0 = arith.constant 0 : i32
    %c0_i32_1 = arith.constant 0 : i32
    return %arg0, %c0_i32, %c0_i32_0 : i32, i32, i32
  }
  func.func @transform_4(%arg0: i32) -> (i32, i32) {
    %c0_i32 = arith.constant 0 : i32
    %c0_i32_0 = arith.constant 0 : i32
    return %arg0, %c0_i32 : i32, i32
  }
  func.func @transform_5(%arg0: i32) -> (i32, i32) {
    %c0_i32 = arith.constant 0 : i32
    %c0_i32_0 = arith.constant 0 : i32
    return %arg0, %c0_i32 : i32, i32
  }
}

module attributes {stable_mosaic.version = 11 : i64} {
  func.func @kernel(%arg0: i32, %arg1: memref<1x171x16xf32, #tpu.memory_space<vmem>>, %arg2: memref<6x16x8xf32, #tpu.memory_space<vmem>>, %arg3: memref<1x8xf32, #tpu.memory_space<vmem>>, %arg4: memref<1x144x8xf32, #tpu.memory_space<vmem>>, %arg5: memref<8x8xf32, #tpu.memory_space<vmem>>, %arg6: memref<8x8xf32, #tpu.memory_space<vmem>>) attributes {dimension_semantics = [#tpu.dimension_semantics<parallel>], iteration_bounds = array<i64: 2>, scalar_prefetch = 0 : i64, scratch_operands = 0 : i64, tpu.core_type = #tpu.core_type<tc>, window_params = [{transform_indices = @transform_0, window_bounds = array<i64: 1, 171, 16>}, {pipeline_mode = #tpu.pipeline_mode<synchronous>, transform_indices = @transform_1, window_bounds = array<i64: 6, 16, 8>}, {pipeline_mode = #tpu.pipeline_mode<synchronous>, transform_indices = @transform_2, window_bounds = array<i64: 1, 8>}, {transform_indices = @transform_3, window_bounds = array<i64: 1, 144, 8>}, {transform_indices = @transform_4, window_bounds = array<i64: 8, 8>}, {transform_indices = @transform_5, window_bounds = array<i64: 8, 8>}]} {
    %cst = arith.constant 0.000000e+00 : f32
    %0 = vector.broadcast %cst : f32 to vector<144x8xf32>
    %c0 = arith.constant 0 : index
    %c0_0 = arith.constant 0 : index
    %c0_1 = arith.constant 0 : index
    %1 = vector.load %arg1[%c0, %c0_0, %c0_1] : memref<1x171x16xf32, #tpu.memory_space<vmem>>, vector<1x144x16xf32>
    %2 = vector.shape_cast %1 : vector<1x144x16xf32> to vector<144x16xf32>
    %c0_2 = arith.constant 0 : index
    %c0_3 = arith.constant 0 : index
    %c0_4 = arith.constant 0 : index
    %3 = vector.load %arg2[%c0_2, %c0_3, %c0_4] : memref<6x16x8xf32, #tpu.memory_space<vmem>>, vector<1x16x8xf32>
    %4 = vector.shape_cast %3 : vector<1x16x8xf32> to vector<16x8xf32>
    %cst_5 = arith.constant dense<0.000000e+00> : vector<144x8xf32>
    %5 = tpu.matmul %2, %4, %cst_5 {dimension_numbers = #tpu.dot_dimension_numbers<[1], [0], [0], [1], [0, 0, 1, 1], [], []>} : vector<144x16xf32>, vector<16x8xf32>, vector<144x8xf32> -> vector<144x8xf32>
    %6 = arith.addf %0, %5 : vector<144x8xf32>
    %c0_6 = arith.constant 0 : index
    %c1 = arith.constant 1 : index
    %c0_7 = arith.constant 0 : index
    %7 = vector.load %arg1[%c0_6, %c1, %c0_7] : memref<1x171x16xf32, #tpu.memory_space<vmem>>, vector<1x144x16xf32>
    %8 = vector.shape_cast %7 : vector<1x144x16xf32> to vector<144x16xf32>
    %c1_8 = arith.constant 1 : index
    %c0_9 = arith.constant 0 : index
    %c0_10 = arith.constant 0 : index
    %9 = vector.load %arg2[%c1_8, %c0_9, %c0_10] : memref<6x16x8xf32, #tpu.memory_space<vmem>>, vector<1x16x8xf32>
    %10 = vector.shape_cast %9 : vector<1x16x8xf32> to vector<16x8xf32>
    %cst_11 = arith.constant dense<0.000000e+00> : vector<144x8xf32>
    %11 = tpu.matmul %8, %10, %cst_11 {dimension_numbers = #tpu.dot_dimension_numbers<[1], [0], [0], [1], [0, 0, 1, 1], [], []>} : vector<144x16xf32>, vector<16x8xf32>, vector<144x8xf32> -> vector<144x8xf32>
    %12 = arith.addf %6, %11 : vector<144x8xf32>
    %c0_12 = arith.constant 0 : index
    %c9 = arith.constant 9 : index
    %c0_13 = arith.constant 0 : index
    %13 = vector.load %arg1[%c0_12, %c9, %c0_13] : memref<1x171x16xf32, #tpu.memory_space<vmem>>, vector<1x144x16xf32>
    %14 = vector.shape_cast %13 : vector<1x144x16xf32> to vector<144x16xf32>
    %c2 = arith.constant 2 : index
    %c0_14 = arith.constant 0 : index
    %c0_15 = arith.constant 0 : index
    %15 = vector.load %arg2[%c2, %c0_14, %c0_15] : memref<6x16x8xf32, #tpu.memory_space<vmem>>, vector<1x16x8xf32>
    %16 = vector.shape_cast %15 : vector<1x16x8xf32> to vector<16x8xf32>
    %cst_16 = arith.constant dense<0.000000e+00> : vector<144x8xf32>
    %17 = tpu.matmul %14, %16, %cst_16 {dimension_numbers = #tpu.dot_dimension_numbers<[1], [0], [0], [1], [0, 0, 1, 1], [], []>} : vector<144x16xf32>, vector<16x8xf32>, vector<144x8xf32> -> vector<144x8xf32>
    %18 = arith.addf %12, %17 : vector<144x8xf32>
    %c0_17 = arith.constant 0 : index
    %c10 = arith.constant 10 : index
    %c0_18 = arith.constant 0 : index
    %19 = vector.load %arg1[%c0_17, %c10, %c0_18] : memref<1x171x16xf32, #tpu.memory_space<vmem>>, vector<1x144x16xf32>
    %20 = vector.shape_cast %19 : vector<1x144x16xf32> to vector<144x16xf32>
    %c3 = arith.constant 3 : index
    %c0_19 = arith.constant 0 : index
    %c0_20 = arith.constant 0 : index
    %21 = vector.load %arg2[%c3, %c0_19, %c0_20] : memref<6x16x8xf32, #tpu.memory_space<vmem>>, vector<1x16x8xf32>
    %22 = vector.shape_cast %21 : vector<1x16x8xf32> to vector<16x8xf32>
    %cst_21 = arith.constant dense<0.000000e+00> : vector<144x8xf32>
    %23 = tpu.matmul %20, %22, %cst_21 {dimension_numbers = #tpu.dot_dimension_numbers<[1], [0], [0], [1], [0, 0, 1, 1], [], []>} : vector<144x16xf32>, vector<16x8xf32>, vector<144x8xf32> -> vector<144x8xf32>
    %24 = arith.addf %18, %23 : vector<144x8xf32>
    %c0_22 = arith.constant 0 : index
    %c18 = arith.constant 18 : index
    %c0_23 = arith.constant 0 : index
    %25 = vector.load %arg1[%c0_22, %c18, %c0_23] : memref<1x171x16xf32, #tpu.memory_space<vmem>>, vector<1x144x16xf32>
    %26 = vector.shape_cast %25 : vector<1x144x16xf32> to vector<144x16xf32>
    %c4 = arith.constant 4 : index
    %c0_24 = arith.constant 0 : index
    %c0_25 = arith.constant 0 : index
    %27 = vector.load %arg2[%c4, %c0_24, %c0_25] : memref<6x16x8xf32, #tpu.memory_space<vmem>>, vector<1x16x8xf32>
    %28 = vector.shape_cast %27 : vector<1x16x8xf32> to vector<16x8xf32>
    %cst_26 = arith.constant dense<0.000000e+00> : vector<144x8xf32>
    %29 = tpu.matmul %26, %28, %cst_26 {dimension_numbers = #tpu.dot_dimension_numbers<[1], [0], [0], [1], [0, 0, 1, 1], [], []>} : vector<144x16xf32>, vector<16x8xf32>, vector<144x8xf32> -> vector<144x8xf32>
    %30 = arith.addf %24, %29 : vector<144x8xf32>
    %c0_27 = arith.constant 0 : index
    %c19 = arith.constant 19 : index
    %c0_28 = arith.constant 0 : index
    %31 = vector.load %arg1[%c0_27, %c19, %c0_28] : memref<1x171x16xf32, #tpu.memory_space<vmem>>, vector<1x144x16xf32>
    %32 = vector.shape_cast %31 : vector<1x144x16xf32> to vector<144x16xf32>
    %c5 = arith.constant 5 : index
    %c0_29 = arith.constant 0 : index
    %c0_30 = arith.constant 0 : index
    %33 = vector.load %arg2[%c5, %c0_29, %c0_30] : memref<6x16x8xf32, #tpu.memory_space<vmem>>, vector<1x16x8xf32>
    %34 = vector.shape_cast %33 : vector<1x16x8xf32> to vector<16x8xf32>
    %cst_31 = arith.constant dense<0.000000e+00> : vector<144x8xf32>
    %35 = tpu.matmul %32, %34, %cst_31 {dimension_numbers = #tpu.dot_dimension_numbers<[1], [0], [0], [1], [0, 0, 1, 1], [], []>} : vector<144x16xf32>, vector<16x8xf32>, vector<144x8xf32> -> vector<144x8xf32>
    %36 = arith.addf %30, %35 : vector<144x8xf32>
    %c0_32 = arith.constant 0 : index
    %c0_33 = arith.constant 0 : index
    %37 = vector.load %arg3[%c0_32, %c0_33] : memref<1x8xf32, #tpu.memory_space<vmem>>, vector<1x8xf32>
    %38 = vector.broadcast %37 : vector<1x8xf32> to vector<144x8xf32>
    %39 = arith.addf %36, %38 : vector<144x8xf32>
    %cst_34 = arith.constant 0.000000e+00 : f32
    %40 = vector.broadcast %cst_34 : f32 to vector<144x8xf32>
    %41 = arith.cmpf oge, %39, %40 : vector<144x8xf32>
    %cst_35 = arith.constant 0.00999999977 : f32
    %42 = vector.broadcast %cst_35 : f32 to vector<144x8xf32>
    %43 = arith.mulf %42, %39 : vector<144x8xf32>
    %44 = arith.select %41, %39, %43 : vector<144x8xi1>, vector<144x8xf32>
    %c0_36 = arith.constant 0 : index
    %c0_37 = arith.constant 0 : index
    %c0_38 = arith.constant 0 : index
    %45 = vector.load %arg4[%c0_36, %c0_37, %c0_38] : memref<1x144x8xf32, #tpu.memory_space<vmem>>, vector<1x144x8xf32>
    %46 = vector.shape_cast %45 : vector<1x144x8xf32> to vector<144x8xf32>
    %47 = vector.shape_cast %44 : vector<144x8xf32> to vector<1x144x8xf32>
    tpu.vector_store %arg4[%c0_36, %c0_37, %c0_38], %47 {strides = array<i32>} : memref<1x144x8xf32, #tpu.memory_space<vmem>>, vector<1x144x8xf32>,
    %48 = tpu.iota {dimensions = array<i32: 0>} : vector<144x8xi32>
    %c18_i32 = arith.constant 18 : i32
    %c0_i32 = arith.constant 0 : i32
    %49 = arith.cmpi eq, %c18_i32, %c0_i32 : i32
    %c1_i32 = arith.constant 1 : i32
    %50 = arith.select %49, %c1_i32, %c18_i32 : i32
    %51 = vector.broadcast %50 : i32 to vector<144x8xi32>
    %52 = arith.remsi %48, %51 : vector<144x8xi32>
    %c0_i32_39 = arith.constant 0 : i32
    %53 = vector.broadcast %c0_i32_39 : i32 to vector<144x8xi32>
    %54 = arith.cmpi ne, %52, %53 : vector<144x8xi32>
    %c0_i32_40 = arith.constant 0 : i32
    %55 = vector.broadcast %c0_i32_40 : i32 to vector<144x8xi32>
    %56 = arith.cmpi slt, %52, %55 : vector<144x8xi32>
    %c0_i32_41 = arith.constant 0 : i32
    %57 = arith.cmpi slt, %50, %c0_i32_41 : i32
    %58 = vector.broadcast %57 : i1 to vector<144x8xi1>
    %59 = vector.broadcast %58 : vector<144x8xi1> to vector<144x8xi1>
    %60 = arith.xori %56, %59 : vector<144x8xi1>
    %61 = arith.andi %60, %54 : vector<144x8xi1>
    %62 = vector.broadcast %50 : i32 to vector<144x8xi32>
    %63 = arith.addi %52, %62 : vector<144x8xi32>
    %64 = arith.select %61, %63, %52 : vector<144x8xi1>, vector<144x8xi32>
    %c8_i32 = arith.constant 8 : i32
    %65 = vector.broadcast %c8_i32 : i32 to vector<144x8xi32>
    %66 = arith.cmpi slt, %64, %65 : vector<144x8xi32>
    %cst_42 = arith.constant 0.000000e+00 : f32
    %67 = vector.broadcast %cst_42 : f32 to vector<144x8xf32>
    %68 = arith.select %66, %44, %67 : vector<144x8xi1>, vector<144x8xf32>
    %69 = vector.shape_cast %68 : vector<144x8xf32> to vector<18x8x8xf32>
    %cst_43 = arith.constant dense<0.000000e+00> : vector<8x8xf32>
    %70 = vector.multi_reduction <add>, %69, %cst_43 [0] : vector<18x8x8xf32> to vector<8x8xf32>
    %c0_44 = arith.constant 0 : index
    %c0_45 = arith.constant 0 : index
    %71 = vector.load %arg5[%c0_44, %c0_45] : memref<8x8xf32, #tpu.memory_space<vmem>>, vector<8x8xf32>
    tpu.vector_store %arg5[%c0_44, %c0_45], %70 {strides = array<i32>} : memref<8x8xf32, #tpu.memory_space<vmem>>, vector<8x8xf32>,
    %72 = arith.mulf %69, %69 : vector<18x8x8xf32>
    %cst_46 = arith.constant dense<0.000000e+00> : vector<8x8xf32>
    %73 = vector.multi_reduction <add>, %72, %cst_46 [0] : vector<18x8x8xf32> to vector<8x8xf32>
    %c0_47 = arith.constant 0 : index
    %c0_48 = arith.constant 0 : index
    %74 = vector.load %arg6[%c0_47, %c0_48] : memref<8x8xf32, #tpu.memory_space<vmem>>, vector<8x8xf32>
    tpu.vector_store %arg6[%c0_47, %c0_48], %73 {strides = array<i32>} : memref<8x8xf32, #tpu.memory_space<vmem>>, vector<8x8xf32>,
    return
  }
  func.func @transform_0(%arg0: i32) -> (i32, i32, i32) {
    %c0_i32 = arith.constant 0 : i32
    %c0_i32_0 = arith.constant 0 : i32
    %c0_i32_1 = arith.constant 0 : i32
    return %arg0, %c0_i32, %c0_i32_0 : i32, i32, i32
  }
  func.func @transform_1(%arg0: i32) -> (i32, i32, i32) {
    %c0_i32 = arith.constant 0 : i32
    %c0_i32_0 = arith.constant 0 : i32
    %c0_i32_1 = arith.constant 0 : i32
    %c0_i32_2 = arith.constant 0 : i32
    return %c0_i32, %c0_i32_0, %c0_i32_1 : i32, i32, i32
  }
  func.func @transform_2(%arg0: i32) -> (i32, i32) {
    %c0_i32 = arith.constant 0 : i32
    %c0_i32_0 = arith.constant 0 : i32
    %c0_i32_1 = arith.constant 0 : i32
    return %c0_i32, %c0_i32_0 : i32, i32
  }
  func.func @transform_3(%arg0: i32) -> (i32, i32, i32) {
    %c0_i32 = arith.constant 0 : i32
    %c0_i32_0 = arith.constant 0 : i32
    %c0_i32_1 = arith.constant 0 : i32
    return %arg0, %c0_i32, %c0_i32_0 : i32, i32, i32
  }
  func.func @transform_4(%arg0: i32) -> (i32, i32) {
    %c0_i32 = arith.constant 0 : i32
    %c0_i32_0 = arith.constant 0 : i32
    return %arg0, %c0_i32 : i32, i32
  }
  func.func @transform_5(%arg0: i32) -> (i32, i32) {
    %c0_i32 = arith.constant 0 : i32
    %c0_i32_0 = arith.constant 0 : i32
    return %arg0, %c0_i32 : i32, i32
  }
}

</mosaic_0001>

<bundles_post_ra>
// kernel: _convolution_block.2
= control target key start
LH: loop header
LB: loop body
LE: loop exit
PB: predicated region body
PF: predicated region fallthrough
CT: control target
= control target key end

     0   :  { %s6816_s18 = smov 0   ;;  %s9469_s0 = inlined_call_operand.vmem [shape: f32[2,342,4], index: 0, kind: input, shape index: {}]   ;;  %s9470_s1 = inlined_call_operand.vmem [shape: f32[9,4,8], index: 1, kind: input, shape index: {}]   ;;  %s9471_s2 = inlined_call_operand.vmem [shape: f32[1,8], index: 2, kind: input, shape index: {}]   ;;  %s9472_s3 = inlined_call_operand.vmem [shape: f32[2,288,8], index: 3, kind: output, shape index: {0}]   ;;  %s9473_s4 = inlined_call_operand.vmem [shape: f32[16,8], index: 4, kind: output, shape index: {1}]   ;;  %s9474_s5 = inlined_call_operand.vmem [shape: f32[16,8], index: 5, kind: output, shape index: {2}]  }
   0x1 LB: > { %s5215_s19 = sadd.s32 4294967295, %s6784_s18   ;;  %p5219_p0 = scmp.ge.s32.totalorder %s6784_s18, 1  ;;  %s6784_s18 = sphi %s6816_s18, %s16_s18  }
   0x2   : > { %p192_p1 = scmp.lt.s32.totalorder %s6784_s18, 3 }
   0x4   : > { %p193_p2 = pnand %p5219_p0, %p192_p1 }
   0x6   : > { %196 = sbr.rel (%p193_p2) target bundleno = 618 (0x26a), region = 32 }
   0xd   : > { %v5224_v0 = vld [vmem:[%s9470_s1 + $0x4] sm:$0xf]  ;;  %vm430_vm0 = vcmask 1043456   ;;  %v6830_v1 = vld [vmem:[%s9470_s1 + $0x10] sm:$0xf]  ;;  %p228_p3 = scmp.lt.s32.totalorder %s5215_s19, 1 }
   0xe   : > { %5901 = vmatprep.subr.msk.mxu1 %vm430_vm0, %v5224_v0  ;;  %6125 = vmatprep.subr.msk.mxu0 %vm430_vm0, %v6830_v1  ;;  %v282_v2 = vld [vmem:[%s9470_s1] sm:$0xf]  ;;  %v5413_v3 = vld [vmem:[%s9470_s1 + $0x14] sm:$0xf]  ;;  %vm321_vm1 = vcmask 31744  }
   0xf   : > { %5902 = vmatpush3.msk.msra.mxu1 %vm430_vm0, %v5224_v0  ;;  %6126 = vmatpush3.msk.msra.mxu0 %vm430_vm0, %v6830_v1  ;;  %s10064_s19 = smov (!%p228_p3, %s5215_s19), 1  ;;  %v6867_v10 = vld [vmem:[%s9470_s1 + $0x18] sm:$0xf]  ;;  %v6872_v11 = vld [vmem:[%s9470_s1 + $0x8] sm:$0xf] }
  0x10   : > { %5957 = vmatprep.subr.msk.mxu1 %vm430_vm0, %v282_v2  ;;  %6181 = vmatprep.subr.msk.mxu0 %vm430_vm0, %v5413_v3  ;;  %s6695_s28 = smul.u32 344, %s10064_s19  ;;  %v6955_v48 = vld [vmem:[%s9470_s1 + $0x1c] sm:$0xf]  ;;  %s5222_s27 = sshll.u32 %s10064_s19, 3 }
  0x11   : > { %s6696_s21 = smul.u32 288, %s10064_s19  ;;  %s241_s30 = scalar_lea.vmem %s9473_s4, %s5222_s27 }
  0x12   : > { %s6852_s6 = scalar_lea.vmem %s9469_s0, %s6695_s28  ;;  %s245_s7 = scalar_lea.vmem %s9474_s5, %s5222_s27 }
  0x13   : > { %v283_v4 = vld [vmem:[%s6852_s6 + $0x1] sm:$0xff]  ;;  %v1895_v5 = vld [vmem:[%s6852_s6 + $0x13] sm:$0xff]  ;;  %v284_v6 = vld [vmem:[%s6852_s6 + $0x9] sm:$0xff]  ;;  %s8757_s24 = scalar_lea.vmem %s9472_s3, %s6696_s21 }
  0x14   : > { %5903 = vmatprep.mubr.msk.f32.mxu1 %vm321_vm1, %v283_v4  ;;  %6127 = vmatprep.mubr.msk.f32.mxu0 %vm321_vm1, %v1895_v5  ;;  %v1896_v7 = vld [vmem:[%s6852_s6 + $0x1b] sm:$0xff]  ;;  %v285_v8 = vld [vmem:[%s6852_s6 + $0x11] sm:$0xff]  ;;  %v1897_v9 = vld [vmem:[%s6852_s6 + $0x23] sm:$0xff] }
  0x15   : > { %5904 = vmatmul.mubr.msk.f32.vlgmr.msra.gmra.mrb[0].mxu1 %vm321_vm1, %v284_v6  ;;  %6128 = vmatmul.mubr.msk.f32.vlgmr.msra.gmra.mrb[0].mxu0 %vm321_vm1, %v1896_v7  ;;  %v286_v12 = vld [vmem:[%s6852_s6 + $0x19] sm:$0xff]  ;;  %v1898_v13 = vld [vmem:[%s6852_s6 + $0x2b] sm:$0xff]  ;;  %v287_v14 = vld [vmem:[%s6852_s6 + $0x21] sm:$0xff] }
  0x16   : > { %5958 = vmatpush3.msk.msra.mxu1 %vm430_vm0, %v282_v2  ;;  %6182 = vmatpush3.msk.msra.mxu0 %vm430_vm0, %v5413_v3  ;;  %v1899_v15 = vld [vmem:[%s6852_s6 + $0x33] sm:$0xff]  ;;  %v288_v16 = vld [vmem:[%s6852_s6 + $0x29] sm:$0xff]  ;;  %v1900_v17 = vld [vmem:[%s6852_s6 + $0x3b] sm:$0xff] }
  0x17   : > { %5906 = vmatprep.mubr.msk.f32.mxu1 %vm321_vm1, %v285_v8  ;;  %6130 = vmatprep.mubr.msk.f32.mxu0 %vm321_vm1, %v1897_v9  ;;  %v289_v18 = vld [vmem:[%s6852_s6 + $0x31] sm:$0xff]  ;;  %v1901_v19 = vld [vmem:[%s6852_s6 + $0x43] sm:$0xff]  ;;  %v290_v20 = vld [vmem:[%s6852_s6 + $0x39] sm:$0xff] }
  0x18   : > { %6237 = vmatprep.subr.msk.mxu0 %vm430_vm0, %v6867_v10  ;;  %6013 = vmatprep.subr.msk.mxu1 %vm430_vm0, %v6872_v11  ;;  %v1902_v21 = vld [vmem:[%s6852_s6 + $0x4b] sm:$0xff]  ;;  %v291_v22 = vld [vmem:[%s6852_s6 + $0x41] sm:$0xff]  ;;  %v1903_v23 = vld [vmem:[%s6852_s6 + $0x53] sm:$0xff] }
  0x19   : > { %5907 = vmatmul.mubr.msk.f32.gmra.mrb[2].mxu1 %vm321_vm1, %v286_v12  ;;  %6131 = vmatmul.mubr.msk.f32.gmra.mrb[2].mxu0 %vm321_vm1, %v1898_v13  ;;  %v292_v24 = vld [vmem:[%s6852_s6 + $0x49] sm:$0xff]  ;;  %v1904_v25 = vld [vmem:[%s6852_s6 + $0x5b] sm:$0xff]  ;;  %v293_v26 = vld [vmem:[%s6852_s6 + $0x51] sm:$0xff] }
  0x1a   : > { %5909 = vmatprep.mubr.msk.f32.mxu1 %vm321_vm1, %v287_v14  ;;  %6133 = vmatprep.mubr.msk.f32.mxu0 %vm321_vm1, %v1899_v15  ;;  %v1905_v27 = vld [vmem:[%s6852_s6 + $0x63] sm:$0xff]  ;;  %v294_v28 = vld [vmem:[%s6852_s6 + $0x59] sm:$0xff]  ;;  %v1906_v29 = vld [vmem:[%s6852_s6 + $0x6b] sm:$0xff] }
  0x1b   : > { %v295_v30 = vld [vmem:[%s6852_s6 + $0x61] sm:$0xff]  ;;  %v1907_v31 = vld [vmem:[%s6852_s6 + $0x73] sm:$0xff]  ;;  %v296_v32 = vld [vmem:[%s6852_s6 + $0x69] sm:$0xff] }
  0x1c   : > { %v1908_v33 = vld [vmem:[%s6852_s6 + $0x7b] sm:$0xff]  ;;  %v297_v34 = vld [vmem:[%s6852_s6 + $0x71] sm:$0xff]  ;;  %v1909_v35 = vld [vmem:[%s6852_s6 + $0x83] sm:$0xff] }
  0x1d   : > { %5910 = vmatmul.mubr.msk.f32.gmra.mrb[4].mxu1 %vm321_vm1, %v288_v16  ;;  %6134 = vmatmul.mubr.msk.f32.gmra.mrb[4].mxu0 %vm321_vm1, %v1900_v17  ;;  %v298_v36 = vld [vmem:[%s6852_s6 + $0x79] sm:$0xff]  ;;  %v1910_v37 = vld [vmem:[%s6852_s6 + $0x8b] sm:$0xff]  ;;  %v299_v38 = vld [vmem:[%s6852_s6 + $0x81] sm:$0xff] }
  0x1e   : > { %5912 = vmatprep.mubr.msk.f32.mxu1 %vm321_vm1, %v289_v18  ;;  %6136 = vmatprep.mubr.msk.f32.mxu0 %vm321_vm1, %v1901_v19  ;;  %v1911_v39 = vld [vmem:[%s6852_s6 + $0x93] sm:$0xff]  ;;  %v300_v40 = vld [vmem:[%s6852_s6 + $0x89] sm:$0xff]  ;;  %v1912_v41 = vld [vmem:[%s6852_s6 + $0x9b] sm:$0xff] }
  0x1f   : > { %v301_v42 = vld [vmem:[%s6852_s6 + $0x91] sm:$0xff]  ;;  %v302_v44 = vld [vmem:[%s6852_s6 + $0x99] sm:$0xff]  ;;  %v303_v46 = vld [vmem:[%s6852_s6 + $0xa1] sm:$0xff] }
  0x20   : > { %v2325_v43 = vld [vmem:[%s6852_s6 + $0x14] sm:$0xff]  ;;  %v2326_v45 = vld [vmem:[%s6852_s6 + $0x1c] sm:$0xff]  ;;  %v6950_v47 = vld [vmem:[%s6852_s6 + $0x24] sm:$0xff] }
  0x21   : > { %5913 = vmatmul.mubr.msk.f32.gmra.mrb[6].mxu1 %vm321_vm1, %v290_v20  ;;  %6137 = vmatmul.mubr.msk.f32.gmra.mrb[6].mxu0 %vm321_vm1, %v1902_v21  ;;  %v304_v49 = vld [vmem:[%s6852_s6 + $0xa9] sm:$0xff]  ;;  %v305_v51 = vld [vmem:[%s6852_s6 + $0xb1] sm:$0xff]  ;;  %v306_v53 = vld [vmem:[%s6852_s6 + $0xb9] sm:$0xff] }
  0x22   : > { %5915 = vmatprep.mubr.msk.f32.mxu1 %vm321_vm1, %v291_v22  ;;  %6139 = vmatprep.mubr.msk.f32.mxu0 %vm321_vm1, %v1903_v23  ;;  %v6964_v50 = vld [vmem:[%s6852_s6 + $0x2c] sm:$0xff]  ;;  %v6970_v52 = vld [vmem:[%s6852_s6 + $0x34] sm:$0xff]  ;;  %v6982_v54 = vld [vmem:[%s6852_s6 + $0x3c] sm:$0xff] }
  0x23   : > { %v307_v55 = vld [vmem:[%s6852_s6 + $0xc1] sm:$0xff]  ;;  %v308_v57 = vld [vmem:[%s6852_s6 + $0xc9] sm:$0xff]  ;;  %v309_v59 = vld [vmem:[%s6852_s6 + $0xd1] sm:$0xff] }
  0x24   : > { %v6986_v56 = vld [vmem:[%s6852_s6 + $0x44] sm:$0xff]  ;;  %v6996_v58 = vld [vmem:[%s6852_s6 + $0x4c] sm:$0xff]  ;;  %v7000_v60 = vld [vmem:[%s6852_s6 + $0x54] sm:$0xff] }
  0x25   : > { %5916 = vmatmul.mubr.msk.f32.gmra.mrb[8].mxu1 %vm321_vm1, %v292_v24  ;;  %6140 = vmatmul.mubr.msk.f32.gmra.mrb[8].mxu0 %vm321_vm1, %v1904_v25  ;;  %v310_v61 = vld [vmem:[%s6852_s6 + $0xd9] sm:$0xff]  ;;  %v311_v63 = vld [vmem:[%s6852_s6 + $0xe1] sm:$0xff]  ;;  %v312_v2 = vld [vmem:[%s6852_s6 + $0xe9] sm:$0xff] }
  0x26   : > { %5918 = vmatprep.mubr.msk.f32.mxu1 %vm321_vm1, %v293_v26  ;;  %6142 = vmatprep.mubr.msk.f32.mxu0 %vm321_vm1, %v1905_v27  ;;  %v7010_v62 = vld [vmem:[%s6852_s6 + $0x5c] sm:$0xff]  ;;  %v7014_v0 = vld [vmem:[%s6852_s6 + $0x64] sm:$0xff]  ;;  %v7024_v3 = vld [vmem:[%s6852_s6 + $0x6c] sm:$0xff] }
  0x27   : > { %v313_v4 = vld [vmem:[%s6852_s6 + $0xf1] sm:$0xff]  ;;  %v314_v6 = vld [vmem:[%s6852_s6 + $0xf9] sm:$0xff]  ;;  %v315_v8 = vld [vmem:[%s6852_s6 + $0x101] sm:$0xff] }
  0x28   : > { %v7028_v5 = vld [vmem:[%s6852_s6 + $0x74] sm:$0xff]  ;;  %v7038_v7 = vld [vmem:[%s6852_s6 + $0x7c] sm:$0xff]  ;;  %v7042_v9 = vld [vmem:[%s6852_s6 + $0x84] sm:$0xff] }
  0x29   : > { %5919 = vmatmul.mubr.msk.f32.gmra.mrb[10].mxu1 %vm321_vm1, %v294_v28  ;;  %6143 = vmatmul.mubr.msk.f32.gmra.mrb[10].mxu0 %vm321_vm1, %v1906_v29  ;;  %v7052_v12 = vld [vmem:[%s6852_s6 + $0x8c] sm:$0xff]  ;;  %v7056_v14 = vld [vmem:[%s6852_s6 + $0x94] sm:$0xff]  ;;  %v7066_v16 = vld [vmem:[%s6852_s6 + $0x9c] sm:$0xff] }
  0x2a   : > { %5921 = vmatprep.mubr.msk.f32.mxu1 %vm321_vm1, %v295_v30  ;;  %6145 = vmatprep.mubr.msk.f32.mxu0 %vm321_vm1, %v1907_v31  ;;  %v317_v13 = vld [vmem:[%s6852_s6 + $0x111] sm:$0xff]  ;;  %v318_v15 = vld [vmem:[%s6852_s6 + $0x119] sm:$0xff]  ;;  %v7070_v18 = vld [vmem:[%s6852_s6 + $0xa4] sm:$0xff] }
  0x2b   : > { %v246_v17 = vld [vmem:[%s6852_s6] sm:$0xff]  ;;  %v247_v19 = vld [vmem:[%s6852_s6 + $0x8] sm:$0xff]  ;;  %v248_v21 = vld [vmem:[%s6852_s6 + $0x10] sm:$0xff] }
  0x2c   : > { %v7080_v20 = vld [vmem:[%s6852_s6 + $0xac] sm:$0xff]  ;;  %v7084_v22 = vld [vmem:[%s6852_s6 + $0xb4] sm:$0xff]  ;;  %v7099_v25 = vld [vmem:[%s6852_s6 + $0xbc] sm:$0xff] }
  0x2d   : > { %5922 = vmatmul.mubr.msk.f32.gmra.mrb[12].mxu1 %vm321_vm1, %v296_v32  ;;  %6146 = vmatmul.mubr.msk.f32.gmra.mrb[12].mxu0 %vm321_vm1, %v1908_v33  ;;  %v7089_v23 = vld [vmem:[%s9470_s1 + $0xc] sm:$0xf]  ;;  %v249_v24 = vld [vmem:[%s6852_s6 + $0x18] sm:$0xff]  ;;  %v250_v26 = vld [vmem:[%s6852_s6 + $0x20] sm:$0xff] }
  0x2e   : > { %5924 = vmatprep.mubr.msk.f32.mxu1 %vm321_vm1, %v297_v34  ;;  %6148 = vmatprep.mubr.msk.f32.mxu0 %vm321_vm1, %v1909_v35  ;;  %v7105_v27 = vld [vmem:[%s6852_s6 + $0xc4] sm:$0xff]  ;;  %v7117_v28 = vld [vmem:[%s6852_s6 + $0xcc] sm:$0xff]  ;;  %v7121_v30 = vld [vmem:[%s6852_s6 + $0xd4] sm:$0xff] }
  0x2f   : > { %v252_v29 = vld [vmem:[%s6852_s6 + $0x30] sm:$0xff]  ;;  %v253_v31 = vld [vmem:[%s6852_s6 + $0x38] sm:$0xff]  ;;  %v254_v33 = vld [vmem:[%s6852_s6 + $0x40] sm:$0xff] }
  0x30   : > { %v7131_v32 = vld [vmem:[%s6852_s6 + $0xdc] sm:$0xff]  ;;  %v7135_v34 = vld [vmem:[%s6852_s6 + $0xe4] sm:$0xff] }
  0x31   : > { %5925 = vmatmul.mubr.msk.f32.gmra.mrb[14].mxu1 %vm321_vm1, %v298_v36  ;;  %6149 = vmatmul.mubr.msk.f32.gmra.mrb[14].mxu0 %vm321_vm1, %v1910_v37  ;;  %v255_v35 = vld [vmem:[%s6852_s6 + $0x48] sm:$0xff]  ;;  %v256_v37 = vld [vmem:[%s6852_s6 + $0x50] sm:$0xff] }
  0x32   : > { %5927 = vmatprep.mubr.msk.f32.mxu1 %vm321_vm1, %v299_v38  ;;  %6151 = vmatprep.mubr.msk.f32.mxu0 %vm321_vm1, %v1911_v39  ;;  %v7145_v36 = vld [vmem:[%s6852_s6 + $0xec] sm:$0xff]  ;;  %v7149_v38 = vld [vmem:[%s6852_s6 + $0xf4] sm:$0xff] }
  0x33   : > { %v257_v39 = vld [vmem:[%s6852_s6 + $0x58] sm:$0xff] }
  0x35   : > { %5928 = vmatmul.mubr.msk.f32.gmra.mrb[16].mxu1 %vm321_vm1, %v300_v40  ;;  %6152 = vmatmul.mubr.msk.f32.gmra.mrb[16].mxu0 %vm321_vm1, %v1912_v41  ;;  %v7159_v40 = vld [vmem:[%s6852_s6 + $0xfc] sm:$0xff] }
  0x36   : > { %5930 = vmatprep.mubr.msk.f32.mxu1 %vm321_vm1, %v301_v42  ;;  %6183 = vmatprep.mubr.msk.f32.mxu0 %vm321_vm1, %v2325_v43  ;;  %v258_v41 = vld [vmem:[%s6852_s6 + $0x60] sm:$0xff]  ;;  %v259_v43 = vld [vmem:[%s6852_s6 + $0x68] sm:$0xff] }
  0x37   : > { %v7163_v42 = vld [vmem:[%s6852_s6 + $0x104] sm:$0xff] }
  0x39   : > { %5931 = vmatmul.mubr.msk.f32.gmra.mrb[18].mxu1 %vm321_vm1, %v302_v44  ;;  %6184 = vmatmul.mubr.msk.f32.vlgmr.msra.gmra.mrb[0].mxu0 %vm321_vm1, %v2326_v45  ;;  %v7173_v44 = vld [vmem:[%s6852_s6 + $0x10c] sm:$0xff] }
  0x3a   : > { %6238 = vmatpush3.msk.msra.mxu0 %vm430_vm0, %v6867_v10  ;;  %5933 = vmatprep.mubr.msk.f32.mxu1 %vm321_vm1, %v303_v46  ;;  %v316_v10 = vld [vmem:[%s6852_s6 + $0x109] sm:$0xff]  ;;  %v7177_v46 = vld [vmem:[%s6852_s6 + $0x114] sm:$0xff] }
  0x3b   : > { %6186 = vmatprep.mubr.msk.f32.mxu0 %vm321_vm1, %v6950_v47  ;;  %6293 = vmatprep.subr.msk.mxu0 %vm430_vm0, %v6955_v48  ;;  %v260_v45 = vld [vmem:[%s6852_s6 + $0x70] sm:$0xff] }
  0x3d   : > { %5934 = vmatmul.mubr.msk.f32.gmra.mrb[20].mxu1 %vm321_vm1, %v304_v49  ;;  %6187 = vmatmul.mubr.msk.f32.gmra.mrb[2].mxu0 %vm321_vm1, %v6964_v50  ;;  %v261_v49 = vld [vmem:[%s6852_s6 + $0x78] sm:$0xff] }
  0x3e   : > { %5936 = vmatprep.mubr.msk.f32.mxu1 %vm321_vm1, %v305_v51  ;;  %6189 = vmatprep.mubr.msk.f32.mxu0 %vm321_vm1, %v6970_v52  ;;  %v7187_v51 = vld [vmem:[%s6852_s6 + $0x11c] sm:$0xff] }
  0x41   : > { %5937 = vmatmul.mubr.msk.f32.gmra.mrb[22].mxu1 %vm321_vm1, %v306_v53  ;;  %6190 = vmatmul.mubr.msk.f32.gmra.mrb[4].mxu0 %vm321_vm1, %v6982_v54  ;;  %v262_v53 = vld [vmem:[%s6852_s6 + $0x80] sm:$0xff] }
  0x42   : > { %5939 = vmatprep.mubr.msk.f32.mxu1 %vm321_vm1, %v307_v55  ;;  %6192 = vmatprep.mubr.msk.f32.mxu0 %vm321_vm1, %v6986_v56  ;;  %v7191_v55 = vld [vmem:[%s6852_s6 + $0x124] sm:$0xff] }
  0x45   : > { %5940 = vmatmul.mubr.msk.f32.gmra.mrb[24].mxu1 %vm321_vm1, %v308_v57  ;;  %6193 = vmatmul.mubr.msk.f32.gmra.mrb[6].mxu0 %vm321_vm1, %v6996_v58  ;;  %v263_v57 = vld [vmem:[%s6852_s6 + $0x88] sm:$0xff] }
  0x46   : > { %5942 = vmatprep.mubr.msk.f32.mxu1 %vm321_vm1, %v309_v59  ;;  %6195 = vmatprep.mubr.msk.f32.mxu0 %vm321_vm1, %v7000_v60  ;;  %v7201_v59 = vld [vmem:[%s6852_s6 + $0x12c] sm:$0xff] }
  0x49   : > { %5943 = vmatmul.mubr.msk.f32.gmra.mrb[26].mxu1 %vm321_vm1, %v310_v61  ;;  %6196 = vmatmul.mubr.msk.f32.gmra.mrb[8].mxu0 %vm321_vm1, %v7010_v62  ;;  %v264_v61 = vld [vmem:[%s6852_s6 + $0x90] sm:$0xff] }
  0x4a   : > { %5945 = vmatprep.mubr.msk.f32.mxu1 %vm321_vm1, %v311_v63  ;;  %6198 = vmatprep.mubr.msk.f32.mxu0 %vm321_vm1, %v7014_v0  ;;  %v265_v63 = vld [vmem:[%s6852_s6 + $0x98] sm:$0xff] }
  0x4d   : > { %5946 = vmatmul.mubr.msk.f32.gmra.mrb[28].mxu1 %vm321_vm1, %v312_v2  ;;  %6199 = vmatmul.mubr.msk.f32.gmra.mrb[10].mxu0 %vm321_vm1, %v7024_v3  ;;  %v266_v2 = vld [vmem:[%s6852_s6 + $0xa0] sm:$0xff] }
  0x4e   : > { %5948 = vmatprep.mubr.msk.f32.mxu1 %vm321_vm1, %v313_v4  ;;  %6201 = vmatprep.mubr.msk.f32.mxu0 %vm321_vm1, %v7028_v5  ;;  %v7215_v4 = vld [vmem:[%s9470_s1 + $0x20] sm:$0xf] }
  0x51   : > { %5949 = vmatmul.mubr.msk.f32.gmra.mrb[30].mxu1 %vm321_vm1, %v314_v6  ;;  %6202 = vmatmul.mubr.msk.f32.gmra.mrb[12].mxu0 %vm321_vm1, %v7038_v7  ;;  %v268_v6 = vld [vmem:[%s6852_s6 + $0xb0] sm:$0xff] }
  0x52   : > { %5951 = vmatprep.mubr.msk.f32.mxu1 %vm321_vm1, %v315_v8  ;;  %6204 = vmatprep.mubr.msk.f32.mxu0 %vm321_vm1, %v7042_v9  ;;  %v281_v8 = vld [vmem:[%s6852_s6 + $0x118] sm:$0xff] }
  0x55   : > { %5952 = vmatmul.mubr.msk.f32.gmra.mrb[32].mxu1 %vm321_vm1, %v316_v10  ;;  %6205 = vmatmul.mubr.msk.f32.gmra.mrb[14].mxu0 %vm321_vm1, %v7052_v12  ;;  %v1036_v10 = vld [vmem:[%s6852_s6 + $0xa] sm:$0xff] }
  0x56   : > { %5954 = vmatprep.mubr.msk.f32.mxu1 %vm321_vm1, %v317_v13  ;;  %6207 = vmatprep.mubr.msk.f32.mxu0 %vm321_vm1, %v7056_v14  ;;  %v7303_v13 = vld [vmem:[%s6852_s6 + $0x1a] sm:$0xff] }
  0x59   : > { %5955 = vmatmul.mubr.msk.f32.gmra.mrb[34].mxu1 %vm321_vm1, %v318_v15  ;;  %6208 = vmatmul.mubr.msk.f32.gmra.mrb[16].mxu0 %vm321_vm1, %v7066_v16  ;;  %v7321_v15 = vld [vmem:[%s6852_s6 + $0x2a] sm:$0xff] }
  0x5a   : > { %5959 = vmatprep.mubr.msk.f32.mxu1 %vm321_vm1, %v246_v17  ;;  %6210 = vmatprep.mubr.msk.f32.mxu0 %vm321_vm1, %v7070_v18  ;;  %v7335_v17 = vld [vmem:[%s6852_s6 + $0x3a] sm:$0xff] }
  0x5d   : > { %5960 = vmatmul.mubr.msk.f32.vlgmr.msra.gmra.mrb[0].mxu1 %vm321_vm1, %v247_v19  ;;  %6211 = vmatmul.mubr.msk.f32.gmra.mrb[18].mxu0 %vm321_vm1, %v7080_v20  ;;  %v7349_v19 = vld [vmem:[%s6852_s6 + $0x4a] sm:$0xff] }
  0x5e   : > { %6014 = vmatpush3.msk.msra.mxu1 %vm430_vm0, %v6872_v11  ;;  %5962 = vmatprep.mubr.msk.f32.mxu1 %vm321_vm1, %v248_v21  ;;  %v251_v11 = vld [vmem:[%s6852_s6 + $0x28] sm:$0xff]  ;;  %v7363_v21 = vld [vmem:[%s6852_s6 + $0x5a] sm:$0xff] }
  0x5f   : > { %6213 = vmatprep.mubr.msk.f32.mxu0 %vm321_vm1, %v7084_v22  ;;  %6069 = vmatprep.subr.msk.mxu1 %vm430_vm0, %v7089_v23 }
  0x61   : > { %5963 = vmatmul.mubr.msk.f32.gmra.mrb[2].mxu1 %vm321_vm1, %v249_v24  ;;  %6214 = vmatmul.mubr.msk.f32.gmra.mrb[20].mxu0 %vm321_vm1, %v7099_v25  ;;  %v7380_v24 = vld [vmem:[%s6852_s6 + $0x72] sm:$0xff] }
  0x62   : > { %5965 = vmatprep.mubr.msk.f32.mxu1 %vm321_vm1, %v250_v26  ;;  %6216 = vmatprep.mubr.msk.f32.mxu0 %vm321_vm1, %v7105_v27  ;;  %v7394_v26 = vld [vmem:[%s6852_s6 + $0x82] sm:$0xff] }
  0x65   : > { %5966 = vmatmul.mubr.msk.f32.gmra.mrb[4].mxu1 %vm321_vm1, %v251_v11  ;;  %6217 = vmatmul.mubr.msk.f32.gmra.mrb[22].mxu0 %vm321_vm1, %v7117_v28  ;;  %v7405_v11 = vld [vmem:[%s6852_s6 + $0x8a] sm:$0xff] }
  0x66   : > { %5968 = vmatprep.mubr.msk.f32.mxu1 %vm321_vm1, %v252_v29  ;;  %6219 = vmatprep.mubr.msk.f32.mxu0 %vm321_vm1, %v7121_v30  ;;  %v7409_v29 = vld [vmem:[%s6852_s6 + $0x92] sm:$0xff] }
  0x69   : > { %5969 = vmatmul.mubr.msk.f32.gmra.mrb[6].mxu1 %vm321_vm1, %v253_v31  ;;  %6220 = vmatmul.mubr.msk.f32.gmra.mrb[24].mxu0 %vm321_vm1, %v7131_v32  ;;  %v7419_v31 = vld [vmem:[%s6852_s6 + $0x9a] sm:$0xff] }
  0x6a   : > { %5971 = vmatprep.mubr.msk.f32.mxu1 %vm321_vm1, %v254_v33  ;;  %6222 = vmatprep.mubr.msk.f32.mxu0 %vm321_vm1, %v7135_v34  ;;  %v7423_v33 = vld [vmem:[%s6852_s6 + $0xa2] sm:$0xff] }
  0x6d   : > { %5972 = vmatmul.mubr.msk.f32.gmra.mrb[8].mxu1 %vm321_vm1, %v255_v35  ;;  %6223 = vmatmul.mubr.msk.f32.gmra.mrb[26].mxu0 %vm321_vm1, %v7145_v36  ;;  %v7434_v35 = vld [vmem:[%s6852_s6 + $0xaa] sm:$0xff] }
  0x6e   : > { %5974 = vmatprep.mubr.msk.f32.mxu1 %vm321_vm1, %v256_v37  ;;  %6225 = vmatprep.mubr.msk.f32.mxu0 %vm321_vm1, %v7149_v38  ;;  %v7439_v37 = vld [vmem:[%s6852_s6 + $0xb2] sm:$0xff] }
  0x71   : > { %5975 = vmatmul.mubr.msk.f32.gmra.mrb[10].mxu1 %vm321_vm1, %v257_v39  ;;  %6226 = vmatmul.mubr.msk.f32.gmra.mrb[28].mxu0 %vm321_vm1, %v7159_v40  ;;  %v7449_v39 = vld [vmem:[%s6852_s6 + $0xba] sm:$0xff] }
  0x72   : > { %5977 = vmatprep.mubr.msk.f32.mxu1 %vm321_vm1, %v258_v41  ;;  %6228 = vmatprep.mubr.msk.f32.mxu0 %vm321_vm1, %v7163_v42  ;;  %v7453_v41 = vld [vmem:[%s6852_s6 + $0xc2] sm:$0xff] }
  0x75   : > { %5978 = vmatmul.mubr.msk.f32.gmra.mrb[12].mxu1 %vm321_vm1, %v259_v43  ;;  %6229 = vmatmul.mubr.msk.f32.gmra.mrb[30].mxu0 %vm321_vm1, %v7173_v44  ;;  %v7463_v43 = vld [vmem:[%s6852_s6 + $0xca] sm:$0xff] }
  0x76   : > { %5980 = vmatprep.mubr.msk.f32.mxu1 %vm321_vm1, %v260_v45  ;;  %6231 = vmatprep.mubr.msk.f32.mxu0 %vm321_vm1, %v7177_v46  ;;  %v7467_v45 = vld [vmem:[%s6852_s6 + $0xd2] sm:$0xff] }
  0x79   : > { %5981 = vmatmul.mubr.msk.f32.gmra.mrb[14].mxu1 %vm321_vm1, %v261_v49  ;;  %6232 = vmatmul.mubr.msk.f32.gmra.mrb[32].mxu0 %vm321_vm1, %v7187_v51  ;;  %v7477_v49 = vld [vmem:[%s6852_s6 + $0xda] sm:$0xff] }
  0x7a   : > { %5983 = vmatprep.mubr.msk.f32.mxu1 %vm321_vm1, %v262_v53  ;;  %6234 = vmatprep.mubr.msk.f32.mxu0 %vm321_vm1, %v7191_v55  ;;  %v7481_v53 = vld [vmem:[%s6852_s6 + $0xe2] sm:$0xff] }
  0x7d   : > { %5984 = vmatmul.mubr.msk.f32.gmra.mrb[16].mxu1 %vm321_vm1, %v263_v57  ;;  %6235 = vmatmul.mubr.msk.f32.gmra.mrb[34].mxu0 %vm321_vm1, %v7201_v59  ;;  %v7491_v57 = vld [vmem:[%s6852_s6 + $0xea] sm:$0xff] }
  0x7e   : > { %5986 = vmatprep.mubr.msk.f32.mxu1 %vm321_vm1, %v264_v61  ;;  %6239 = vmatprep.mubr.msk.f32.mxu0 %vm321_vm1, %v6950_v47  ;;  %v267_v47 = vld [vmem:[%s6852_s6 + $0xa8] sm:$0xff]  ;;  %v7495_v61 = vld [vmem:[%s6852_s6 + $0xf2] sm:$0xff] }
  0x81   : > { %5987 = vmatmul.mubr.msk.f32.gmra.mrb[18].mxu1 %vm321_vm1, %v265_v63  ;;  %6240 = vmatmul.mubr.msk.f32.vlgmr.msra.gmra.mrb[0].mxu0 %vm321_vm1, %v6964_v50  ;;  %v270_v50 = vld [vmem:[%s6852_s6 + $0xc0] sm:$0xff] }
  0x82   : > { %6294 = vmatpush3.msk.msra.mxu0 %vm430_vm0, %v6955_v48  ;;  %5989 = vmatprep.mubr.msk.f32.mxu1 %vm321_vm1, %v266_v2  ;;  %v269_v48 = vld [vmem:[%s6852_s6 + $0xb8] sm:$0xff]  ;;  %v3197_v63 = vld [vmem:[%s6852_s6 + $0x85] sm:$0xff] }
  0x83   : > { %6242 = vmatprep.mubr.msk.f32.mxu0 %vm321_vm1, %v6970_v52  ;;  %6349 = vmatprep.subr.msk.mxu0 %vm430_vm0, %v7215_v4  ;;  %v271_v52 = vld [vmem:[%s6852_s6 + $0xc8] sm:$0xff]  ;;  %v7505_v2 = vld [vmem:[%s6852_s6 + $0xfa] sm:$0xff] }
  0x85   : > { %5990 = vmatmul.mubr.msk.f32.gmra.mrb[20].mxu1 %vm321_vm1, %v267_v47  ;;  %6243 = vmatmul.mubr.msk.f32.gmra.mrb[2].mxu0 %vm321_vm1, %v6982_v54  ;;  %v272_v54 = vld [vmem:[%s6852_s6 + $0xd0] sm:$0xff]  ;;  %v7509_v47 = vld [vmem:[%s6852_s6 + $0x102] sm:$0xff] }
  0x86   : > { %5992 = vmatprep.mubr.msk.f32.mxu1 %vm321_vm1, %v268_v6  ;;  %6245 = vmatprep.mubr.msk.f32.mxu0 %vm321_vm1, %v6986_v56  ;;  %v273_v56 = vld [vmem:[%s6852_s6 + $0xd8] sm:$0xff] }
  0x87   : > { %v3199_v6 = vld [vmem:[%s6852_s6 + $0x95] sm:$0xff] }
  0x89   : > { %5993 = vmatmul.mubr.msk.f32.gmra.mrb[22].mxu1 %vm321_vm1, %v269_v48  ;;  %6246 = vmatmul.mubr.msk.f32.gmra.mrb[4].mxu0 %vm321_vm1, %v6996_v58  ;;  %v274_v58 = vld [vmem:[%s6852_s6 + $0xe0] sm:$0xff]  ;;  %v7519_v48 = vld [vmem:[%s6852_s6 + $0x10a] sm:$0xff] }
  0x8a   : > { %5995 = vmatprep.mubr.msk.f32.mxu1 %vm321_vm1, %v270_v50  ;;  %6248 = vmatprep.mubr.msk.f32.mxu0 %vm321_vm1, %v7000_v60  ;;  %v275_v60 = vld [vmem:[%s6852_s6 + $0xe8] sm:$0xff]  ;;  %v3200_v50 = vld [vmem:[%s6852_s6 + $0x9d] sm:$0xff] }
  0x8d   : > { %5996 = vmatmul.mubr.msk.f32.gmra.mrb[24].mxu1 %vm321_vm1, %v271_v52  ;;  %6249 = vmatmul.mubr.msk.f32.gmra.mrb[6].mxu0 %vm321_vm1, %v7010_v62  ;;  %v276_v62 = vld [vmem:[%s6852_s6 + $0xf0] sm:$0xff] }
  0x8e   : > { %5998 = vmatprep.mubr.msk.f32.mxu1 %vm321_vm1, %v272_v54  ;;  %6251 = vmatprep.mubr.msk.f32.mxu0 %vm321_vm1, %v7014_v0  ;;  %v277_v0 = vld [vmem:[%s6852_s6 + $0xf8] sm:$0xff]  ;;  %v3201_v54 = vld [vmem:[%s6852_s6 + $0xa5] sm:$0xff] }
  0x8f   : > { %v7523_v52 = vld [vmem:[%s6852_s6 + $0x112] sm:$0xff] }
  0x91   : > { %5999 = vmatmul.mubr.msk.f32.gmra.mrb[26].mxu1 %vm321_vm1, %v273_v56  ;;  %6252 = vmatmul.mubr.msk.f32.gmra.mrb[8].mxu0 %vm321_vm1, %v7024_v3  ;;  %v278_v3 = vld [vmem:[%s6852_s6 + $0x100] sm:$0xff] }
  0x92   : > { %6001 = vmatprep.mubr.msk.f32.mxu1 %vm321_vm1, %v274_v58  ;;  %6254 = vmatprep.mubr.msk.f32.mxu0 %vm321_vm1, %v7028_v5  ;;  %v279_v5 = vld [vmem:[%s6852_s6 + $0x108] sm:$0xff]  ;;  %v7533_v56 = vld [vmem:[%s6852_s6 + $0x11a] sm:$0xff] }
  0x93   : > { %v3202_v58 = vld [vmem:[%s6852_s6 + $0xad] sm:$0xff] }
  0x95   : > { %6002 = vmatmul.mubr.msk.f32.gmra.mrb[28].mxu1 %vm321_vm1, %v275_v60  ;;  %6255 = vmatmul.mubr.msk.f32.gmra.mrb[10].mxu0 %vm321_vm1, %v7038_v7  ;;  %v280_v7 = vld [vmem:[%s6852_s6 + $0x110] sm:$0xff] }
  0x96   : > { %6004 = vmatprep.mubr.msk.f32.mxu1 %vm321_vm1, %v276_v62  ;;  %6257 = vmatprep.mubr.msk.f32.mxu0 %vm321_vm1, %v7042_v9  ;;  %v1035_v9 = vld [vmem:[%s6852_s6 + $0x2] sm:$0xff]  ;;  %v3203_v60 = vld [vmem:[%s6852_s6 + $0xb5] sm:$0xff] }
  0x97   : > { %v3204_v62 = vld [vmem:[%s6852_s6 + $0xbd] sm:$0xff] }
  0x99   : > { %6005 = vmatmul.mubr.msk.f32.gmra.mrb[30].mxu1 %vm321_vm1, %v277_v0  ;;  %6258 = vmatmul.mubr.msk.f32.gmra.mrb[12].mxu0 %vm321_vm1, %v7052_v12  ;;  %v7293_v12 = vld [vmem:[%s6852_s6 + $0x12] sm:$0xff]  ;;  %v3205_v0 = vld [vmem:[%s6852_s6 + $0xc5] sm:$0xff] }
  0x9a   : > { %6007 = vmatprep.mubr.msk.f32.mxu1 %vm321_vm1, %v278_v3  ;;  %6260 = vmatprep.mubr.msk.f32.mxu0 %vm321_vm1, %v7056_v14  ;;  %v7308_v14 = vld [vmem:[%s6852_s6 + $0x22] sm:$0xff]  ;;  %v3206_v3 = vld [vmem:[%s6852_s6 + $0xcd] sm:$0xff] }
  0x9d   : > { %6008 = vmatmul.mubr.msk.f32.gmra.mrb[32].mxu1 %vm321_vm1, %v279_v5  ;;  %6261 = vmatmul.mubr.msk.f32.gmra.mrb[14].mxu0 %vm321_vm1, %v7066_v16  ;;  %v7324_v16 = vld [vmem:[%s6852_s6 + $0x32] sm:$0xff] }
  0x9e   : > { %6010 = vmatprep.mubr.msk.f32.mxu1 %vm321_vm1, %v280_v7  ;;  %6263 = vmatprep.mubr.msk.f32.mxu0 %vm321_vm1, %v7070_v18  ;;  %v7338_v18 = vld [vmem:[%s6852_s6 + $0x42] sm:$0xff]  ;;  %v3207_v5 = vld [vmem:[%s6852_s6 + $0xd5] sm:$0xff] }
  0x9f   : > { %v3209_v7 = vld [vmem:[%s6852_s6 + $0xe5] sm:$0xff] }
  0xa1   : > { %6011 = vmatmul.mubr.msk.f32.gmra.mrb[34].mxu1 %vm321_vm1, %v281_v8  ;;  %6264 = vmatmul.mubr.msk.f32.gmra.mrb[16].mxu0 %vm321_vm1, %v7080_v20  ;;  %v7352_v20 = vld [vmem:[%s6852_s6 + $0x52] sm:$0xff] }
  0xa2   : > { %6015 = vmatprep.mubr.msk.f32.mxu1 %vm321_vm1, %v1035_v9  ;;  %6266 = vmatprep.mubr.msk.f32.mxu0 %vm321_vm1, %v7084_v22  ;;  %v7366_v22 = vld [vmem:[%s6852_s6 + $0x62] sm:$0xff]  ;;  %v3210_v8 = vld [vmem:[%s6852_s6 + $0xed] sm:$0xff]  ;;  %v3211_v9 = vld [vmem:[%s6852_s6 + $0xf5] sm:$0xff] }
  0xa5   : > { %6016 = vmatmul.mubr.msk.f32.vlgmr.msra.gmra.mrb[0].mxu1 %vm321_vm1, %v1036_v10  ;;  %6267 = vmatmul.mubr.msk.f32.gmra.mrb[18].mxu0 %vm321_vm1, %v7099_v25  ;;  %v7391_v25 = vld [vmem:[%s6852_s6 + $0x7a] sm:$0xff] }
  0xa6   : > { %6070 = vmatpush3.msk.msra.mxu1 %vm430_vm0, %v7089_v23  ;;  %6018 = vmatprep.mubr.msk.f32.mxu1 %vm321_vm1, %v7293_v12  ;;  %v7377_v23 = vld [vmem:[%s6852_s6 + $0x6a] sm:$0xff]  ;;  %v3212_v10 = vld [vmem:[%s6852_s6 + $0xfd] sm:$0xff] }
  0xa7   : > { %6269 = vmatprep.mubr.msk.f32.mxu0 %vm321_vm1, %v7105_v27  ;;  %6405 = vmatprep.subr.msk.mxu1 %vm430_vm0, %v6830_v1  ;;  %v2789_v27 = vld [vmem:[%s6852_s6 + $0x134] sm:$0xff] }
  0xa9   : > { %6019 = vmatmul.mubr.msk.f32.gmra.mrb[2].mxu1 %vm321_vm1, %v7303_v13  ;;  %6270 = vmatmul.mubr.msk.f32.gmra.mrb[20].mxu0 %vm321_vm1, %v7117_v28  ;;  %v2790_v28 = vld [vmem:[%s6852_s6 + $0x13c] sm:$0xff] }
  0xaa   : > { %6021 = vmatprep.mubr.msk.f32.mxu1 %vm321_vm1, %v7308_v14  ;;  %6272 = vmatprep.mubr.msk.f32.mxu0 %vm321_vm1, %v7121_v30  ;;  %v3185_v30 = vld [vmem:[%s6852_s6 + $0x25] sm:$0xff] }
  0xad   : > { %6022 = vmatmul.mubr.msk.f32.gmra.mrb[4].mxu1 %vm321_vm1, %v7321_v15  ;;  %6273 = vmatmul.mubr.msk.f32.gmra.mrb[22].mxu0 %vm321_vm1, %v7131_v32  ;;  %v3186_v32 = vld [vmem:[%s6852_s6 + $0x2d] sm:$0xff] }
  0xae   : > { %6024 = vmatprep.mubr.msk.f32.mxu1 %vm321_vm1, %v7324_v16  ;;  %6275 = vmatprep.mubr.msk.f32.mxu0 %vm321_vm1, %v7135_v34  ;;  %v3187_v34 = vld [vmem:[%s6852_s6 + $0x35] sm:$0xff] }
  0xb1   : > { %6025 = vmatmul.mubr.msk.f32.gmra.mrb[6].mxu1 %vm321_vm1, %v7335_v17  ;;  %6276 = vmatmul.mubr.msk.f32.gmra.mrb[24].mxu0 %vm321_vm1, %v7145_v36  ;;  %v3188_v36 = vld [vmem:[%s6852_s6 + $0x3d] sm:$0xff] }
  0xb2   : > { %6027 = vmatprep.mubr.msk.f32.mxu1 %vm321_vm1, %v7338_v18  ;;  %6278 = vmatprep.mubr.msk.f32.mxu0 %vm321_vm1, %v7149_v38  ;;  %v3189_v38 = vld [vmem:[%s6852_s6 + $0x45] sm:$0xff] }
  0xb5   : > { %6028 = vmatmul.mubr.msk.f32.gmra.mrb[8].mxu1 %vm321_vm1, %v7349_v19  ;;  %6279 = vmatmul.mubr.msk.f32.gmra.mrb[26].mxu0 %vm321_vm1, %v7159_v40  ;;  %v3190_v40 = vld [vmem:[%s6852_s6 + $0x4d] sm:$0xff] }
  0xb6   : > { %6030 = vmatprep.mubr.msk.f32.mxu1 %vm321_vm1, %v7352_v20  ;;  %6281 = vmatprep.mubr.msk.f32.mxu0 %vm321_vm1, %v7163_v42  ;;  %v3191_v42 = vld [vmem:[%s6852_s6 + $0x55] sm:$0xff] }
  0xb9   : > { %6031 = vmatmul.mubr.msk.f32.gmra.mrb[10].mxu1 %vm321_vm1, %v7363_v21  ;;  %6282 = vmatmul.mubr.msk.f32.gmra.mrb[28].mxu0 %vm321_vm1, %v7173_v44  ;;  %v3192_v44 = vld [vmem:[%s6852_s6 + $0x5d] sm:$0xff] }
  0xba   : > { %6033 = vmatprep.mubr.msk.f32.mxu1 %vm321_vm1, %v7366_v22  ;;  %6284 = vmatprep.mubr.msk.f32.mxu0 %vm321_vm1, %v7177_v46  ;;  %v3193_v46 = vld [vmem:[%s6852_s6 + $0x65] sm:$0xff] }
  0xbd   : > { %6034 = vmatmul.mubr.msk.f32.gmra.mrb[12].mxu1 %vm321_vm1, %v7377_v23  ;;  %6285 = vmatmul.mubr.msk.f32.gmra.mrb[30].mxu0 %vm321_vm1, %v7187_v51  ;;  %v3194_v51 = vld [vmem:[%s6852_s6 + $0x6d] sm:$0xff] }
  0xbe   : > { %6036 = vmatprep.mubr.msk.f32.mxu1 %vm321_vm1, %v7380_v24  ;;  %6287 = vmatprep.mubr.msk.f32.mxu0 %vm321_vm1, %v7191_v55  ;;  %v3195_v55 = vld [vmem:[%s6852_s6 + $0x75] sm:$0xff] }
  0xc1   : > { %6037 = vmatmul.mubr.msk.f32.gmra.mrb[14].mxu1 %vm321_vm1, %v7391_v25  ;;  %6288 = vmatmul.mubr.msk.f32.gmra.mrb[32].mxu0 %vm321_vm1, %v7201_v59  ;;  %v3196_v59 = vld [vmem:[%s6852_s6 + $0x7d] sm:$0xff] }
  0xc2   : > { %6039 = vmatprep.mubr.msk.f32.mxu1 %vm321_vm1, %v7394_v26  ;;  %6290 = vmatprep.mubr.msk.f32.mxu0 %vm321_vm1, %v2789_v27  ;;  %v3622_v27 = vld [vmem:[%s6852_s6 + $0x5e] sm:$0xff] }
  0xc5   : > { %6040 = vmatmul.mubr.msk.f32.gmra.mrb[16].mxu1 %vm321_vm1, %v7405_v11  ;;  %6291 = vmatmul.mubr.msk.f32.gmra.mrb[34].mxu0 %vm321_vm1, %v2790_v28  ;;  %v3624_v28 = vld [vmem:[%s6852_s6 + $0x6e] sm:$0xff] }
  0xc6   : > { %6042 = vmatprep.mubr.msk.f32.mxu1 %vm321_vm1, %v7409_v29  ;;  %6295 = vmatprep.mubr.msk.f32.mxu0 %vm321_vm1, %v3185_v30  ;;  %v3626_v30 = vld [vmem:[%s6852_s6 + $0x7e] sm:$0xff] }
  0xc9   : > { %6043 = vmatmul.mubr.msk.f32.gmra.mrb[18].mxu1 %vm321_vm1, %v7419_v31  ;;  %6296 = vmatmul.mubr.msk.f32.vlgmr.msra.gmra.mrb[0].mxu0 %vm321_vm1, %v3186_v32  ;;  %v3628_v32 = vld [vmem:[%s6852_s6 + $0x8e] sm:$0xff] }
  0xca   : > { %6350 = vmatpush3.msk.msra.mxu0 %vm430_vm0, %v7215_v4  ;;  %6045 = vmatprep.mubr.msk.f32.mxu1 %vm321_vm1, %v7423_v33  ;;  %v3198_v4 = vld [vmem:[%s6852_s6 + $0x8d] sm:$0xff] }
  0xcb   : > { %6298 = vmatprep.mubr.msk.f32.mxu0 %vm321_vm1, %v3187_v34  ;;  %v3630_v34 = vld [vmem:[%s6852_s6 + $0x9e] sm:$0xff] }
  0xcd   : > { %6046 = vmatmul.mubr.msk.f32.gmra.mrb[20].mxu1 %vm321_vm1, %v7434_v35  ;;  %6299 = vmatmul.mubr.msk.f32.gmra.mrb[2].mxu0 %vm321_vm1, %v3188_v36  ;;  %v3631_v36 = vld [vmem:[%s6852_s6 + $0xa6] sm:$0xff] }
  0xce   : > { %6048 = vmatprep.mubr.msk.f32.mxu1 %vm321_vm1, %v7439_v37  ;;  %6301 = vmatprep.mubr.msk.f32.mxu0 %vm321_vm1, %v3189_v38  ;;  %v3632_v38 = vld [vmem:[%s6852_s6 + $0xae] sm:$0xff] }
  0xd1   : > { %6049 = vmatmul.mubr.msk.f32.gmra.mrb[22].mxu1 %vm321_vm1, %v7449_v39  ;;  %6302 = vmatmul.mubr.msk.f32.gmra.mrb[4].mxu0 %vm321_vm1, %v3190_v40  ;;  %v3633_v40 = vld [vmem:[%s6852_s6 + $0xb6] sm:$0xff] }
  0xd2   : > { %6051 = vmatprep.mubr.msk.f32.mxu1 %vm321_vm1, %v7453_v41  ;;  %6304 = vmatprep.mubr.msk.f32.mxu0 %vm321_vm1, %v3191_v42  ;;  %v3634_v42 = vld [vmem:[%s6852_s6 + $0xbe] sm:$0xff] }
  0xd5   : > { %6052 = vmatmul.mubr.msk.f32.gmra.mrb[24].mxu1 %vm321_vm1, %v7463_v43  ;;  %6305 = vmatmul.mubr.msk.f32.gmra.mrb[6].mxu0 %vm321_vm1, %v3192_v44  ;;  %v3635_v44 = vld [vmem:[%s6852_s6 + $0xc6] sm:$0xff] }
  0xd6   : > { %6054 = vmatprep.mubr.msk.f32.mxu1 %vm321_vm1, %v7467_v45  ;;  %6307 = vmatprep.mubr.msk.f32.mxu0 %vm321_vm1, %v3193_v46  ;;  %v3636_v46 = vld [vmem:[%s6852_s6 + $0xce] sm:$0xff] }
  0xd9   : > { %6055 = vmatmul.mubr.msk.f32.gmra.mrb[26].mxu1 %vm321_vm1, %v7477_v49  ;;  %6308 = vmatmul.mubr.msk.f32.gmra.mrb[8].mxu0 %vm321_vm1, %v3194_v51  ;;  %v3637_v51 = vld [vmem:[%s6852_s6 + $0xd6] sm:$0xff] }
  0xda   : > { %6057 = vmatprep.mubr.msk.f32.mxu1 %vm321_vm1, %v7481_v53  ;;  %6310 = vmatprep.mubr.msk.f32.mxu0 %vm321_vm1, %v3195_v55  ;;  %v3638_v55 = vld [vmem:[%s6852_s6 + $0xde] sm:$0xff] }
  0xdd   : > { %6058 = vmatmul.mubr.msk.f32.gmra.mrb[28].mxu1 %vm321_vm1, %v7491_v57  ;;  %6311 = vmatmul.mubr.msk.f32.gmra.mrb[10].mxu0 %vm321_vm1, %v3196_v59  ;;  %v3639_v59 = vld [vmem:[%s6852_s6 + $0xe6] sm:$0xff] }
  0xde   : > { %6060 = vmatprep.mubr.msk.f32.mxu1 %vm321_vm1, %v7495_v61  ;;  %6313 = vmatprep.mubr.msk.f32.mxu0 %vm321_vm1, %v3197_v63  ;;  %v3640_v63 = vld [vmem:[%s6852_s6 + $0xee] sm:$0xff] }
  0xe1   : > { %6061 = vmatmul.mubr.msk.f32.gmra.mrb[30].mxu1 %vm321_vm1, %v7505_v2  ;;  %6314 = vmatmul.mubr.msk.f32.gmra.mrb[12].mxu0 %vm321_vm1, %v3198_v4  ;;  %v3641_v4 = vld [vmem:[%s6852_s6 + $0xf6] sm:$0xff] }
  0xe2   : > { %6063 = vmatprep.mubr.msk.f32.mxu1 %vm321_vm1, %v7509_v47  ;;  %6316 = vmatprep.mubr.msk.f32.mxu0 %vm321_vm1, %v3199_v6  ;;  %v3642_v6 = vld [vmem:[%s6852_s6 + $0xfe] sm:$0xff] }
  0xe5   : > { %6064 = vmatmul.mubr.msk.f32.gmra.mrb[32].mxu1 %vm321_vm1, %v7519_v48  ;;  %6317 = vmatmul.mubr.msk.f32.gmra.mrb[14].mxu0 %vm321_vm1, %v3200_v50  ;;  %v3643_v50 = vld [vmem:[%s6852_s6 + $0x106] sm:$0xff] }
  0xe6   : > { %6066 = vmatprep.mubr.msk.f32.mxu1 %vm321_vm1, %v7523_v52  ;;  %6319 = vmatprep.mubr.msk.f32.mxu0 %vm321_vm1, %v3201_v54  ;;  %v3644_v54 = vld [vmem:[%s6852_s6 + $0x10e] sm:$0xff] }
  0xe9   : > { %6067 = vmatmul.mubr.msk.f32.gmra.mrb[34].mxu1 %vm321_vm1, %v7533_v56  ;;  %6320 = vmatmul.mubr.msk.f32.gmra.mrb[16].mxu0 %vm321_vm1, %v3202_v58  ;;  %v3645_v58 = vld [vmem:[%s6852_s6 + $0x116] sm:$0xff] }
  0xea   : > { %6071 = vmatprep.mubr.msk.f32.mxu1 %vm321_vm1, %v7293_v12  ;;  %6322 = vmatprep.mubr.msk.f32.mxu0 %vm321_vm1, %v3203_v60  ;;  %v3213_v12 = vld [vmem:[%s6852_s6 + $0x105] sm:$0xff] }
  0xeb   : > { %v1926_v60 = vld [vmem:[%s6852_s6 + $0x10b] sm:$0xff] }
  0xed   : > { %6072 = vmatmul.mubr.msk.f32.vlgmr.msra.gmra.mrb[0].mxu1 %vm321_vm1, %v7303_v13  ;;  %6323 = vmatmul.mubr.msk.f32.gmra.mrb[18].mxu0 %vm321_vm1, %v3204_v62  ;;  %v3214_v13 = vld [vmem:[%s6852_s6 + $0x10d] sm:$0xff]  ;;  %v3646_v62 = vld [vmem:[%s6852_s6 + $0x11e] sm:$0xff] }
  0xee   : > { %6406 = vmatpush3.msk.msra.mxu1 %vm430_vm0, %v6830_v1  ;;  %6074 = vmatprep.mubr.msk.f32.mxu1 %vm321_vm1, %v7308_v14  ;;  %v3208_v1 = vld [vmem:[%s6852_s6 + $0xdd] sm:$0xff]  ;;  %v3215_v14 = vld [vmem:[%s6852_s6 + $0x115] sm:$0xff] }
  0xef   : > { %6325 = vmatprep.mubr.msk.f32.mxu0 %vm321_vm1, %v3205_v0  ;;  %v1927_v0 = vld [vmem:[%s6852_s6 + $0x113] sm:$0xff] }
  0xf1   : > { %6075 = vmatmul.mubr.msk.f32.gmra.mrb[2].mxu1 %vm321_vm1, %v7321_v15  ;;  %6326 = vmatmul.mubr.msk.f32.gmra.mrb[20].mxu0 %vm321_vm1, %v3206_v3  ;;  %v3216_v15 = vld [vmem:[%s6852_s6 + $0x11d] sm:$0xff]  ;;  %v3647_v3 = vld [vmem:[%s6852_s6 + $0x126] sm:$0xff] }
  0xf2   : > { %6077 = vmatprep.mubr.msk.f32.mxu1 %vm321_vm1, %v7324_v16  ;;  %6328 = vmatprep.mubr.msk.f32.mxu0 %vm321_vm1, %v3207_v5  ;;  %v3217_v16 = vld [vmem:[%s6852_s6 + $0x125] sm:$0xff]  ;;  %v1928_v5 = vld [vmem:[%s6852_s6 + $0x11b] sm:$0xff] }
  0xf5   : > { %6078 = vmatmul.mubr.msk.f32.gmra.mrb[4].mxu1 %vm321_vm1, %v7335_v17  ;;  %6329 = vmatmul.mubr.msk.f32.gmra.mrb[22].mxu0 %vm321_vm1, %v3208_v1  ;;  %v3218_v17 = vld [vmem:[%s6852_s6 + $0x12d] sm:$0xff] }
  0xf6   : > { %6080 = vmatprep.mubr.msk.f32.mxu1 %vm321_vm1, %v7338_v18  ;;  %6331 = vmatprep.mubr.msk.f32.mxu0 %vm321_vm1, %v3209_v7  ;;  %v3219_v18 = vld [vmem:[%s6852_s6 + $0x135] sm:$0xff]  ;;  %v1929_v7 = vld [vmem:[%s6852_s6 + $0x123] sm:$0xff] }
  0xf7   : > { %v3648_v1 = vld [vmem:[%s6852_s6 + $0x12e] sm:$0xff] }
  0xf9   : > { %6081 = vmatmul.mubr.msk.f32.gmra.mrb[6].mxu1 %vm321_vm1, %v7349_v19  ;;  %6332 = vmatmul.mubr.msk.f32.gmra.mrb[24].mxu0 %vm321_vm1, %v3210_v8  ;;  %v3220_v19 = vld [vmem:[%s6852_s6 + $0x13d] sm:$0xff] }
  0xfa   : > { %6083 = vmatprep.mubr.msk.f32.mxu1 %vm321_vm1, %v7352_v20  ;;  %6334 = vmatprep.mubr.msk.f32.mxu0 %vm321_vm1, %v3211_v9  ;;  %v3615_v20 = vld [vmem:[%s6852_s6 + $0x26] sm:$0xff]  ;;  %v3649_v8 = vld [vmem:[%s6852_s6 + $0x136] sm:$0xff] }
  0xfb   : > { %v1930_v9 = vld [vmem:[%s6852_s6 + $0x12b] sm:$0xff] }
  0xfd   : > { %6084 = vmatmul.mubr.msk.f32.gmra.mrb[8].mxu1 %vm321_vm1, %v7363_v21  ;;  %6335 = vmatmul.mubr.msk.f32.gmra.mrb[26].mxu0 %vm321_vm1, %v3212_v10  ;;  %v3616_v21 = vld [vmem:[%s6852_s6 + $0x2e] sm:$0xff]  ;;  %v3650_v10 = vld [vmem:[%s6852_s6 + $0x13e] sm:$0xff] }
  0xfe   : > { %6086 = vmatprep.mubr.msk.f32.mxu1 %vm321_vm1, %v7366_v22  ;;  %6337 = vmatprep.mubr.msk.f32.mxu0 %vm321_vm1, %v3213_v12  ;;  %v3617_v22 = vld [vmem:[%s6852_s6 + $0x36] sm:$0xff]  ;;  %v4233_v12 = vlaneseq }
 0x101   : > { %6087 = vmatmul.mubr.msk.f32.gmra.mrb[10].mxu1 %vm321_vm1, %v7377_v23  ;;  %6338 = vmatmul.mubr.msk.f32.gmra.mrb[28].mxu0 %vm321_vm1, %v3214_v13  ;;  %v3618_v23 = vld [vmem:[%s6852_s6 + $0x3e] sm:$0xff]  ;;  %v7757_v13 = vshrl.u32 %v4233_v12, 7 }
 0x102   : > { %6089 = vmatprep.mubr.msk.f32.mxu1 %vm321_vm1, %v7380_v24  ;;  %6340 = vmatprep.mubr.msk.f32.mxu0 %vm321_vm1, %v3215_v14  ;;  %v3619_v24 = vld [vmem:[%s6852_s6 + $0x46] sm:$0xff] }
 0x103   : > { %v4235_v14 = vadd.s32 8, %v7757_v13  ;;  %v7865_v12 = vadd.s32 96, %v7757_v13 }
 0x105   : > { %6090 = vmatmul.mubr.msk.f32.gmra.mrb[12].mxu1 %vm321_vm1, %v7391_v25  ;;  %6341 = vmatmul.mubr.msk.f32.gmra.mrb[30].mxu0 %vm321_vm1, %v3216_v15  ;;  %v3620_v25 = vld [vmem:[%s6852_s6 + $0x4e] sm:$0xff] }
 0x106   : > { %6092 = vmatprep.mubr.msk.f32.mxu1 %vm321_vm1, %v7394_v26  ;;  %6343 = vmatprep.mubr.msk.f32.mxu0 %vm321_vm1, %v3217_v16  ;;  %v3621_v26 = vld [vmem:[%s6852_s6 + $0x56] sm:$0xff]  ;;  %v7760_v15 = vmul.u32.u64.low 3817748708, %v4235_v14  ;;  %v7761_v16 = vmul.u32.u64.high 3817748708, %v4235_v14, %v7760_v15 }
 0x109   : > { %6093 = vmatmul.mubr.msk.f32.gmra.mrb[14].mxu1 %vm321_vm1, %v7405_v11  ;;  %6344 = vmatmul.mubr.msk.f32.gmra.mrb[32].mxu0 %vm321_vm1, %v3218_v17  ;;  %v3623_v11 = vld [vmem:[%s6852_s6 + $0x66] sm:$0xff]  ;;  %v4237_v17 = vadd.s32 24, %v7757_v13 }
 0x10a   : > { %6095 = vmatprep.mubr.msk.f32.mxu1 %vm321_vm1, %v7409_v29  ;;  %6346 = vmatprep.mubr.msk.f32.mxu0 %vm321_vm1, %v3219_v18  ;;  %v3625_v29 = vld [vmem:[%s6852_s6 + $0x76] sm:$0xff]  ;;  %v4236_v18 = vadd.s32 16, %v7757_v13 }
 0x10d   : > { %6096 = vmatmul.mubr.msk.f32.gmra.mrb[16].mxu1 %vm321_vm1, %v7419_v31  ;;  %6347 = vmatmul.mubr.msk.f32.gmra.mrb[34].mxu0 %vm321_vm1, %v3220_v19  ;;  %v3627_v31 = vld [vmem:[%s6852_s6 + $0x86] sm:$0xff] }
 0x10e   : > { %6098 = vmatprep.mubr.msk.f32.mxu1 %vm321_vm1, %v7423_v33  ;;  %6351 = vmatprep.mubr.msk.f32.mxu0 %vm321_vm1, %v3615_v20  ;;  %v3629_v33 = vld [vmem:[%s6852_s6 + $0x96] sm:$0xff]  ;;  %v7766_v19 = vmul.u32.u64.low 3817748708, %v7757_v13  ;;  %v7767_v20 = vmul.u32.u64.high 3817748708, %v7757_v13, %v7766_v19 }
 0x111   : > { %6099 = vmatmul.mubr.msk.f32.gmra.mrb[18].mxu1 %vm321_vm1, %v7434_v35  ;;  %6352 = vmatmul.mubr.msk.f32.vlgmr.msra.gmra.mrb[0].mxu0 %vm321_vm1, %v3616_v21  ;;  %v1499_v35 = vld [vmem:[%s6852_s6 + $0x122] sm:$0xff]  ;;  %v4239_v21 = vadd.s32 40, %v7757_v13 }
 0x112   : > { %6101 = vmatprep.mubr.msk.f32.mxu1 %vm321_vm1, %v7439_v37  ;;  %6354 = vmatprep.mubr.msk.f32.mxu0 %vm321_vm1, %v3617_v22  ;;  %v1500_v37 = vld [vmem:[%s6852_s6 + $0x12a] sm:$0xff] }
 0x115   : > { %6102 = vmatmul.mubr.msk.f32.gmra.mrb[20].mxu1 %vm321_vm1, %v7449_v39  ;;  %6355 = vmatmul.mubr.msk.f32.gmra.mrb[2].mxu0 %vm321_vm1, %v3618_v23  ;;  %v1913_v39 = vld [vmem:[%s6852_s6 + $0xa3] sm:$0xff]  ;;  %v7770_v22 = vmul.u32.u64.low 3817748708, %v4237_v17  ;;  %v7771_v23 = vmul.u32.u64.high 3817748708, %v4237_v17, %v7770_v22 }
 0x116   : > { %6104 = vmatprep.mubr.msk.f32.mxu1 %vm321_vm1, %v7453_v41  ;;  %6357 = vmatprep.mubr.msk.f32.mxu0 %vm321_vm1, %v3619_v24  ;;  %v1914_v41 = vld [vmem:[%s6852_s6 + $0xab] sm:$0xff] }
 0x119   : > { %6105 = vmatmul.mubr.msk.f32.gmra.mrb[22].mxu1 %vm321_vm1, %v7463_v43  ;;  %6358 = vmatmul.mubr.msk.f32.gmra.mrb[4].mxu0 %vm321_vm1, %v3620_v25  ;;  %v1915_v43 = vld [vmem:[%s6852_s6 + $0xb3] sm:$0xff]  ;;  %v7773_v24 = vmul.u32.u64.low 3817748708, %v4236_v18  ;;  %v7774_v25 = vmul.u32.u64.high 3817748708, %v4236_v18, %v7773_v24 }
 0x11a   : > { %6107 = vmatprep.mubr.msk.f32.mxu1 %vm321_vm1, %v7467_v45  ;;  %6360 = vmatprep.mubr.msk.f32.mxu0 %vm321_vm1, %v3621_v26  ;;  %v1916_v45 = vld [vmem:[%s6852_s6 + $0xbb] sm:$0xff]  ;;  %v4238_v26 = vadd.s32 32, %v7757_v13  ;;  %v9578_v24 = vmov 0 }
 0x11d   : > { %6108 = vmatmul.mubr.msk.f32.gmra.mrb[24].mxu1 %vm321_vm1, %v7477_v49  ;;  %6361 = vmatmul.mubr.msk.f32.gmra.mrb[6].mxu0 %vm321_vm1, %v3622_v27  ;;  %v1917_v49 = vld [vmem:[%s6852_s6 + $0xc3] sm:$0xff]  ;;  %v4287_v27 = vshrl.u32 %v7761_v16, 4  ;;  %v7873_v16 = vadd.s32 120, %v7757_v13 }
 0x11e   : > { %6110 = vmatprep.mubr.msk.f32.mxu1 %vm321_vm1, %v7481_v53  ;;  %6363 = vmatprep.mubr.msk.f32.mxu0 %vm321_vm1, %v3623_v11  ;;  %v1918_v53 = vld [vmem:[%s6852_s6 + $0xcb] sm:$0xff] }
 0x121   : > { %6111 = vmatmul.mubr.msk.f32.gmra.mrb[26].mxu1 %vm321_vm1, %v7491_v57  ;;  %6364 = vmatmul.mubr.msk.f32.gmra.mrb[8].mxu0 %vm321_vm1, %v3624_v28  ;;  %v1919_v57 = vld [vmem:[%s6852_s6 + $0xd3] sm:$0xff]  ;;  %v7778_v11 = vmul.u32.u64.low 3817748708, %v4239_v21  ;;  %v7779_v28 = vmul.u32.u64.high 3817748708, %v4239_v21, %v7778_v11 }
 0x122   : > { %6113 = vmatprep.mubr.msk.f32.mxu1 %vm321_vm1, %v7495_v61  ;;  %6366 = vmatprep.mubr.msk.f32.mxu0 %vm321_vm1, %v3625_v29  ;;  %v1920_v61 = vld [vmem:[%s6852_s6 + $0xdb] sm:$0xff]  ;;  %v4276_v29 = vshrl.u32 %v7767_v20, 4  ;;  %v7882_v20 = vadd.s32 112, %v7757_v13  ;;  %v7913_v11 = vadd.s32 136, %v7757_v13 }
 0x125   : > { %6114 = vmatmul.mubr.msk.f32.gmra.mrb[28].mxu1 %vm321_vm1, %v7505_v2  ;;  %6367 = vmatmul.mubr.msk.f32.gmra.mrb[10].mxu0 %vm321_vm1, %v3626_v30  ;;  %v1921_v2 = vld [vmem:[%s6852_s6 + $0xe3] sm:$0xff] }
 0x126   : > { %6116 = vmatprep.mubr.msk.f32.mxu1 %vm321_vm1, %v7509_v47  ;;  %6369 = vmatprep.mubr.msk.f32.mxu0 %vm321_vm1, %v3627_v31  ;;  %v1922_v47 = vld [vmem:[%s6852_s6 + $0xeb] sm:$0xff]  ;;  %v7782_v30 = vmul.u32.u64.low 3817748708, %v4238_v26  ;;  %v7783_v31 = vmul.u32.u64.high 3817748708, %v4238_v26, %v7782_v30 }
 0x129   : > { %6117 = vmatmul.mubr.msk.f32.gmra.mrb[30].mxu1 %vm321_vm1, %v7519_v48  ;;  %6370 = vmatmul.mubr.msk.f32.gmra.mrb[12].mxu0 %vm321_vm1, %v3628_v32  ;;  %v1923_v48 = vld [vmem:[%s6852_s6 + $0xf3] sm:$0xff]  ;;  %v4241_v32 = vadd.s32 56, %v7757_v13 }
 0x12a   : > { %6119 = vmatprep.mubr.msk.f32.mxu1 %vm321_vm1, %v7523_v52  ;;  %6372 = vmatprep.mubr.msk.f32.mxu0 %vm321_vm1, %v3629_v33  ;;  %v1924_v52 = vld [vmem:[%s6852_s6 + $0xfb] sm:$0xff]  ;;  %v4240_v33 = vadd.s32 48, %v7757_v13 }
 0x12d   : > { %6120 = vmatmul.mubr.msk.f32.gmra.mrb[32].mxu1 %vm321_vm1, %v7533_v56  ;;  %6373 = vmatmul.mubr.msk.f32.gmra.mrb[14].mxu0 %vm321_vm1, %v3630_v34  ;;  %v1925_v56 = vld [vmem:[%s6852_s6 + $0x103] sm:$0xff]  ;;  %v4288_v34 = vmul.u32 18, %v4287_v27 }
 0x12e   : > { %6122 = vmatprep.mubr.msk.f32.mxu1 %vm321_vm1, %v1499_v35  ;;  %6375 = vmatprep.mubr.msk.f32.mxu0 %vm321_vm1, %v3631_v36  ;;  %v4309_v35 = vshrl.u32 %v7771_v23, 4  ;;  %v4298_v36 = vshrl.u32 %v7774_v25, 4 }
 0x131   : > { %6123 = vmatmul.mubr.msk.f32.gmra.mrb[34].mxu1 %vm321_vm1, %v1500_v37  ;;  %6376 = vmatmul.mubr.msk.f32.gmra.mrb[16].mxu0 %vm321_vm1, %v3632_v38  ;;  %v4277_v37 = vmul.u32 18, %v4276_v29 }
 0x132   : > { %6154 = vmatprep.mubr.msk.f32.mxu1 %vm321_vm1, %v1913_v39  ;;  %6378 = vmatprep.mubr.msk.f32.mxu0 %vm321_vm1, %v3633_v40  ;;  %v7789_v38 = vmul.u32.u64.low 3817748708, %v4241_v32  ;;  %v7790_v39 = vmul.u32.u64.high 3817748708, %v4241_v32, %v7789_v38 }
 0x135   : > { %6155 = vmatmul.mubr.msk.f32.vlgmr.msra.gmra.mrb[18].mxu1 %vm321_vm1, %v1914_v41  ;;  %6379 = vmatmul.mubr.msk.f32.gmra.mrb[18].mxu0 %vm321_vm1, %v3634_v42  ;;  %v7792_v40 = vmul.u32.u64.low 3817748708, %v4240_v33  ;;  %v7793_v41 = vmul.u32.u64.high 3817748708, %v4240_v33, %v7792_v40  ;;  %v7795_v42 = vsub.s32 %v4235_v14, %v4288_v34 }
 0x136   : > { %6157 = vmatprep.mubr.msk.f32.mxu1 %vm321_vm1, %v1915_v43  ;;  %6381 = vmatprep.mubr.msk.f32.mxu0 %vm321_vm1, %v3635_v44  ;;  %v4331_v43 = vshrl.u32 %v7779_v28, 4  ;;  %v4310_v44 = vmul.u32 18, %v4309_v35  ;;  %v9581_v28 = vmov 0 }
 0x137   : > { %vm4667_vm2 = vcmp.ne.s32.totalorder %v7795_v42, 0  ;;  %vm4703_vm3 = vcmp.lt.s32.totalorder %v7795_v42, 0  ;;  %v7941_v34 = vmul.u32.u64.low 3817748708, %v7882_v20  ;;  %v7942_v35 = vmul.u32.u64.high 3817748708, %v7882_v20, %v7941_v34 }
 0x138   : > { %vm7888_vm12 = vmand %vm4703_vm3, %vm4667_vm2 }
 0x139   : > { %6158 = vmatmul.mubr.msk.f32.gmra.mrb[20].mxu1 %vm321_vm1, %v1916_v45  ;;  %6382 = vmatmul.mubr.msk.f32.gmra.mrb[20].mxu0 %vm321_vm1, %v3636_v46  ;;  %v4299_v45 = vmul.u32 18, %v4298_v36  ;;  %v7799_v46 = vadd.s32 72, %v7757_v13  ;;  %v9585_v36 = vmov 0 }
 0x13a   : > { %6160 = vmatprep.mubr.msk.f32.mxu1 %vm321_vm1, %v1917_v49  ;;  %6384 = vmatprep.mubr.msk.f32.mxu0 %vm321_vm1, %v3637_v51  ;;  %v7802_v49 = vsub.s32 %v7757_v13, %v4277_v37  ;;  %v4320_v51 = vshrl.u32 %v7783_v31, 4  ;;  %v7924_v30 = vmul.u32.u64.low 3817748708, %v7873_v16  ;;  %v7925_v31 = vmul.u32.u64.high 3817748708, %v7873_v16, %v7924_v30 }
 0x13c   : > { %vm4666_vm4 = vcmp.ne.s32.totalorder %v7802_v49, 0  ;;  %vm4702_vm5 = vcmp.lt.s32.totalorder %v7802_v49, 0 }
 0x13d   : > { %6161 = vmatmul.mubr.msk.f32.gmra.mrb[22].mxu1 %vm321_vm1, %v1918_v53  ;;  %6385 = vmatmul.mubr.msk.f32.gmra.mrb[22].mxu0 %vm321_vm1, %v3638_v55  ;;  %v7806_v53 = vadd.s32 64, %v7757_v13  ;;  %v4332_v55 = vmul.u32 18, %v4331_v43  ;;  %vm7901_vm15 = vmand %vm4702_vm5, %vm4666_vm4 }
 0x13e   : > { %6163 = vmatprep.mubr.msk.f32.mxu1 %vm321_vm1, %v1919_v57  ;;  %6387 = vmatprep.mubr.msk.f32.mxu0 %vm321_vm1, %v3639_v59  ;;  %v7810_v57 = vsub.s32 %v4237_v17, %v4310_v44  ;;  %v7812_v59 = vsub.s32 %v4236_v18, %v4299_v45  ;;  %v9579_v24 = vsel %vm7901_vm15, 4294967295, %v9578_v24  ;;  %v9591_v45 = vmov 0 }
 0x13f   : > { %v7968_v43 = vmul.u32.u64.low 3817748708, %v7913_v11  ;;  %v7969_v44 = vmul.u32.u64.high 3817748708, %v7913_v11, %v7968_v43 }
 0x140   : > { %vm4669_vm6 = vcmp.ne.s32.totalorder %v7810_v57, 0  ;;  %vm4705_vm7 = vcmp.lt.s32.totalorder %v7810_v57, 0  ;;  %vm4668_vm8 = vcmp.ne.s32.totalorder %v7812_v59, 0  ;;  %vm4704_vm9 = vcmp.lt.s32.totalorder %v7812_v59, 0 }
 0x141   : > { %6164 = vmatmul.mubr.msk.f32.gmra.mrb[24].mxu1 %vm321_vm1, %v1920_v61  ;;  %6388 = vmatmul.mubr.msk.f32.gmra.mrb[24].mxu0 %vm321_vm1, %v3640_v63  ;;  %v7815_v61 = vmul.u32.u64.low 3817748708, %v7799_v46  ;;  %v7816_v63 = vmul.u32.u64.high 3817748708, %v7799_v46, %v7815_v61  ;;  %vm7919_vm0 = vmand %vm4705_vm7, %vm4669_vm6 }
 0x142   : > { %6166 = vmatprep.mubr.msk.f32.mxu1 %vm321_vm1, %v1921_v2  ;;  %6390 = vmatprep.mubr.msk.f32.mxu0 %vm321_vm1, %v3641_v4  ;;  %v7819_v2 = vadd.s32 18, %v7795_v42  ;;  %v4321_v4 = vmul.u32 18, %v4320_v51  ;;  %v9582_v28 = vsel %vm7919_vm0, 4294967295, %v9581_v28 }
 0x143   : > { %v4375_v15 = vshrl.u32 %v7816_v63, 4 }
 0x145   : > { %6167 = vmatmul.mubr.msk.f32.gmra.mrb[26].mxu1 %vm321_vm1, %v1922_v47  ;;  %6391 = vmatmul.mubr.msk.f32.gmra.mrb[26].mxu0 %vm321_vm1, %v3642_v6  ;;  %v4353_v47 = vshrl.u32 %v7790_v39, 4  ;;  %v4342_v6 = vshrl.u32 %v7793_v41, 4  ;;  %v4376_v29 = vmul.u32 18, %v4375_v15  ;;  %v9587_v39 = vmov 0 }
 0x146   : > { %6169 = vmatprep.mubr.msk.f32.mxu1 %vm321_vm1, %v1923_v48  ;;  %6393 = vmatprep.mubr.msk.f32.mxu0 %vm321_vm1, %v3643_v50  ;;  %v7825_v48 = vmul.u32.u64.low 3817748708, %v7806_v53  ;;  %v7826_v50 = vmul.u32.u64.high 3817748708, %v7806_v53, %v7825_v48 }
 0x148   : > { %v4364_v23 = vshrl.u32 %v7826_v50, 4 }
 0x149   : > { %6170 = vmatmul.mubr.msk.f32.gmra.mrb[28].mxu1 %vm321_vm1, %v1924_v52  ;;  %6394 = vmatmul.mubr.msk.f32.gmra.mrb[28].mxu0 %vm321_vm1, %v3644_v54  ;;  %v7829_v52 = vadd.s32 88, %v7757_v13  ;;  %v7833_v54 = vadd.s32 18, %v7802_v49 }
 0x14a   : > { %6172 = vmatprep.mubr.msk.f32.mxu1 %vm321_vm1, %v1925_v56  ;;  %6396 = vmatprep.mubr.msk.f32.mxu0 %vm321_vm1, %v3645_v58  ;;  %v7835_v56 = vsub.s32 %v4239_v21, %v4332_v55  ;;  %v7838_v58 = vadd.s32 80, %v7757_v13  ;;  %v9575_v21 = vmov 0  ;;  %v4365_v37 = vmul.u32 18, %v4364_v23 }
 0x14b   : > { %v9576_v21 = vsel %vm7888_vm12, 4294967295, %v9575_v21  ;;  %v7979_v55 = vsub.s32 %v7799_v46, %v4376_v29  ;;  %v8038_v29 = vadd.s32 144, %v7757_v13 }
 0x14c   : > { %9571 = vst [vmem:[#allocation2_spill] sm:$0xff] %v7835_v56  ;;  %vm4671_vm10 = vcmp.ne.s32.totalorder %v7835_v56, 0  ;;  %vm4707_vm11 = vcmp.lt.s32.totalorder %v7835_v56, 0  ;;  %v7869_v14 = vadd.s32 18, %v7835_v56 }
 0x14d   : > { %6173 = vmatmul.mubr.msk.f32.gmra.mrb[30].mxu1 %vm321_vm1, %v1926_v60  ;;  %6397 = vmatmul.mubr.msk.f32.gmra.mrb[30].mxu0 %vm321_vm1, %v3646_v62  ;;  %v7843_v60 = vadd.s32 18, %v7810_v57  ;;  %v7848_v62 = vadd.s32 18, %v7812_v59  ;;  %vm7948_vm4 = vmand %vm4707_vm11, %vm4671_vm10  ;;  %9595 = vst [vmem:[#allocation12_spill] sm:$0xff] %v7979_v55  ;;  %vm4675_vm10 = vcmp.ne.s32.totalorder %v7979_v55, 0  ;;  %vm4711_vm11 = vcmp.lt.s32.totalorder %v7979_v55, 0 }
 0x14e   : > { %6175 = vmatprep.mubr.msk.f32.mxu1 %vm321_vm1, %v1927_v0  ;;  %6399 = vmatprep.mubr.msk.f32.mxu0 %vm321_vm1, %v3647_v3  ;;  %v4354_v0 = vmul.u32 18, %v4353_v47  ;;  %v7851_v3 = vadd.s32 104, %v7757_v13  ;;  %9573 = vst [vmem:[#allocation4_spill] sm:$0xff] %v7869_v14  ;;  %v9586_v36 = vsel %vm7948_vm4, 4294967295, %v9585_v36 }
 0x150   : > { %v7875_v17 = vsub.s32 %v4241_v32, %v4354_v0  ;;  %v7878_v18 = vmul.u32.u64.low 3817748708, %v7851_v3  ;;  %v7879_v19 = vmul.u32.u64.high 3817748708, %v7851_v3, %v7878_v18  ;;  %v7928_v32 = vadd.s32 128, %v7757_v13 }
 0x151   : > { %6176 = vmatmul.mubr.msk.f32.gmra.mrb[32].mxu1 %vm321_vm1, %v1928_v5  ;;  %6400 = vmatmul.mubr.msk.f32.gmra.mrb[32].mxu0 %vm321_vm1, %v3648_v1  ;;  %v7853_v5 = vsub.s32 %v4238_v26, %v4321_v4  ;;  %v4343_v1 = vmul.u32 18, %v4342_v6  ;;  %v7909_v26 = vmul.u32.u64.low 3817748708, %v7865_v12  ;;  %v7910_v27 = vmul.u32.u64.high 3817748708, %v7865_v12, %v7909_v26 }
 0x152   : > { %6178 = vmatprep.mubr.msk.f32.mxu1 %vm321_vm1, %v1929_v7  ;;  %6402 = vmatprep.mubr.msk.f32.mxu0 %vm321_vm1, %v3649_v8  ;;  %v7856_v7 = vmul.u32.u64.low 3817748708, %v7829_v52  ;;  %v7857_v8 = vmul.u32.u64.high 3817748708, %v7829_v52, %v7856_v7  ;;  %9574 = vst [vmem:[#allocation5_spill] sm:$0xff] %v7875_v17  ;;  %vm4673_vm2 = vcmp.ne.s32.totalorder %v7875_v17, 0  ;;  %vm4709_vm3 = vcmp.lt.s32.totalorder %v7875_v17, 0 }
 0x153   : > { %9572 = vst [vmem:[#allocation3_spill] sm:$0xff] %v7853_v5  ;;  %vm4670_vm13 = vcmp.ne.s32.totalorder %v7853_v5, 0  ;;  %vm4706_vm14 = vcmp.lt.s32.totalorder %v7853_v5, 0  ;;  %v7894_v22 = vsub.s32 %v4240_v33, %v4343_v1  ;;  %v7906_v25 = vadd.s32 18, %v7853_v5 }
 0x154   : > { %v9583_v33 = vmov 0  ;;  %v4397_v38 = vshrl.u32 %v7857_v8, 4  ;;  %vm7959_vm7 = vmand %vm4706_vm14, %vm4670_vm13  ;;  %v7964_v40 = vadd.s32 18, %v7875_v17  ;;  %v9596_v6 = vmov 0 }
 0x155   : > { %6179 = vmatmul.mubr.msk.f32.gmra.mrb[34].mxu1 %vm321_vm1, %v1930_v9  ;;  %6403 = vmatmul.mubr.msk.f32.gmra.mrb[34].mxu0 %vm321_vm1, %v3650_v10  ;;  %v7861_v9 = vmul.u32.u64.low 3817748708, %v7838_v58  ;;  %v7862_v10 = vmul.u32.u64.high 3817748708, %v7838_v58, %v7861_v9  ;;  %9577 = vst [vmem:[#allocation6_spill] sm:$0xff] %v7894_v22  ;;  %9580 = vst [vmem:[#allocation7_spill] sm:$0xff] %v7906_v25  ;;  %vm4672_vm5 = vcmp.ne.s32.totalorder %v7894_v22, 0  ;;  %vm4708_vm6 = vcmp.lt.s32.totalorder %v7894_v22, 0 }
 0x156   : > { %vm7934_vm1 = vmand %vm4704_vm9, %vm4668_vm8  ;;  %v9588_v39 = vsel %vm7959_vm7, 4294967295, %v9587_v39  ;;  %9590 = vst [vmem:[#allocation9_spill] sm:$0xff] %v7964_v40  ;;  %v7976_v51 = vadd.s32 18, %v7894_v22  ;;  %v7982_v61 = vmul.u32.u64.low 3817748708, %v7928_v32  ;;  %v7983_v63 = vmul.u32.u64.high 3817748708, %v7928_v32, %v7982_v61 }
 0x157   : > { %v9584_v33 = vsel %vm7934_vm1, 4294967295, %v9583_v33  ;;  %9589 = vst [vmem:[#allocation8_spill] sm:$0xff] %v9588_v39  ;;  %v4386_v41 = vshrl.u32 %v7862_v10, 4  ;;  %vm7971_vm8 = vmand %vm4709_vm3, %vm4673_vm2  ;;  %v4419_v48 = vshrl.u32 %v7879_v19, 4  ;;  %v8015_v1 = vsub.s32 %v7806_v53, %v4365_v37 }
 0x158   : > { %v9592_v45 = vsel %vm7971_vm8, 4294967295, %v9591_v45  ;;  %9594 = vst [vmem:[#allocation11_spill] sm:$0xff] %v7976_v51  ;;  %vm8001_vm9 = vmand %vm4708_vm6, %vm4672_vm5  ;;  %v4398_v7 = vmul.u32 18, %v4397_v38  ;;  %v4408_v15 = vshrl.u32 %v7910_v27, 4  ;;  %v4441_v18 = vshrl.u32 %v7925_v31, 4 }
 0x159   : > { %9593 = vst [vmem:[#allocation10_spill] sm:$0xff] %v9592_v45  ;;  %v9597_v6 = vsel %vm8001_vm9, 4294967295, %v9596_v6  ;;  %9599 = vst [vmem:[#allocation14_spill] sm:$0xff] %v8015_v1  ;;  %v4387_v10 = vmul.u32 18, %v4386_v41  ;;  %v8033_v19 = vadd.s32 152, %v7757_v13  ;;  %v4420_v23 = vmul.u32 18, %v4419_v48 }
 0x15a   : > { %9598 = vst [vmem:[#allocation13_spill] sm:$0xff] %v9597_v6  ;;  %v4430_v26 = vshrl.u32 %v7942_v35, 4  ;;  %v8041_v27 = vadd.s32 18, %v7979_v55  ;;  %vm4674_vm13 = vcmp.ne.s32.totalorder %v8015_v1, 0  ;;  %vm4710_vm14 = vcmp.lt.s32.totalorder %v8015_v1, 0  ;;  %vm8101_vm6 = vmand %vm4711_vm11, %vm4675_vm10 }
 0x15b   : > { %v8046_v30 = vsub.s32 %v7829_v52, %v4398_v7  ;;  %v8049_v31 = vadd.s32 18, %v8015_v1  ;;  %v8052_v34 = vsub.s32 %v7838_v58, %v4387_v10  ;;  %v4409_v35 = vmul.u32 18, %v4408_v15  ;;  %vm8117_vm2 = vmand %vm4710_vm14, %vm4674_vm13 }
 0x15c   : > { %9600 = vst [vmem:[#allocation15_spill] sm:$0xff] %v8041_v27  ;;  %v4463_v37 = vshrl.u32 %v7969_v44, 4  ;;  %v4442_v38 = vmul.u32 18, %v4441_v18  ;;  %v4452_v41 = vshrl.u32 %v7983_v63, 4  ;;  %v8061_v48 = vsub.s32 %v7851_v3, %v4420_v23 }
 0x15d   : > { %9601 = vst [vmem:[#allocation16_spill] sm:$0xff] %v8046_v30  ;;  %9602 = vst [vmem:[#allocation17_spill] sm:$0xff] %v8049_v31  ;;  %v8057_v43 = vmul.u32.u64.low 3817748708, %v8033_v19  ;;  %v8058_v61 = vmul.u32.u64.high 3817748708, %v8033_v19, %v8057_v43  ;;  %v4431_v52 = vmul.u32 18, %v4430_v26  ;;  %v8070_v58 = vadd.s32 168, %v7757_v13 }
 0x15e   : > { %9603 = vst [vmem:[#allocation18_spill] sm:$0xff] %v8052_v34  ;;  %9604 = vst [vmem:[#allocation19_spill] sm:$0xff] %v8061_v48  ;;  %v8064_v7 = vmul.u32.u64.low 3817748708, %v8038_v29  ;;  %v8065_v53 = vmul.u32.u64.high 3817748708, %v8038_v29, %v8064_v7  ;;  %v8073_v44 = vadd.s32 160, %v7757_v13  ;;  %v8076_v63 = vadd.s32 18, %v8046_v30 }
 0x15f   : > { %v8080_v3 = vsub.s32 %v7865_v12, %v4409_v35  ;;  %v4464_v10 = vmul.u32 18, %v4463_v37  ;;  %v8084_v15 = vadd.s32 18, %v8052_v34  ;;  %v8087_v18 = vsub.s32 %v7873_v16, %v4442_v38 }
 0x160   : > { %9605 = vst [vmem:[#allocation20_spill] sm:$0xff] %v8076_v63  ;;  %v4453_v23 = vmul.u32 18, %v4452_v41  ;;  %v8092_v26 = vadd.s32 18, %v8061_v48  ;;  %v8095_v12 = vsub.s32 %v7882_v20, %v4431_v52  ;;  %v9611_v35 = vmov 0 }
 0x161   : > { %9606 = vst [vmem:[#allocation21_spill] sm:$0xff] %v8080_v3  ;;  %9607 = vst [vmem:[#allocation22_spill] sm:$0xff] %v8084_v15  ;;  %v9612_v35 = vsel %vm8101_vm6, 4294967295, %v9611_v35  ;;  %v8106_v16 = vmul.u32.u64.low 3817748708, %v8070_v58  ;;  %v8107_v37 = vmul.u32.u64.high 3817748708, %v8070_v58, %v8106_v16  ;;  %v9614_v20 = vmov 0 }
 0x162   : > { %9608 = vst [vmem:[#allocation23_spill] sm:$0xff] %v8087_v18  ;;  %9609 = vst [vmem:[#allocation24_spill] sm:$0xff] %v8092_v26  ;;  %v8110_v38 = vmul.u32.u64.low 3817748708, %v8073_v44  ;;  %v8111_v41 = vmul.u32.u64.high 3817748708, %v8073_v44, %v8110_v38  ;;  %v9615_v20 = vsel %vm8117_vm2, 4294967295, %v9614_v20  ;;  %v8124_v43 = vsub.s32 %v7913_v11, %v4464_v10 }
 0x163   : > { %9610 = vst [vmem:[#allocation25_spill] sm:$0xff] %v8095_v12  ;;  %9613 = vst [vmem:[#allocation26_spill] sm:$0xff] %v9612_v35  ;;  %v8127_v52 = vadd.s32 184, %v7757_v13  ;;  %vm9618_vm3 = vcmp.ne.s32.totalorder %v8046_v30, 0  ;;  %vm9619_vm5 = vcmp.lt.s32.totalorder %v8046_v30, 0  ;;  %v9620_v7 = vmov 0 }
 0x164   : > { %9616 = vst [vmem:[#allocation27_spill] sm:$0xff] %v9615_v20  ;;  %9617 = vst [vmem:[#allocation28_spill] sm:$0xff] %v8124_v43  ;;  %v8138_v16 = vadd.s32 18, %v8080_v3  ;;  %v8142_v38 = vsub.s32 %v7928_v32, %v4453_v23  ;;  %v4485_v11 = vshrl.u32 %v8058_v61, 4  ;;  %vm9625_vm14 = vcmp.ne.s32.totalorder %v8052_v34, 0 }
 0x165   : > { %vm8133_vm9 = vmand %vm9619_vm5, %vm9618_vm3  ;;  %vm9626_vm11 = vcmp.lt.s32.totalorder %v8052_v34, 0  ;;  %v9627_v10 = vmov 0  ;;  %v8155_v9 = vadd.s32 18, %v8087_v18  ;;  %v4474_v8 = vshrl.u32 %v8065_v53, 4 }
 0x166   : > { %v9621_v7 = vsel %vm8133_vm9, 4294967295, %v9620_v7  ;;  %9623 = vst [vmem:[#allocation30_spill] sm:$0xff] %v8138_v16  ;;  %9624 = vst [vmem:[#allocation31_spill] sm:$0xff] %v8142_v38  ;;  %v8159_v32 = vadd.s32 176, %v7757_v13  ;;  %vm9631_vm5 = vcmp.ne.s32.totalorder %v8061_v48, 0  ;;  %vm9632_vm13 = vcmp.lt.s32.totalorder %v8061_v48, 0 }
 0x167   : > { %9622 = vst [vmem:[#allocation29_spill] sm:$0xff] %v9621_v7  ;;  %vm8149_vm10 = vmand %vm9626_vm11, %vm9625_vm14  ;;  %v9633_v61 = vmov 0  ;;  %v8172_v23 = vadd.s32 18, %v8095_v12  ;;  %v8175_v53 = vadd.s32 200, %v7757_v13  ;;  %vm9637_vm3 = vcmp.ne.s32.totalorder %v8080_v3, 0 }
 0x168   : > { %v9628_v10 = vsel %vm8149_vm10, 4294967295, %v9627_v10  ;;  %9630 = vst [vmem:[#allocation33_spill] sm:$0xff] %v8155_v9  ;;  %vm8165_vm8 = vmand %vm9632_vm13, %vm9631_vm5  ;;  %vm9638_vm7 = vcmp.lt.s32.totalorder %v8080_v3, 0  ;;  %v9639_v0 = vmov 0  ;;  %vm4683_vm13 = vcmp.ne.s32.totalorder %v8124_v43, 0 }
 0x169   : > { %9629 = vst [vmem:[#allocation32_spill] sm:$0xff] %v9628_v10  ;;  %v9634_v61 = vsel %vm8165_vm8, 4294967295, %v9633_v61  ;;  %9636 = vst [vmem:[#allocation35_spill] sm:$0xff] %v8172_v23  ;;  %vm4719_vm5 = vcmp.lt.s32.totalorder %v8124_v43, 0  ;;  %v8188_v50 = vmul.u32.u64.low 3817748708, %v8127_v52  ;;  %v8189_v46 = vmul.u32.u64.high 3817748708, %v8127_v52, %v8188_v50 }
 0x16a   : > { %9635 = vst [vmem:[#allocation34_spill] sm:$0xff] %v9634_v61  ;;  %vm8181_vm4 = vmand %vm9638_vm7, %vm9637_vm3  ;;  %vm9642_vm14 = vcmp.ne.s32.totalorder %v8087_v18, 0  ;;  %vm9643_vm11 = vcmp.lt.s32.totalorder %v8087_v18, 0  ;;  %v9644_v4 = vmov 0  ;;  %v8202_v22 = vadd.s32 18, %v8124_v43 }
 0x16b   : > { %v9640_v0 = vsel %vm8181_vm4, 4294967295, %v9639_v0  ;;  %vm8197_vm1 = vmand %vm9643_vm11, %vm9642_vm14  ;;  %vm4682_vm7 = vcmp.ne.s32.totalorder %v8142_v38, 0  ;;  %vm4718_vm3 = vcmp.lt.s32.totalorder %v8142_v38, 0  ;;  %v4486_v51 = vmul.u32 18, %v4485_v11 }
 0x16c   : > { %9641 = vst [vmem:[#allocation36_spill] sm:$0xff] %v9640_v0  ;;  %v9645_v4 = vsel %vm8197_vm1, 4294967295, %v9644_v4  ;;  %9647 = vst [vmem:[#allocation38_spill] sm:$0xff] %v8202_v22  ;;  %vm9648_vm0 = vcmp.ne.s32.totalorder %v8095_v12, 0  ;;  %vm9649_vm15 = vcmp.lt.s32.totalorder %v8095_v12, 0  ;;  %v9650_v50 = vmov 0 }
 0x16d   : > { %9646 = vst [vmem:[#allocation37_spill] sm:$0xff] %v9645_v4  ;;  %vm8212_vm12 = vmand %vm9649_vm15, %vm9648_vm0  ;;  %v8217_v17 = vadd.s32 18, %v8142_v38  ;;  %v4475_v40 = vmul.u32 18, %v4474_v8  ;;  %v8220_v45 = vmul.u32.u64.low 3817748708, %v8159_v32  ;;  %v8221_v5 = vmul.u32.u64.high 3817748708, %v8159_v32, %v8220_v45 }
 0x16e   : > { %v9651_v50 = vsel %vm8212_vm12, 4294967295, %v9650_v50  ;;  %vm8223_vm11 = vmand %vm4719_vm5, %vm4683_vm13  ;;  %v9654_v11 = vmov 0  ;;  %v4507_v25 = vshrl.u32 %v8107_v37, 4  ;;  %v4496_v39 = vshrl.u32 %v8111_v41, 4 }
 0x16f   : > { %9652 = vst [vmem:[#allocation39_spill] sm:$0xff] %v9651_v50  ;;  %9653 = vst [vmem:[#allocation40_spill] sm:$0xff] %v8217_v17  ;;  %v9655_v11 = vsel %vm8223_vm11, 4294967295, %v9654_v11  ;;  %v8230_v56 = vmul.u32.u64.low 3817748708, %v8175_v53  ;;  %v8231_v14 = vmul.u32.u64.high 3817748708, %v8175_v53, %v8230_v56  ;;  %v9657_v41 = vmov 0 }
 0x170   : > { %9656 = vst [vmem:[#allocation41_spill] sm:$0xff] %v9655_v11  ;;  %vm8247_vm15 = vmand %vm4718_vm3, %vm4682_vm7  ;;  %v8252_v56 = vadd.s32 192, %v7757_v13  ;;  %v8269_v63 = vsub.s32 %v8033_v19, %v4486_v51  ;;  %v8286_v51 = vsub.s32 %v8038_v29, %v4475_v40  ;;  %v4508_v4 = vmul.u32 18, %v4507_v25 }
 0x171   : > { %v9658_v41 = vsel %vm8247_vm15, 4294967295, %v9657_v41  ;;  %v4497_v45 = vmul.u32 18, %v4496_v39  ;;  %v8293_v18 = vadd.s32 216, %v7757_v13  ;;  %v4529_v37 = vshrl.u32 %v8189_v46, 4 }
 0x172   : > { %9659 = vst [vmem:[#allocation42_spill] sm:$0xff] %v9658_v41  ;;  %9660 = vst [vmem:[#allocation43_spill] sm:$0xff] %v8286_v51  ;;  %v8297_v12 = vmul.u32.u64.low 3817748708, %v8252_v56  ;;  %v8298_v23 = vmul.u32.u64.high 3817748708, %v8252_v56, %v8297_v12  ;;  %v8301_v30 = vadd.s32 208, %v7757_v13  ;;  %vm4685_vm0 = vcmp.ne.s32.totalorder %v8269_v63, 0 }
 0x173   : > { %vm4721_vm14 = vcmp.lt.s32.totalorder %v8269_v63, 0  ;;  %v8308_v25 = vadd.s32 18, %v8269_v63  ;;  %v8311_v39 = vadd.s32 232, %v7757_v13  ;;  %vm4684_vm13 = vcmp.ne.s32.totalorder %v8286_v51, 0 }
 0x174   : > { %v8318_v29 = vadd.s32 18, %v8286_v51  ;;  %v4518_v12 = vshrl.u32 %v8221_v5, 4  ;;  %v8322_v19 = vadd.s32 224, %v7757_v13  ;;  %v4551_v38 = vshrl.u32 %v8231_v14, 4  ;;  %vm8405_vm5 = vmand %vm4721_vm14, %vm4685_vm0 }
 0x175   : > { %v8326_v17 = vmul.u32.u64.low 3817748708, %v8293_v18  ;;  %v8327_v41 = vmul.u32.u64.high 3817748708, %v8293_v18, %v8326_v17  ;;  %v8330_v43 = vadd.s32 248, %v7757_v13  ;;  %v4530_v22 = vmul.u32 18, %v4529_v37 }
 0x176   : > { %9663 = vst [vmem:[#allocation46_spill] sm:$0xff] %v8318_v29  ;;  %v8333_v11 = vmul.u32.u64.low 3817748708, %v8301_v30  ;;  %v8334_v50 = vmul.u32.u64.high 3817748708, %v8301_v30, %v8333_v11  ;;  %v8337_v9 = vadd.s32 240, %v7757_v13  ;;  %v8342_v3 = vsub.s32 %v8070_v58, %v4508_v4 }
 0x177   : > { %v8345_v14 = vmul.u32.u64.low 3817748708, %v8311_v39  ;;  %v8346_v16 = vmul.u32.u64.high 3817748708, %v8311_v39, %v8345_v14  ;;  %v8349_v17 = vadd.s32 264, %v7757_v13  ;;  %v4519_v0 = vmul.u32 18, %v4518_v12 }
 0x178   : > { %9665 = vst [vmem:[#allocation48_spill] sm:$0xff] %v8342_v3  ;;  %v8354_v11 = vmul.u32.u64.low 3817748708, %v8322_v19  ;;  %v8355_v48 = vmul.u32.u64.high 3817748708, %v8322_v19, %v8354_v11  ;;  %v8358_v26 = vadd.s32 256, %v7757_v13  ;;  %v8361_v4 = vsub.s32 %v8073_v44, %v4497_v45 }
 0x179   : > { %v4552_v58 = vmul.u32 18, %v4551_v38  ;;  %v8364_v61 = vmul.u32.u64.low 3817748708, %v8330_v43  ;;  %v8365_v14 = vmul.u32.u64.high 3817748708, %v8330_v43, %v8364_v61  ;;  %v8368_v34 = vsub.s32 %v8127_v52, %v4530_v22 }
 0x17a   : > { %v4540_v12 = vshrl.u32 %v8298_v23, 4  ;;  %v8372_v15 = vmul.u32.u64.low 3817748708, %v8337_v9  ;;  %v8373_v10 = vmul.u32.u64.high 3817748708, %v8337_v9, %v8372_v15  ;;  %v8386_v22 = vadd.s32 18, %v8342_v3 }
 0x17b   : > { %v8380_v44 = vmul.u32.u64.low 3817748708, %v8349_v17  ;;  %v8381_v38 = vmul.u32.u64.high 3817748708, %v8349_v17, %v8380_v44  ;;  %v8389_v52 = vsub.s32 %v8159_v32, %v4519_v0  ;;  %v8398_v45 = vsub.s32 %v8175_v53, %v4552_v58 }
 0x17c   : > { %v8392_v15 = vmul.u32.u64.low 3817748708, %v8358_v26  ;;  %v8393_v23 = vmul.u32.u64.high 3817748708, %v8358_v26, %v8392_v15  ;;  %v4573_v44 = vshrl.u32 %v8327_v41, 4  ;;  %v9671_v0 = vmov 0 }
 0x17d   : > { %9669 = vst [vmem:[#allocation52_spill] sm:$0xff] %v8389_v52  ;;  %9670 = vst [vmem:[#allocation53_spill] sm:$0xff] %v8398_v45  ;;  %v9672_v0 = vsel %vm8405_vm5, 4294967295, %v9671_v0  ;;  %v8410_v32 = vadd.s32 18, %v8361_v4  ;;  %v4541_v15 = vmul.u32 18, %v4540_v12  ;;  %vm9674_vm3 = vcmp.lt.s32.totalorder %v8286_v51, 0 }
 0x17e   : > { %vm8420_vm15 = vmand %vm9674_vm3, %vm4684_vm13  ;;  %v9675_v41 = vmov 0  ;;  %v8426_v58 = vadd.s32 18, %v8368_v34  ;;  %v8430_v12 = vadd.s32 280, %v7757_v13  ;;  %vm9678_vm14 = vcmp.ne.s32.totalorder %v8342_v3, 0 }
 0x17f   : > { %v9676_v41 = vsel %vm8420_vm15, 4294967295, %v9675_v41  ;;  %vm9679_vm7 = vcmp.lt.s32.totalorder %v8342_v3, 0  ;;  %v8445_v1 = vadd.s32 18, %v8389_v52  ;;  %vm9683_vm11 = vcmp.ne.s32.totalorder %v8361_v4, 0 }
 0x180   : > { %vm8438_vm13 = vmand %vm9679_vm7, %vm9678_vm14  ;;  %vm9684_vm12 = vcmp.lt.s32.totalorder %v8361_v4, 0  ;;  %vm4691_vm7 = vcmp.ne.s32.totalorder %v8398_v45, 0  ;;  %v4574_v31 = vmul.u32 18, %v4573_v44  ;;  %v4617_v20 = vshrl.u32 %v8365_v14, 4 }
 0x181   : > { %9682 = vst [vmem:[#allocation56_spill] sm:$0xff] %v8445_v1  ;;  %vm8452_vm1 = vmand %vm9684_vm12, %vm9683_vm11  ;;  %vm9688_vm0 = vcmp.ne.s32.totalorder %v8368_v34, 0  ;;  %vm9689_vm3 = vcmp.lt.s32.totalorder %v8368_v34, 0  ;;  %v8468_v55 = vadd.s32 18, %v8398_v45  ;;  %v8471_v27 = vsub.s32 %v8252_v56, %v4541_v15 }
 0x182   : > { %vm8463_vm4 = vmand %vm9689_vm3, %vm9688_vm0  ;;  %vm9693_vm12 = vcmp.ne.s32.totalorder %v8389_v52, 0  ;;  %vm9694_vm11 = vcmp.lt.s32.totalorder %v8389_v52, 0  ;;  %v9695_v14 = vmov 0  ;;  %vm9697_vm0 = vcmp.lt.s32.totalorder %v8398_v45, 0 }
 0x183   : > { %9692 = vst [vmem:[#allocation58_spill] sm:$0xff] %v8468_v55  ;;  %vm8480_vm14 = vmand %vm9694_vm11, %vm9693_vm12  ;;  %v8517_v51 = vsub.s32 %v8293_v18, %v4574_v31  ;;  %v4618_v29 = vmul.u32 18, %v4617_v20  ;;  %vm4726_vm12 = vcmp.lt.s32.totalorder %v8471_v27, 0 }
 0x184   : > { %v9696_v14 = vsel %vm8480_vm14, 4294967295, %v9695_v14  ;;  %vm8503_vm3 = vmand %vm9697_vm0, %vm4691_vm7  ;;  %vm9704_vm0 = vcmp.ne.s32.totalorder %v8471_v27, 0 }
 0x185   : > { %v8552_v31 = vadd.s32 18, %v8517_v51  ;;  %vm8569_vm11 = vmand %vm4726_vm12, %vm9704_vm0  ;;  %vm9712_vm0 = vcmp.ne.s32.totalorder %v8517_v51, 0  ;;  %vm9713_vm7 = vcmp.lt.s32.totalorder %v8517_v51, 0 }
 0x186   : > { %vm8594_vm14 = vmand %vm9713_vm7, %vm9712_vm0 }
 0x1c0   : > { %v8191_v47 = vpop.f32.mrb[0].mxu1 }
 0x1c1   : > { %v8206_v6 = vpop.f32.mrb[1].mxu1 }
 0x1c4   : > { %v8254_v8 = vpop.f32.mrb[2].mxu1 }
 0x1c5   : > { %v8271_v7 = vpop.f32.mrb[3].mxu1 }
 0x1c8   : > { %v8303_v40 = vpop.f32.mrb[4].mxu1 }
 0x1c9   : > { %9661 = vst [vmem:[#allocation44_spill] sm:$0xff] %v8303_v40  ;;  %v8313_v46 = vpop.f32.mrb[5].mxu1  ;;  %v8486_v40 = vmul.u32.u64.low 3817748708, %v8430_v12  ;;  %v8487_v56 = vmul.u32.u64.high 3817748708, %v8430_v12, %v8486_v40 }
 0x1ca   : > { %9662 = vst [vmem:[#allocation45_spill] sm:$0xff] %v8313_v46  ;;  %v4639_v46 = vshrl.u32 %v8381_v38, 4  ;;  %v4628_v38 = vshrl.u32 %v8393_v23, 4 }
 0x1cc   : > { %v8339_v5 = vpop.f32.mrb[6].mxu1  ;;  %v4640_v20 = vmul.u32 18, %v4639_v46 }
 0x1cd   : > { %9664 = vst [vmem:[#allocation47_spill] sm:$0xff] %v8339_v5  ;;  %v8351_v37 = vpop.f32.mrb[7].mxu1 }
 0x1ce   : > { %9666 = vst [vmem:[#allocation49_spill] sm:$0xff] %v8351_v37  ;;  %v4606_v37 = vshrl.u32 %v8373_v10, 4 }
 0x1d0   : > { %v8375_v11 = vpop.f32.mrb[8].mxu1  ;;  %v4607_v3 = vmul.u32 18, %v4606_v37  ;;  %v4629_v37 = vmul.u32 18, %v4628_v38 }
 0x1d1   : > { %9667 = vst [vmem:[#allocation50_spill] sm:$0xff] %v8375_v11  ;;  %v8383_v61 = vpop.f32.mrb[9].mxu1  ;;  %v4595_v11 = vshrl.u32 %v8346_v16, 4  ;;  %v4584_v16 = vshrl.u32 %v8355_v48, 4  ;;  %v9690_v48 = vmov 0 }
 0x1d2   : > { %9668 = vst [vmem:[#allocation51_spill] sm:$0xff] %v8383_v61  ;;  %v4562_v61 = vshrl.u32 %v8334_v50, 4  ;;  %v9691_v48 = vsel %vm8463_vm4, 4294967295, %v9690_v48  ;;  %v8560_v46 = vsub.s32 %v8337_v9, %v4607_v3  ;;  %v4661_v9 = vshrl.u32 %v8487_v56, 4 }
 0x1d3   : > { %v4596_v5 = vmul.u32 18, %v4595_v11  ;;  %v9698_v11 = vmov 0  ;;  %v4585_v40 = vmul.u32 18, %v4584_v16  ;;  %vm9708_vm4 = vnez %v9576_v21  ;;  %v9787_v21 = vld [vmem:[#allocation45_spill] sm:$0xff] }
 0x1d4   : > { %v8414_v53 = vpop.f32.mrb[10].mxu1  ;;  %v4563_v35 = vmul.u32 18, %v4562_v61  ;;  %v9699_v11 = vsel %vm8503_vm3, 4294967295, %v9698_v11  ;;  %9703 = vst [vmem:[#allocation62_spill] sm:$0xff] %v8560_v46  ;;  %v4662_v15 = vmul.u32 18, %v4661_v9 }
 0x1d5   : > { %9673 = vst [vmem:[#allocation54_spill] sm:$0xff] %v8414_v53  ;;  %v8432_v50 = vpop.f32.mrb[11].mxu1  ;;  %v9680_v53 = vmov 0  ;;  %9700 = vst [vmem:[#allocation59_spill] sm:$0xff] %v9699_v11  ;;  %v8538_v18 = vsub.s32 %v8311_v39, %v4596_v5  ;;  %v8555_v39 = vsub.s32 %v8330_v43, %v4618_v29  ;;  %v8576_v43 = vsub.s32 %v8349_v17, %v4640_v20 }
 0x1d6   : > { %9677 = vst [vmem:[#allocation55_spill] sm:$0xff] %v8432_v50  ;;  %v9681_v53 = vsel %vm8438_vm13, 4294967295, %v9680_v53  ;;  %v9685_v50 = vmov 0  ;;  %v8528_v10 = vsub.s32 %v8301_v30, %v4563_v35  ;;  %v8544_v30 = vadd.s32 18, %v8471_v27 }
 0x1d7   : > { %v9686_v50 = vsel %vm8452_vm1, 4294967295, %v9685_v50  ;;  %v8547_v35 = vsub.s32 %v8322_v19, %v4585_v40  ;;  %9702 = vst [vmem:[#allocation61_spill] sm:$0xff] %v8555_v39  ;;  %v8563_v19 = vadd.s32 272, %v7757_v13  ;;  %9707 = vst [vmem:[#allocation63_spill] sm:$0xff] %v8576_v43  ;;  %v9709_v13 = vsel %vm9708_vm4, %v7819_v2, %v7795_v42 }
 0x1d8   : > { %9687 = vst [vmem:[#allocation57_spill] sm:$0xff] %v9686_v50  ;;  %v8474_v44 = vpop.f32.mrb[12].mxu1  ;;  %vm8586_vm12 = vcmp.lt.s32.totalorder %v9709_v13, 16  ;;  %v9714_v17 = vmov 0  ;;  %v8599_v56 = vadd.s32 18, %v8528_v10  ;;  %v8604_v42 = vsub.s32 %v8358_v26, %v4629_v37 }
 0x1d9   : > { %v8489_v61 = vpop.f32.mrb[13].mxu1  ;;  %9701 = vst [vmem:[#allocation60_spill] sm:$0xff] %v8547_v35  ;;  %v9715_v17 = vsel %vm8594_vm14, 4294967295, %v9714_v17  ;;  %vm4730_vm1 = vcmp.lt.s32.totalorder %v8547_v35, 0  ;;  %vm9717_vm4 = vnez %v9579_v24  ;;  %vm9721_vm7 = vcmp.ne.s32.totalorder %v8528_v10, 0 }
 0x1da   : > { %9716 = vst [vmem:[#allocation64_spill] sm:$0xff] %v8604_v42  ;;  %v9718_v2 = vsel %vm9717_vm4, %v7833_v54, %v7802_v49  ;;  %vm9722_vm0 = vcmp.lt.s32.totalorder %v8528_v10, 0  ;;  %v8624_v26 = vadd.s32 18, %v8538_v18  ;;  %v8627_v24 = vadd.s32 18, %v8547_v35  ;;  %v8634_v49 = vld [vmem:[%s9471_s2] ss:$0 sm:$0xff] }
 0x1db   : > { %vm8611_vm13 = vcmp.lt.s32.totalorder %v9718_v2, 16  ;;  %vm8619_vm15 = vmand %vm9722_vm0, %vm9721_vm7  ;;  %vm9726_vm7 = vcmp.ne.s32.totalorder %v8538_v18, 0  ;;  %vm9727_vm0 = vcmp.lt.s32.totalorder %v8538_v18, 0  ;;  %vm9730_vm3 = vcmp.ne.s32.totalorder %v8547_v35, 0 }
 0x1dc   : > { %v8530_v50 = vpop.f32.mrb[14].mxu1  ;;  %9725 = vst [vmem:[#allocation65_spill] sm:$0xff] %v8627_v24  ;;  %vm8640_vm5 = vmand %vm9727_vm0, %vm9726_vm7  ;;  %v8647_v20 = vmul.u32.u64.low 3817748708, %v8563_v19  ;;  %v8648_v37 = vmul.u32.u64.high 3817748708, %v8563_v19, %v8647_v20  ;;  %v9731_v2 = vmov 0  ;;  %v8657_v23 = vadd.s32 18, %v8555_v39 }
 0x1dd   : > { %v8540_v16 = vpop.f32.mrb[15].mxu1  ;;  %vm8652_vm4 = vmand %vm4730_vm1, %vm9730_vm3  ;;  %vm9735_vm10 = vcmp.ne.s32.totalorder %v8555_v39, 0  ;;  %vm9736_vm8 = vcmp.lt.s32.totalorder %v8555_v39, 0  ;;  %v9737_v20 = vmov 0  ;;  %v8672_v11 = vadd.s32 18, %v8560_v46 }
 0x1de   : > { %v9732_v2 = vsel %vm8652_vm4, 4294967295, %v9731_v2  ;;  %9734 = vst [vmem:[#allocation67_spill] sm:$0xff] %v8657_v23  ;;  %vm8667_vm1 = vmand %vm9736_vm8, %vm9735_vm10  ;;  %vm9741_vm7 = vnez %v9582_v28  ;;  %vm9745_vm8 = vcmp.ne.s32.totalorder %v8560_v46, 0  ;;  %vm9746_vm10 = vcmp.lt.s32.totalorder %v8560_v46, 0 }
 0x1df   : > { %9733 = vst [vmem:[#allocation66_spill] sm:$0xff] %v9732_v2  ;;  %v9738_v20 = vsel %vm8667_vm1, 4294967295, %v9737_v20  ;;  %9740 = vst [vmem:[#allocation69_spill] sm:$0xff] %v8672_v11  ;;  %v9982_v38 = vsel %vm8640_vm5, %v8624_v26, %v8538_v18 }
 0x1e0   : > { %v8565_v5 = vpop.f32.mrb[16].mxu1  ;;  %9739 = vst [vmem:[#allocation68_spill] sm:$0xff] %v9738_v20  ;;  %vm8698_vm0 = vmand %vm9746_vm10, %vm9745_vm8  ;;  %vm9755_vm8 = vcmp.ne.s32.totalorder %v8576_v43, 0  ;;  %vm9756_vm10 = vcmp.lt.s32.totalorder %v8576_v43, 0 }
 0x1e1   : > { %v8579_v3 = vpop.f32.mrb[17].mxu1  ;;  %vm8727_vm14 = vmand %vm9756_vm10, %vm9755_vm8  ;;  %vm9762_vm8 = vcmp.lt.s32.totalorder %v8604_v42, 0 }
 0x1e4   : > { %v6353_v13 = vpop.f32.mrb[0].mxu0 }
 0x1e5   : > { %v6407_v45 = vadd.f32 %v6353_v13, %v8191_v47  ;;  %v3830_v55 = vpop.f32.mrb[1].mxu0  ;;  %v9742_v47 = vsel %vm9741_vm7, %v7843_v60, %v7810_v57  ;;  %v9747_v57 = vmov 0  ;;  %v8703_v60 = vadd.s32 18, %v8576_v43  ;;  %v9822_v43 = vld [vmem:[#allocation14_spill] sm:$0xff] }
 0x1e6   : > { %v6408_v9 = vadd.f32 %v3830_v55, %v8206_v6  ;;  %vm8682_vm9 = vcmp.lt.s32.totalorder %v9742_v47, 16  ;;  %v9748_v57 = vsel %vm8698_vm0, 4294967295, %v9747_v57  ;;  %vm9751_vm7 = vnez %v9584_v33 }
 0x1e7   : > { %9749 = vst [vmem:[#allocation70_spill] sm:$0xff] %v9748_v57  ;;  %9750 = vst [vmem:[#allocation71_spill] sm:$0xff] %v8703_v60  ;;  %v4053_v28 = vadd.f32 %v6407_v45, %v8634_v49  ;;  %v9752_v55 = vsel %vm9751_vm7, %v7848_v62, %v7812_v59  ;;  %v9757_v59 = vmov 0  ;;  %v8732_v62 = vadd.s32 18, %v8604_v42  ;;  %v9811_v57 = vld [vmem:[#allocation15_spill] sm:$0xff] }
 0x1e8   : > { %vm8711_vm3 = vcmp.lt.s32.totalorder %v9752_v55, 16  ;;  %v9758_v59 = vsel %vm8727_vm14, 4294967295, %v9757_v59  ;;  %v4052_v33 = vadd.f32 %v6408_v9, %v8634_v49  ;;  %v6356_v45 = vpop.f32.mrb[2].mxu0  ;;  %vm9761_vm7 = vcmp.ne.s32.totalorder %v8604_v42, 0 }
 0x1e9   : > { %9759 = vst [vmem:[#allocation72_spill] sm:$0xff] %v9758_v59  ;;  %9760 = vst [vmem:[#allocation73_spill] sm:$0xff] %v8732_v62  ;;  %v9763_v47 = vmov 0  ;;  %v8752_v9 = vsub.s32 %v8430_v12, %v4662_v15  ;;  %vm4089_vm4 = vcmp.ge.f32.partialorder %v4053_v28, 0.0  ;;  %v4125_v55 = vmul.f32 0.01, %v4053_v28 }
 0x1ea   : > { %vm8747_vm10 = vmand %vm9762_vm8, %vm9761_vm7  ;;  %v6409_v1 = vadd.f32 %v6356_v45, %v8254_v8  ;;  %v3840_v52 = vpop.f32.mrb[3].mxu0  ;;  %vm4088_vm7 = vcmp.ge.f32.partialorder %v4052_v33, 0.0  ;;  %v4124_v23 = vmul.f32 0.01, %v4052_v33  ;;  %vm9767_vm8 = vnez %v9586_v36  ;;  %v9768_v8 = vld [vmem:[#allocation4_spill] sm:$0xff]  ;;  %v9769_v45 = vld [vmem:[#allocation2_spill] sm:$0xff] }
 0x1eb   : > { %v9764_v47 = vsel %vm8747_vm10, 4294967295, %v9763_v47  ;;  %9766 = vst [vmem:[#allocation75_spill] sm:$0xff] %v8752_v9  ;;  %v6410_v12 = vadd.f32 %v3840_v52, %v8271_v7  ;;  %v4161_v20 = vsel %vm4089_vm4, %v4053_v28, %v4125_v55  ;;  %v9770_v24 = vsel %vm9767_vm8, %v9768_v8, %v9769_v45  ;;  %v9776_v8 = vld [vmem:[#allocation7_spill] sm:$0xff] }
 0x1ec   : > { %9765 = vst [vmem:[#allocation74_spill] sm:$0xff] %v9764_v47  ;;  %v4055_v35 = vadd.f32 %v6409_v1, %v8634_v49  ;;  %vm8775_vm1 = vcmp.lt.s32.totalorder %v9770_v24, 16  ;;  %v4650_v52 = vshrl.u32 %v8648_v37, 4  ;;  %vm9773_vm14 = vcmask 64512   ;;  %v6359_v55 = vpop.f32.mrb[4].mxu0  ;;  %v9774_v24 = vld [vmem:[#allocation8_spill] sm:$0xff] }
 0x1ed   : > { %4198 = vst.msk [vmem:[%s8757_s24 + $0x8] sm:$0xff] %vm9773_vm14, %v4161_v20  ;;  %v4883_v1 = vsel %vm8586_vm12, %v4161_v20, 0.0  ;;  %v4160_v36 = vsel %vm4088_vm7, %v4052_v33, %v4124_v23  ;;  %v4054_v28 = vadd.f32 %v6410_v12, %v8634_v49  ;;  %vm9775_vm4 = vnez %v9774_v24  ;;  %v9777_v45 = vld [vmem:[#allocation3_spill] sm:$0xff]  ;;  %vm9782_vm12 = vmmov %vm9773_vm14  ;;  %v3850_v20 = vpop.f32.mrb[5].mxu0 }
 0x1ee   : > { %v9778_v15 = vsel %vm9775_vm4, %v9776_v8, %v9777_v45  ;;  %v8799_v37 = vadd.s32 18, %v8752_v9  ;;  %v4919_v7 = vsel %vm9773_vm14, %v4883_v1, 0.0  ;;  %v4991_v29 = vmul.f32 %v4883_v1, %v4883_v1  ;;  %4197 = vst.msk [vmem:[%s8757_s24] sm:$0xff] %vm9782_vm12, %v4160_v36  ;;  %vm9783_vm10 = vmmov %vm9782_vm12  ;;  %v9812_v9 = vld [vmem:[#allocation12_spill] sm:$0xff] }
 0x1ef   : > { %vm8794_vm8 = vcmp.lt.s32.totalorder %v9778_v15, 16  ;;  %v4882_v23 = vsel %vm8611_vm13, %v4160_v36, 0.0  ;;  %vm4091_vm7 = vcmp.ge.f32.partialorder %v4055_v35, 0.0  ;;  %v4127_v15 = vmul.f32 0.01, %v4055_v35  ;;  %vm9784_vm0 = vmmov %vm9783_vm10 }
 0x1f0   : > { %9781 = vst [vmem:[#allocation4_spill] sm:$0xff] %v8799_v37  ;;  %v4918_v33 = vsel %vm9783_vm10, %v4882_v23, 0.0  ;;  %v4990_v12 = vmul.f32 %v4882_v23, %v4882_v23  ;;  %vm4090_vm4 = vcmp.ge.f32.partialorder %v4054_v28, 0.0  ;;  %v5027_v24 = vsel %vm9784_vm0, %v4991_v29, 0.0  ;;  %v9785_v37 = vld [vmem:[#allocation44_spill] sm:$0xff]  ;;  %vm9786_vm14 = vmmov %vm9784_vm0  ;;  %v6362_v47 = vpop.f32.mrb[6].mxu0 }
 0x1f1   : > { %v4920_v8 = vadd.f32 %v4919_v7, %v4918_v33  ;;  %v4126_v45 = vmul.f32 0.01, %v4054_v28  ;;  %v6411_v1 = vadd.f32 %v6359_v55, %v9785_v37  ;;  %v4163_v62 = vsel %vm4091_vm7, %v4055_v35, %v4127_v15  ;;  %vm9788_vm13 = vmmov %vm9784_vm0  ;;  %v9789_v33 = vld [vmem:[#allocation10_spill] sm:$0xff]  ;;  %v9791_v55 = vld [vmem:[#allocation9_spill] sm:$0xff] }
 0x1f2   : > { %v5026_v42 = vsel %vm9786_vm14, %v4990_v12, 0.0  ;;  %v6412_v36 = vadd.f32 %v3850_v20, %v9787_v21  ;;  %v8811_v60 = vmul.u32 18, %v4650_v52  ;;  %4200 = vst.msk [vmem:[%s8757_s24 + $0x18] sm:$0xff] %vm9788_vm13, %v4163_v62  ;;  %v4885_v23 = vsel %vm8682_vm9, %v4163_v62, 0.0  ;;  %v9792_v37 = vld [vmem:[#allocation5_spill] sm:$0xff]  ;;  %v3860_v52 = vpop.f32.mrb[7].mxu0  ;;  %vm9796_vm7 = vmmov %vm9782_vm12 }
 0x1f3   : > { %v5028_v59 = vadd.f32 %v5027_v24, %v5026_v42  ;;  %v4162_v29 = vsel %vm4090_vm4, %v4054_v28, %v4126_v45  ;;  %v4057_v7 = vadd.f32 %v6411_v1, %v8634_v49  ;;  %vm9790_vm0 = vnez %v9789_v33  ;;  %v9797_v28 = vld [vmem:[#allocation13_spill] sm:$0xff]  ;;  %v9799_v15 = vld [vmem:[#allocation11_spill] sm:$0xff]  ;;  %v9800_v24 = vld [vmem:[#allocation6_spill] sm:$0xff] }
 0x1f4   : > { %v9793_v12 = vsel %vm9790_vm0, %v9791_v55, %v9792_v37  ;;  %v4923_v42 = vsel %vm9782_vm12, %v4885_v23, 0.0  ;;  %v4993_v20 = vmul.f32 %v4885_v23, %v4885_v23  ;;  %4199 = vst.msk [vmem:[%s8757_s24 + $0x10] sm:$0xff] %vm9796_vm7, %v4162_v29  ;;  %v4884_v13 = vsel %vm8711_vm3, %v4162_v29, 0.0  ;;  %vm9804_vm14 = vmmov %vm9796_vm7  ;;  %v6365_v55 = vpop.f32.mrb[8].mxu0 }
 0x1f5   : > { %vm8823_vm10 = vcmp.lt.s32.totalorder %v9793_v12, 16  ;;  %v4056_v62 = vadd.f32 %v6412_v36, %v8634_v49  ;;  %vm9798_vm9 = vnez %v9797_v28  ;;  %v4921_v21 = vsel %vm9804_vm14, %v4884_v13, 0.0  ;;  %vm9805_vm0 = vmmov %vm9796_vm7  ;;  %v9807_v28 = vld [vmem:[#allocation47_spill] sm:$0xff]  ;;  %v3870_v46 = vpop.f32.mrb[9].mxu0 }
 0x1f6   : > { %v9801_v45 = vsel %vm9798_vm9, %v9799_v15, %v9800_v24  ;;  %v4992_v23 = vmul.f32 %v4884_v13, %v4884_v13  ;;  %vm4093_vm13 = vcmp.ge.f32.partialorder %v4057_v7, 0.0  ;;  %v4129_v33 = vmul.f32 0.01, %v4057_v7  ;;  %vm9806_vm12 = vmmov %vm9805_vm0  ;;  %v9808_v24 = vld [vmem:[#allocation49_spill] sm:$0xff] }
 0x1f7   : > { %vm8838_vm4 = vcmp.lt.s32.totalorder %v9801_v45, 16  ;;  %v5031_v6 = vsel %vm9805_vm0, %v4993_v20, 0.0  ;;  %v4922_v29 = vadd.f32 %v4921_v21, %v4920_v8  ;;  %vm4092_vm3 = vcmp.ge.f32.partialorder %v4056_v62, 0.0  ;;  %vm9809_vm7 = vmmov %vm9805_vm0  ;;  %v9828_v21 = vld [vmem:[#allocation51_spill] sm:$0xff] }
 0x1f8   : > { %v4128_v36 = vmul.f32 0.01, %v4056_v62  ;;  %v5029_v37 = vsel %vm9806_vm12, %v4992_v23, 0.0  ;;  %v4165_v12 = vsel %vm4093_vm13, %v4057_v7, %v4129_v33  ;;  %v6413_v15 = vadd.f32 %v6362_v47, %v9807_v28  ;;  %vm9816_vm14 = vmmov %vm9805_vm0 }
 0x1f9   : > { %v6414_v45 = vadd.f32 %v3860_v52, %v9808_v24  ;;  %v5030_v11 = vadd.f32 %v5029_v37, %v5028_v59  ;;  %4202 = vst.msk [vmem:[%s8757_s24 + $0x28] sm:$0xff] %vm9809_vm7, %v4165_v12  ;;  %v4887_v13 = vsel %vm8775_vm1, %v4165_v12, 0.0  ;;  %v4924_v8 = vadd.f32 %v4923_v42, %v4922_v29  ;;  %vm9817_vm13 = vmmov %vm9805_vm0  ;;  %v9821_v37 = vld [vmem:[#allocation17_spill] sm:$0xff]  ;;  %v9827_v24 = vld [vmem:[#allocation50_spill] sm:$0xff] }
 0x1fa   : > { %v4164_v20 = vsel %vm4092_vm3, %v4056_v62, %v4128_v36  ;;  %v9813_v2 = vsel %vm8101_vm6, %v9811_v57, %v9812_v9  ;;  %v4927_v47 = vsel %vm9816_vm14, %v4887_v13, 0.0  ;;  %v4995_v52 = vmul.f32 %v4887_v13, %v4887_v13  ;;  %vm9818_vm1 = vmmov %vm9805_vm0  ;;  %v9832_v36 = vld [vmem:[#allocation16_spill] sm:$0xff] }
 0x1fb   : > { %vm8856_vm9 = vcmp.lt.s32.totalorder %v9813_v2, 16  ;;  %4201 = vst.msk [vmem:[%s8757_s24 + $0x20] sm:$0xff] %vm9817_vm13, %v4164_v20  ;;  %v4886_v39 = vsel %vm8794_vm8, %v4164_v20, 0.0  ;;  %v4059_v59 = vadd.f32 %v6413_v15, %v8634_v49  ;;  %v5032_v23 = vadd.f32 %v5031_v6, %v5030_v11  ;;  %v6368_v2 = vpop.f32.mrb[10].mxu0  ;;  %vm9819_vm6 = vmmov %vm9805_vm0 }
 0x1fc   : > { %v4925_v42 = vsel %vm9818_vm1, %v4886_v39, 0.0  ;;  %v4994_v62 = vmul.f32 %v4886_v39, %v4886_v39  ;;  %v4058_v57 = vadd.f32 %v6414_v45, %v8634_v49  ;;  %v5035_v9 = vsel %vm9819_vm6, %v4995_v52, 0.0  ;;  %v3880_v15 = vpop.f32.mrb[11].mxu0  ;;  %vm9826_vm3 = vmmov %vm9818_vm1  ;;  %v9829_v39 = vld [vmem:[#allocation29_spill] sm:$0xff] }
 0x1fd   : > { %v4926_v33 = vadd.f32 %v4925_v42, %v4924_v8  ;;  %vm4095_vm0 = vcmp.ge.f32.partialorder %v4059_v59, 0.0  ;;  %v4131_v29 = vmul.f32 0.01, %v4059_v59  ;;  %v9823_v12 = vsel %vm8117_vm2, %v9821_v37, %v9822_v43  ;;  %v9831_v42 = vld [vmem:[#allocation20_spill] sm:$0xff]  ;;  %vm9836_vm14 = vmmov %vm9818_vm1 }
 0x1fe   : > { %vm8874_vm8 = vcmp.lt.s32.totalorder %v9823_v12, 16  ;;  %v5033_v11 = vsel %vm9826_vm3, %v4994_v62, 0.0  ;;  %vm4094_vm12 = vcmp.ge.f32.partialorder %v4058_v57, 0.0  ;;  %v4130_v6 = vmul.f32 0.01, %v4058_v57  ;;  %vm9838_vm13 = vmmov %vm9818_vm1 }
 0x1ff   : > { %v6415_v45 = vadd.f32 %v6365_v55, %v9827_v24  ;;  %v5034_v13 = vadd.f32 %v5033_v11, %v5032_v23  ;;  %v4167_v20 = vsel %vm4095_vm0, %v4059_v59, %v4131_v29  ;;  %v4928_v8 = vadd.f32 %v4927_v47, %v4926_v33  ;;  %v9837_v47 = vld [vmem:[#allocation54_spill] sm:$0xff] }
 0x200   : > { %v6416_v52 = vadd.f32 %v3870_v46, %v9828_v21  ;;  %vm9830_vm7 = vnez %v9829_v39  ;;  %4204 = vst.msk [vmem:[%s8757_s24 + $0x38] sm:$0xff] %vm9836_vm14, %v4167_v20  ;;  %v4889_v62 = vsel %vm8823_vm10, %v4167_v20, 0.0  ;;  %v4166_v55 = vsel %vm4094_vm12, %v4058_v57, %v4130_v6  ;;  %v6371_v46 = vpop.f32.mrb[12].mxu0  ;;  %v9842_v20 = vld [vmem:[#allocation18_spill] sm:$0xff]  ;;  %vm9856_vm14 = vmmov %vm9818_vm1 }
 0x201   : > { %v9833_v37 = vsel %vm9830_vm7, %v9831_v42, %v9832_v36  ;;  %v4061_v59 = vadd.f32 %v6415_v45, %v8634_v49  ;;  %v6417_v23 = vadd.f32 %v6368_v2, %v9837_v47  ;;  %v4997_v33 = vmul.f32 %v4889_v62, %v4889_v62  ;;  %4203 = vst.msk [vmem:[%s8757_s24 + $0x30] sm:$0xff] %vm9838_vm13, %v4166_v55  ;;  %v3890_v11 = vpop.f32.mrb[13].mxu0  ;;  %v9839_v2 = vld [vmem:[#allocation32_spill] sm:$0xff]  ;;  %v9841_v45 = vld [vmem:[#allocation22_spill] sm:$0xff]  ;;  %v9850_v36 = vld [vmem:[#allocation19_spill] sm:$0xff] }
 0x202   : > { %vm8886_vm2 = vcmp.lt.s32.totalorder %v9833_v37, 16  ;;  %v4888_v29 = vsel %vm8838_vm4, %v4166_v55, 0.0  ;;  %v5036_v12 = vadd.f32 %v5035_v9, %v5034_v13  ;;  %v8902_v24 = vsub.s32 %v8563_v19, %v8811_v60  ;;  %vm9846_vm4 = vmmov %vm9818_vm1  ;;  %v9847_v39 = vld [vmem:[#allocation34_spill] sm:$0xff]  ;;  %v9849_v42 = vld [vmem:[#allocation24_spill] sm:$0xff] }
 0x203   : > { %v4929_v35 = vsel %vm9818_vm1, %v4888_v29, 0.0  ;;  %v4996_v57 = vmul.f32 %v4888_v29, %v4888_v29  ;;  %vm4097_vm10 = vcmp.ge.f32.partialorder %v4061_v59, 0.0  ;;  %v4133_v6 = vmul.f32 0.01, %v4061_v59  ;;  %vm9854_vm7 = vmmov %vm9818_vm1 }
 0x204   : > { %vm9840_vm6 = vnez %v9839_v2  ;;  %v4931_v9 = vsel %vm9846_vm4, %v4889_v62, 0.0  ;;  %v4930_v13 = vadd.f32 %v4929_v35, %v4928_v8  ;;  %v4060_v19 = vadd.f32 %v6416_v52, %v8634_v49  ;;  %v9855_v2 = vld [vmem:[#allocation55_spill] sm:$0xff]  ;;  %v6374_v62 = vpop.f32.mrb[14].mxu0 }
 0x205   : > { %v9843_v21 = vsel %vm9840_vm6, %v9841_v45, %v9842_v20  ;;  %v4063_v60 = vadd.f32 %v6417_v23, %v8634_v49  ;;  %vm9848_vm3 = vnez %v9847_v39  ;;  %v5037_v47 = vsel %vm9854_vm7, %v4996_v57, 0.0  ;;  %v3900_v20 = vpop.f32.mrb[15].mxu0 }
 0x206   : > { %vm8910_vm0 = vcmp.lt.s32.totalorder %v9843_v21, 16  ;;  %v9851_v37 = vsel %vm9848_vm3, %v9849_v42, %v9850_v36  ;;  %v4169_v29 = vsel %vm4097_vm10, %v4061_v59, %v4133_v6  ;;  %v6418_v45 = vadd.f32 %v3880_v15, %v9855_v2  ;;  %vm9857_vm10 = vmmov %vm9818_vm1  ;;  %v9861_v42 = vld [vmem:[#allocation21_spill] sm:$0xff] }
 0x207   : > { %vm8922_vm12 = vcmp.lt.s32.totalorder %v9851_v37, 16  ;;  %v6419_v8 = vadd.f32 %v6371_v46, %v8474_v44  ;;  %v5038_v52 = vadd.f32 %v5037_v47, %v5036_v12  ;;  %4206 = vst.msk [vmem:[%s8757_s24 + $0x48] sm:$0xff] %vm9856_vm14, %v4169_v29  ;;  %v4891_v23 = vsel %vm8856_vm9, %v4169_v29, 0.0  ;;  %v6377_v37 = vpop.f32.mrb[16].mxu0  ;;  %vm9865_vm3 = vmmov %vm9818_vm1 }
 0x208   : > { %vm4096_vm13 = vcmp.ge.f32.partialorder %v4060_v19, 0.0  ;;  %v4132_v35 = vmul.f32 0.01, %v4060_v19  ;;  %v5039_v21 = vsel %vm9818_vm1, %v4997_v33, 0.0  ;;  %v4932_v39 = vadd.f32 %v4931_v9, %v4930_v13  ;;  %v9858_v9 = vld [vmem:[#allocation36_spill] sm:$0xff]  ;;  %v9860_v13 = vld [vmem:[#allocation30_spill] sm:$0xff] }
 0x209   : > { %vm4099_vm6 = vcmp.ge.f32.partialorder %v4063_v60, 0.0  ;;  %v8935_v59 = vadd.s32 18, %v8902_v24  ;;  %v5040_v44 = vadd.f32 %v5039_v21, %v5038_v52  ;;  %v4135_v46 = vmul.f32 0.01, %v4063_v60  ;;  %v3910_v28 = vpop.f32.mrb[17].mxu0  ;;  %v9869_v52 = vld [vmem:[#allocation33_spill] sm:$0xff] }
 0x20a   : > { %v4168_v15 = vsel %vm4096_vm13, %v4060_v19, %v4132_v35  ;;  %v4062_v12 = vadd.f32 %v6418_v45, %v8634_v49  ;;  %v4999_v57 = vmul.f32 %v4891_v23, %v4891_v23  ;;  %v4065_v6 = vadd.f32 %v6419_v8, %v8634_v49  ;;  %v9867_v8 = vld [vmem:[#allocation37_spill] sm:$0xff]  ;;  %v9870_v35 = vld [vmem:[#allocation23_spill] sm:$0xff] }
 0x20b   : > { %4205 = vst.msk [vmem:[%s8757_s24 + $0x40] sm:$0xff] %vm9857_vm10, %v4168_v15  ;;  %v4890_v7 = vsel %vm8874_vm8, %v4168_v15, 0.0  ;;  %v6420_v33 = vadd.f32 %v3890_v11, %v8489_v61  ;;  %vm9859_vm9 = vnez %v9858_v9  ;;  %v4171_v2 = vsel %vm4099_vm6, %v4063_v60, %v4135_v46  ;;  %vm9866_vm8 = vmmov %vm9818_vm1 }
 0x20c   : > { %v9862_v19 = vsel %vm9859_vm9, %v9860_v13, %v9861_v42  ;;  %v4933_v47 = vsel %vm9865_vm3, %v4890_v7, 0.0  ;;  %v4998_v29 = vmul.f32 %v4890_v7, %v4890_v7  ;;  %vm4098_vm7 = vcmp.ge.f32.partialorder %v4062_v12, 0.0  ;;  %4208 = vst.msk [vmem:[%s8757_s24 + $0x58] sm:$0xff] %vm9866_vm8, %v4171_v2  ;;  %vm9874_vm6 = vmmov %vm9865_vm3 }
 0x20d   : > { %vm8949_vm4 = vcmp.lt.s32.totalorder %v9862_v19, 16  ;;  %v4934_v45 = vadd.f32 %v4933_v47, %v4932_v39  ;;  %v4893_v61 = vsel %vm8886_vm2, %v4171_v2, 0.0  ;;  %v4134_v11 = vmul.f32 0.01, %v4062_v12  ;;  %vm9875_vm10 = vmmov %vm9865_vm3  ;;  %v8970_v19 = vpop.f32.mrb[18].mxu1  ;;  %v8972_v47 = vpop.f32.mrb[18].mxu0 }
 0x20e   : > { %vm4101_vm14 = vcmp.ge.f32.partialorder %v4065_v6, 0.0  ;;  %vm9868_vm13 = vnez %v9867_v8  ;;  %v4935_v60 = vsel %vm9874_vm6, %v4891_v23, 0.0  ;;  %v5041_v39 = vsel %vm9875_vm10, %v4998_v29, 0.0  ;;  %vm9876_vm2 = vmmov %vm9865_vm3 }
 0x20f   : > { %v9871_v21 = vsel %vm9868_vm13, %v9869_v52, %v9870_v35  ;;  %v5001_v46 = vmul.f32 %v4893_v61, %v4893_v61  ;;  %v4137_v7 = vmul.f32 0.01, %v4065_v6  ;;  %v5042_v43 = vadd.f32 %v5041_v39, %v5040_v44  ;;  %vm9877_vm9 = vmmov %vm9876_vm2  ;;  %v9878_v44 = vld [vmem:[#allocation39_spill] sm:$0xff]  ;;  %v8989_v52 = vpop.f32.mrb[19].mxu1 }
 0x210   : > { %vm8963_vm1 = vcmp.lt.s32.totalorder %v9871_v21, 16  ;;  %v4170_v9 = vsel %vm4098_vm7, %v4062_v12, %v4134_v11  ;;  %v4936_v13 = vadd.f32 %v4935_v60, %v4934_v45  ;;  %v4064_v42 = vadd.f32 %v6420_v33, %v8634_v49  ;;  %v9880_v12 = vld [vmem:[#allocation35_spill] sm:$0xff]  ;;  %v9881_v45 = vld [vmem:[#allocation25_spill] sm:$0xff]  ;;  %vm9885_vm8 = vmmov %vm9876_vm2 }
 0x211   : > { %v5043_v2 = vsel %vm9876_vm2, %v4999_v57, 0.0  ;;  %4207 = vst.msk [vmem:[%s8757_s24 + $0x50] sm:$0xff] %vm9877_vm9, %v4170_v9  ;;  %v4892_v23 = vsel %vm8910_vm0, %v4170_v9, 0.0  ;;  %v4173_v29 = vsel %vm4101_vm14, %v4065_v6, %v4137_v7  ;;  %v6421_v8 = vadd.f32 %v6374_v62, %v8530_v50  ;;  %v8991_v57 = vpop.f32.mrb[19].mxu0  ;;  %vm9886_vm0 = vmmov %vm9876_vm2  ;;  %v9887_v62 = vld [vmem:[#allocation41_spill] sm:$0xff]  ;;  %v9889_v6 = vld [vmem:[#allocation38_spill] sm:$0xff] }
 0x212   : > { %vm9879_vm3 = vnez %v9878_v44  ;;  %v4937_v35 = vsel %vm9885_vm8, %v4892_v23, 0.0  ;;  %v5000_v1 = vmul.f32 %v4892_v23, %v4892_v23  ;;  %v5044_v21 = vadd.f32 %v5043_v2, %v5042_v43  ;;  %4210 = vst.msk [vmem:[%s8757_s24 + $0x68] sm:$0xff] %vm9886_vm0, %v4173_v29  ;;  %v9890_v60 = vld [vmem:[#allocation28_spill] sm:$0xff]  ;;  %vm9894_vm6 = vmmov %vm9886_vm0 }
 0x213   : > { %v9882_v11 = vsel %vm9879_vm3, %v9880_v12, %v9881_v45  ;;  %v4895_v50 = vsel %vm8922_vm12, %v4173_v29, 0.0  ;;  %vm9888_vm14 = vnez %v9887_v62  ;;  %v4939_v9 = vsel %vm9894_vm6, %v4893_v61, 0.0  ;;  %vm9895_vm10 = vmmov %vm9886_vm0  ;;  %v9012_v12 = vpop.f32.mrb[20].mxu1  ;;  %v9014_v45 = vpop.f32.mrb[20].mxu0 }
 0x214   : > { %vm8985_vm7 = vcmp.lt.s32.totalorder %v9882_v11, 16  ;;  %v9891_v39 = vsel %vm9888_vm14, %v9889_v6, %v9890_v60  ;;  %v5047_v44 = vsel %vm9895_vm10, %v5001_v46, 0.0  ;;  %v4938_v23 = vadd.f32 %v4937_v35, %v4936_v13  ;;  %vm9896_vm9 = vmmov %vm9886_vm0  ;;  %v9017_v46 = vpop.f32.mrb[21].mxu1  ;;  %v9019_v13 = vpop.f32.mrb[21].mxu0  ;;  %v9900_v60 = vld [vmem:[#allocation40_spill] sm:$0xff] }
 0x215   : > { %vm9003_vm13 = vcmp.lt.s32.totalorder %v9891_v39, 16  ;;  %vm4100_vm2 = vcmp.ge.f32.partialorder %v4064_v42, 0.0  ;;  %v5045_v43 = vsel %vm9896_vm9, %v5000_v1, 0.0  ;;  %v4136_v55 = vmul.f32 0.01, %v4064_v42  ;;  %vm9897_vm3 = vmmov %vm9886_vm0  ;;  %v9901_v39 = vld [vmem:[#allocation31_spill] sm:$0xff] }
 0x216   : > { %v4067_v2 = vadd.f32 %v6421_v8, %v8634_v49  ;;  %v6422_v29 = vadd.f32 %v3900_v20, %v8540_v16  ;;  %v5046_v11 = vadd.f32 %v5045_v43, %v5044_v21  ;;  %v5003_v62 = vmul.f32 %v4895_v50, %v4895_v50  ;;  %vm9905_vm14 = vmmov %vm9897_vm3  ;;  %v9038_v36 = vpop.f32.mrb[22].mxu1 }
 0x217   : > { %v4940_v6 = vadd.f32 %v4939_v9, %v4938_v23  ;;  %v6423_v61 = vadd.f32 %v6377_v37, %v8565_v5  ;;  %v4172_v35 = vsel %vm4100_vm2, %v4064_v42, %v4136_v55  ;;  %v6424_v5 = vadd.f32 %v3910_v28, %v8579_v3  ;;  %v9898_v37 = vld [vmem:[#allocation42_spill] sm:$0xff] }
 0x218   : > { %vm4103_vm12 = vcmp.ge.f32.partialorder %v4067_v2, 0.0  ;;  %v4139_v1 = vmul.f32 0.01, %v4067_v2  ;;  %v4066_v8 = vadd.f32 %v6422_v29, %v8634_v49  ;;  %4209 = vst.msk [vmem:[%s8757_s24 + $0x60] sm:$0xff] %vm9897_vm3, %v4172_v35  ;;  %v4894_v16 = vsel %vm8949_vm4, %v4172_v35, 0.0  ;;  %vm9906_vm4 = vmmov %vm9897_vm3 }
 0x219   : > { %v5048_v20 = vadd.f32 %v5047_v44, %v5046_v11  ;;  %v4069_v21 = vadd.f32 %v6423_v61, %v8634_v49  ;;  %vm9899_vm8 = vnez %v9898_v37  ;;  %v4941_v23 = vsel %vm9905_vm14, %v4894_v16, 0.0  ;;  %v9040_v44 = vpop.f32.mrb[22].mxu0  ;;  %v9055_v61 = vpop.f32.mrb[23].mxu1 }
 0x21a   : > { %v9902_v42 = vsel %vm9899_vm8, %v9900_v60, %v9901_v39  ;;  %v5002_v43 = vmul.f32 %v4894_v16, %v4894_v16  ;;  %v4175_v55 = vsel %vm4103_vm12, %v4067_v2, %v4139_v1  ;;  %vm4102_vm6 = vcmp.ge.f32.partialorder %v4066_v8, 0.0  ;;  %vm9911_vm12 = vmmov %vm9897_vm3 }
 0x21b   : > { %vm9033_vm0 = vcmp.lt.s32.totalorder %v9902_v42, 16  ;;  %v4942_v29 = vadd.f32 %v4941_v23, %v4940_v6  ;;  %4212 = vst.msk [vmem:[%s8757_s24 + $0x78] sm:$0xff] %vm9906_vm4, %v4175_v55  ;;  %v4897_v3 = vsel %vm8963_vm1, %v4175_v55, 0.0  ;;  %v4138_v28 = vmul.f32 0.01, %v4066_v8  ;;  %v9057_v6 = vpop.f32.mrb[23].mxu0  ;;  %vm9912_vm1 = vmmov %vm9897_vm3 }
 0x21c   : > { %vm4105_vm10 = vcmp.ge.f32.partialorder %v4069_v21, 0.0  ;;  %vm9907_vm2 = vnez %v9672_v0  ;;  %v4943_v35 = vsel %vm9911_vm12, %v4895_v50, 0.0  ;;  %v5049_v15 = vsel %vm9897_vm3, %v5002_v43, 0.0  ;;  %vm9913_vm8 = vmmov %vm9912_vm1  ;;  %v9915_v23 = vld [vmem:[#allocation46_spill] sm:$0xff] }
 0x21d   : > { %v9908_v11 = vsel %vm9907_vm2, %v8308_v25, %v8269_v63  ;;  %v5005_v1 = vmul.f32 %v4897_v3, %v4897_v3  ;;  %v4141_v16 = vmul.f32 0.01, %v4069_v21  ;;  %v5050_v37 = vadd.f32 %v5049_v15, %v5048_v20  ;;  %v9916_v20 = vld [vmem:[#allocation43_spill] sm:$0xff]  ;;  %vm9920_vm4 = vmmov %vm9912_vm1 }
 0x21e   : > { %vm9051_vm9 = vcmp.lt.s32.totalorder %v9908_v11, 16  ;;  %v4174_v0 = vsel %vm4102_vm6, %v4066_v8, %v4138_v28  ;;  %v4944_v60 = vadd.f32 %v4943_v35, %v4942_v29  ;;  %v4068_v63 = vadd.f32 %v6424_v5, %v8634_v49  ;;  %v9079_v5 = vpop.f32.mrb[24].mxu1  ;;  %vm9927_vm12 = vmmov %vm9912_vm1 }
 0x21f   : > { %v5051_v25 = vsel %vm9912_vm1, %v5003_v62, 0.0  ;;  %4211 = vst.msk [vmem:[%s8757_s24 + $0x70] sm:$0xff] %vm9913_vm8, %v4174_v0  ;;  %v4896_v39 = vsel %vm8985_vm7, %v4174_v0, 0.0  ;;  %v4177_v42 = vsel %vm4105_vm10, %v4069_v21, %v4141_v16  ;;  %v6425_v50 = vadd.f32 %v8972_v47, %v8970_v19  ;;  %v9081_v62 = vpop.f32.mrb[24].mxu0  ;;  %vm9921_vm7 = vmmov %vm9912_vm1  ;;  %v9923_v19 = vld [vmem:[#allocation48_spill] sm:$0xff]  ;;  %v9097_v28 = vpop.f32.mrb[25].mxu1 }
 0x220   : > { %vm9914_vm14 = vnez %v9676_v41  ;;  %v4945_v33 = vsel %vm9920_vm4, %v4896_v39, 0.0  ;;  %v5004_v55 = vmul.f32 %v4896_v39, %v4896_v39  ;;  %v5052_v21 = vadd.f32 %v5051_v25, %v5050_v37  ;;  %4214 = vst.msk [vmem:[%s8757_s24 + $0x88] sm:$0xff] %vm9921_vm7, %v4177_v42  ;;  %v9099_v11 = vpop.f32.mrb[25].mxu0  ;;  %vm9928_vm3 = vmmov %vm9912_vm1 }
 0x221   : > { %v9917_v43 = vsel %vm9914_vm14, %v9915_v23, %v9916_v20  ;;  %v4899_v41 = vsel %vm9003_vm13, %v4177_v42, 0.0  ;;  %vm9922_vm10 = vnez %v9681_v53  ;;  %v4947_v35 = vsel %vm9927_vm12, %v4897_v3, 0.0  ;;  %vm9929_vm13 = vmmov %vm9928_vm3  ;;  %v9109_v3 = vpop.f32.mrb[26].mxu1 }
 0x222   : > { %vm9075_vm6 = vcmp.lt.s32.totalorder %v9917_v43, 16  ;;  %v9924_v47 = vsel %vm9922_vm10, %v8386_v22, %v9923_v19  ;;  %v5055_v15 = vsel %vm9928_vm3, %v5005_v1, 0.0  ;;  %v4946_v16 = vadd.f32 %v4945_v33, %v4944_v60  ;;  %v9111_v1 = vpop.f32.mrb[26].mxu0  ;;  %vm9930_vm14 = vmmov %vm9928_vm3 }
 0x223   : > { %vm9093_vm2 = vcmp.lt.s32.totalorder %v9924_v47, 16  ;;  %vm4104_vm1 = vcmp.ge.f32.partialorder %v4068_v63, 0.0  ;;  %v5053_v7 = vsel %vm9929_vm13, %v5004_v55, 0.0  ;;  %v4140_v53 = vmul.f32 0.01, %v4068_v63  ;;  %v9116_v43 = vpop.f32.mrb[27].mxu0  ;;  %vm9936_vm10 = vmmov %vm9928_vm3 }
 0x224   : > { %v4071_v22 = vadd.f32 %v6425_v50, %v8634_v49  ;;  %v6426_v37 = vadd.f32 %v8991_v57, %v8989_v52  ;;  %v5054_v0 = vadd.f32 %v5053_v7, %v5052_v21  ;;  %v5007_v25 = vmul.f32 %v4899_v41, %v4899_v41  ;;  %v9114_v50 = vpop.f32.mrb[27].mxu1  ;;  %vm9937_vm12 = vmmov %vm9928_vm3 }
 0x225   : > { %v4948_v39 = vadd.f32 %v4947_v35, %v4946_v16  ;;  %v6427_v42 = vadd.f32 %v9014_v45, %v9012_v12  ;;  %v4176_v60 = vsel %vm4104_vm1, %v4068_v63, %v4140_v53  ;;  %v6428_v45 = vadd.f32 %v9019_v13, %v9017_v46  ;;  %v9931_v63 = vld [vmem:[#allocation57_spill] sm:$0xff]  ;;  %v9148_v35 = vpop.f32.mrb[28].mxu1 }
 0x226   : > { %vm4107_vm8 = vcmp.ge.f32.partialorder %v4071_v22, 0.0  ;;  %v4143_v23 = vmul.f32 0.01, %v4071_v22  ;;  %v4070_v20 = vadd.f32 %v6426_v37, %v8634_v49  ;;  %4213 = vst.msk [vmem:[%s8757_s24 + $0x80] sm:$0xff] %vm9930_vm14, %v4176_v60  ;;  %v4898_v52 = vsel %vm9033_vm0, %v4176_v60, 0.0 }
 0x227   : > { %v5056_v57 = vadd.f32 %v5055_v15, %v5054_v0  ;;  %v4073_v12 = vadd.f32 %v6427_v42, %v8634_v49  ;;  %vm9932_vm4 = vnez %v9931_v63  ;;  %v4949_v21 = vsel %vm9936_vm10, %v4898_v52, 0.0  ;;  %v9150_v15 = vpop.f32.mrb[28].mxu0 }
 0x228   : > { %v9933_v33 = vsel %vm9932_vm4, %v8410_v32, %v8361_v4  ;;  %v5006_v19 = vmul.f32 %v4898_v52, %v4898_v52  ;;  %v4179_v9 = vsel %vm4107_vm8, %v4071_v22, %v4143_v23  ;;  %vm4106_vm0 = vcmp.ge.f32.partialorder %v4070_v20, 0.0  ;;  %vm9942_vm8 = vmmov %vm9936_vm10  ;;  %v9154_v22 = vpop.f32.mrb[29].mxu1  ;;  %v9947_v23 = vld [vmem:[#allocation56_spill] sm:$0xff] }
 0x229   : > { %vm9130_vm7 = vcmp.lt.s32.totalorder %v9933_v33, 16  ;;  %v4950_v47 = vadd.f32 %v4949_v21, %v4948_v39  ;;  %4216 = vst.msk [vmem:[%s8757_s24 + $0x98] sm:$0xff] %vm9937_vm12, %v4179_v9  ;;  %v4901_v46 = vsel %vm9051_vm9, %v4179_v9, 0.0  ;;  %v4142_v13 = vmul.f32 0.01, %v4070_v20  ;;  %vm9943_vm14 = vmmov %vm9942_vm8  ;;  %v9948_v52 = vld [vmem:[#allocation52_spill] sm:$0xff] }
 0x22a   : > { %vm4109_vm3 = vcmp.ge.f32.partialorder %v4073_v12, 0.0  ;;  %vm9938_vm1 = vnez %v9691_v48  ;;  %v4951_v16 = vsel %vm9942_vm8, %v4899_v41, 0.0  ;;  %v5057_v2 = vsel %vm9943_vm14, %v5006_v19, 0.0  ;;  %v9156_v48 = vpop.f32.mrb[29].mxu0  ;;  %vm9944_vm9 = vmmov %vm9942_vm8  ;;  %v9191_v21 = vpop.f32.mrb[30].mxu1 }
 0x22b   : > { %v9939_v4 = vsel %vm9938_vm1, %v8426_v58, %v8368_v34  ;;  %v5009_v7 = vmul.f32 %v4901_v46, %v4901_v46  ;;  %v4145_v53 = vmul.f32 0.01, %v4073_v12  ;;  %v5058_v34 = vadd.f32 %v5057_v2, %v5056_v57  ;;  %vm9945_vm4 = vmmov %vm9942_vm8  ;;  %v9193_v19 = vpop.f32.mrb[30].mxu0  ;;  %v9197_v29 = vpop.f32.mrb[31].mxu1 }
 0x22c   : > { %vm9144_vm13 = vcmp.lt.s32.totalorder %v9939_v4, 16  ;;  %v4178_v58 = vsel %vm4106_vm0, %v4070_v20, %v4142_v13  ;;  %v4952_v37 = vadd.f32 %v4951_v16, %v4950_v47  ;;  %v4072_v0 = vadd.f32 %v6428_v45, %v8634_v49  ;;  %vm9952_vm12 = vmmov %vm9945_vm4  ;;  %v9199_v4 = vpop.f32.mrb[31].mxu0 }
 0x22d   : > { %v5059_v39 = vsel %vm9944_vm9, %v5007_v25, 0.0  ;;  %4215 = vst.msk [vmem:[%s8757_s24 + $0x90] sm:$0xff] %vm9945_vm4, %v4178_v58  ;;  %v4900_v41 = vsel %vm9075_vm6, %v4178_v58, 0.0  ;;  %v4181_v42 = vsel %vm4109_vm3, %v4073_v12, %v4145_v53  ;;  %v6429_v60 = vadd.f32 %v9040_v44, %v9038_v36  ;;  %vm9953_vm1 = vmmov %vm9945_vm4  ;;  %v9954_v12 = vld [vmem:[#allocation59_spill] sm:$0xff]  ;;  %v9956_v36 = vld [vmem:[#allocation58_spill] sm:$0xff] }
 0x22e   : > { %vm9946_vm10 = vnez %v9696_v14  ;;  %v4953_v25 = vsel %vm9952_vm12, %v4900_v41, 0.0  ;;  %v5008_v45 = vmul.f32 %v4900_v41, %v4900_v41  ;;  %v5060_v63 = vadd.f32 %v5059_v39, %v5058_v34  ;;  %4218 = vst.msk [vmem:[%s8757_s24 + $0xa8] sm:$0xff] %vm9953_vm1, %v4181_v42  ;;  %v9957_v14 = vld [vmem:[#allocation53_spill] sm:$0xff]  ;;  %vm9961_vm8 = vmmov %vm9953_vm1 }
 0x22f   : > { %v9949_v20 = vsel %vm9946_vm10, %v9947_v23, %v9948_v52  ;;  %v4903_v8 = vsel %vm9093_vm2, %v4181_v42, 0.0  ;;  %vm9955_vm6 = vnez %v9954_v12  ;;  %v4955_v9 = vsel %vm9961_vm8, %v4901_v46, 0.0  ;;  %vm9962_vm14 = vmmov %vm9953_vm1  ;;  %v9208_v23 = vpop.f32.mrb[32].mxu1  ;;  %v9210_v52 = vpop.f32.mrb[32].mxu0 }
 0x230   : > { %vm9173_vm0 = vcmp.lt.s32.totalorder %v9949_v20, 16  ;;  %v9958_v44 = vsel %vm9955_vm6, %v9956_v36, %v9957_v14  ;;  %v5063_v47 = vsel %vm9962_vm14, %v5009_v7, 0.0  ;;  %v4954_v13 = vadd.f32 %v4953_v25, %v4952_v37  ;;  %vm9963_vm2 = vmmov %vm9953_vm1  ;;  %v9228_v20 = vpop.f32.mrb[33].mxu1  ;;  %v9230_v25 = vpop.f32.mrb[33].mxu0 }
 0x231   : > { %vm9187_vm3 = vcmp.lt.s32.totalorder %v9958_v44, 16  ;;  %vm4108_vm9 = vcmp.ge.f32.partialorder %v4072_v0, 0.0  ;;  %v5061_v16 = vsel %vm9963_vm2, %v5008_v45, 0.0  ;;  %v4144_v2 = vmul.f32 0.01, %v4072_v0  ;;  %vm9964_vm10 = vmmov %vm9953_vm1  ;;  %v9248_v32 = vpop.f32.mrb[34].mxu1 }
 0x232   : > { %v4075_v53 = vadd.f32 %v6429_v60, %v8634_v49  ;;  %v6430_v34 = vadd.f32 %v9057_v6, %v9055_v61  ;;  %v5062_v58 = vadd.f32 %v5061_v16, %v5060_v63  ;;  %v5011_v39 = vmul.f32 %v4903_v8, %v4903_v8  ;;  %vm9969_vm6 = vmmov %vm9963_vm2 }
 0x233   : > { %v4956_v46 = vadd.f32 %v4955_v9, %v4954_v13  ;;  %v6431_v7 = vadd.f32 %v9081_v62, %v9079_v5  ;;  %v4180_v37 = vsel %vm4108_vm9, %v4072_v0, %v4144_v2  ;;  %v6432_v5 = vadd.f32 %v9099_v11, %v9097_v28  ;;  %vm9974_vm9 = vmmov %vm9963_vm2  ;;  %v9250_v9 = vpop.f32.mrb[34].mxu0  ;;  %v10007_v28 = vld [vmem:[#allocation75_spill] sm:$0xff] }
 0x234   : > { %vm4111_vm4 = vcmp.ge.f32.partialorder %v4075_v53, 0.0  ;;  %v4147_v41 = vmul.f32 0.01, %v4075_v53  ;;  %v4074_v42 = vadd.f32 %v6430_v34, %v8634_v49  ;;  %4217 = vst.msk [vmem:[%s8757_s24 + $0xa0] sm:$0xff] %vm9964_vm10, %v4180_v37  ;;  %v4902_v61 = vsel %vm9130_vm7, %v4180_v37, 0.0  ;;  %vm9968_vm7 = vmmov %vm9953_vm1  ;;  %v9255_v16 = vpop.f32.mrb[35].mxu0 }
 0x235   : > { %v5064_v6 = vadd.f32 %v5063_v47, %v5062_v58  ;;  %v4077_v60 = vadd.f32 %v6431_v7, %v8634_v49  ;;  %v9965_v62 = vsel %vm8569_vm11, %v8544_v30, %v8471_v27  ;;  %v4957_v55 = vsel %vm9968_vm7, %v4902_v61, 0.0  ;;  %vm9980_vm7 = vmmov %vm9963_vm2 }
 0x236   : > { %vm9224_vm12 = vcmp.lt.s32.totalorder %v9965_v62, 16  ;;  %v5010_v45 = vmul.f32 %v4902_v61, %v4902_v61  ;;  %v4183_v63 = vsel %vm4111_vm4, %v4075_v53, %v4147_v41  ;;  %vm4110_vm1 = vcmp.ge.f32.partialorder %v4074_v42, 0.0  ;;  %vm9976_vm4 = vmmov %vm9963_vm2 }
 0x237   : > { %v4958_v12 = vadd.f32 %v4957_v55, %v4956_v46  ;;  %4220 = vst.msk [vmem:[%s8757_s24 + $0xb8] sm:$0xff] %vm9969_vm6, %v4183_v63  ;;  %v4905_v40 = vsel %vm9144_vm13, %v4183_v63, 0.0  ;;  %v4146_v27 = vmul.f32 0.01, %v4074_v42  ;;  %vm4113_vm11 = vcmp.ge.f32.partialorder %v4077_v60, 0.0  ;;  %vm9975_vm13 = vmmov %vm9963_vm2  ;;  %v9989_v63 = vld [vmem:[#allocation66_spill] sm:$0xff] }
 0x238   : > { %vm9970_vm8 = vnez %v9715_v17  ;;  %v4959_v11 = vsel %vm9974_vm9, %v4903_v8, 0.0  ;;  %v5065_v36 = vsel %vm9963_vm2, %v5010_v45, 0.0  ;;  %v5013_v14 = vmul.f32 %v4905_v40, %v4905_v40 }
 0x239   : > { %v9971_v30 = vsel %vm9970_vm8, %v8552_v31, %v8517_v51  ;;  %v4149_v44 = vmul.f32 0.01, %v4077_v60  ;;  %v5066_v47 = vadd.f32 %v5065_v36, %v5064_v6  ;;  %v4182_v17 = vsel %vm4110_vm1, %v4074_v42, %v4146_v27  ;;  %v9253_v31 = vpop.f32.mrb[35].mxu1  ;;  %vm9981_vm1 = vmmov %vm9963_vm2  ;;  %v9998_v36 = vld [vmem:[#allocation68_spill] sm:$0xff] }
 0x23a   : > { %vm9242_vm14 = vcmp.lt.s32.totalorder %v9971_v30, 16  ;;  %v4960_v13 = vadd.f32 %v4959_v11, %v4958_v12  ;;  %v4076_v51 = vadd.f32 %v6432_v5, %v8634_v49  ;;  %v5067_v8 = vsel %vm9975_vm13, %v5011_v39, 0.0  ;;  %4219 = vst.msk [vmem:[%s8757_s24 + $0xb0] sm:$0xff] %vm9976_vm4, %v4182_v17  ;;  %vm9986_vm6 = vmmov %vm9981_vm1 }
 0x23b   : > { %v4904_v2 = vsel %vm9173_vm0, %v4182_v17, 0.0  ;;  %v4185_v53 = vsel %vm4113_vm11, %v4077_v60, %v4149_v44  ;;  %v6433_v34 = vadd.f32 %v9111_v1, %v9109_v3  ;;  %v9977_v58 = vsel %vm8619_vm15, %v8599_v56, %v8528_v10  ;;  %vm9985_vm15 = vmmov %vm9981_vm1  ;;  %v10001_v44 = vld [vmem:[#allocation61_spill] sm:$0xff] }
 0x23c   : > { %vm9270_vm10 = vcmp.lt.s32.totalorder %v9977_v58, 16  ;;  %v4961_v39 = vsel %vm9980_vm7, %v4904_v2, 0.0  ;;  %v5012_v7 = vmul.f32 %v4904_v2, %v4904_v2  ;;  %v5068_v37 = vadd.f32 %v5067_v8, %v5066_v47  ;;  %4222 = vst.msk [vmem:[%s8757_s24 + $0xc8] sm:$0xff] %vm9981_vm1, %v4185_v53  ;;  %vm9987_vm8 = vmmov %vm9981_vm1 }
 0x23d   : > { %v4907_v57 = vsel %vm9187_vm3, %v4185_v53, 0.0  ;;  %vm9284_vm0 = vcmp.lt.s32.totalorder %v9982_v38, 16  ;;  %v4963_v56 = vsel %vm9985_vm15, %v4905_v40, 0.0  ;;  %v5071_v3 = vsel %vm9986_vm6, %v5013_v14, 0.0  ;;  %vm9988_vm3 = vmmov %vm9981_vm1  ;;  %v10000_v14 = vld [vmem:[#allocation67_spill] sm:$0xff] }
 0x23e   : > { %v4962_v1 = vadd.f32 %v4961_v39, %v4960_v13  ;;  %vm4112_vm11 = vcmp.ge.f32.partialorder %v4076_v51, 0.0  ;;  %v5069_v41 = vsel %vm9987_vm8, %v5012_v7, 0.0  ;;  %v4148_v33 = vmul.f32 0.01, %v4076_v51  ;;  %vm9996_vm13 = vmmov %vm9981_vm1 }
 0x23f   : > { %v4079_v42 = vadd.f32 %v6433_v34, %v8634_v49  ;;  %v6434_v54 = vadd.f32 %v9116_v43, %v9114_v50  ;;  %v5070_v18 = vadd.f32 %v5069_v41, %v5068_v37  ;;  %v5015_v26 = vmul.f32 %v4907_v57, %v4907_v57  ;;  %vm9997_vm4 = vmmov %vm9981_vm1 }
 0x240   : > { %v4964_v61 = vadd.f32 %v4963_v56, %v4962_v1  ;;  %v6435_v6 = vadd.f32 %v9150_v15, %v9148_v35  ;;  %v4184_v60 = vsel %vm4112_vm11, %v4076_v51, %v4148_v33  ;;  %v6436_v43 = vadd.f32 %v9156_v48, %v9154_v22  ;;  %v9991_v35 = vld [vmem:[#allocation65_spill] sm:$0xff]  ;;  %v9992_v15 = vld [vmem:[#allocation60_spill] sm:$0xff]  ;;  %vm10005_vm6 = vmmov %vm9988_vm3 }
 0x241   : > { %vm4115_vm5 = vcmp.ge.f32.partialorder %v4079_v42, 0.0  ;;  %v4151_v5 = vmul.f32 0.01, %v4079_v42  ;;  %v4078_v62 = vadd.f32 %v6434_v54, %v8634_v49  ;;  %4221 = vst.msk [vmem:[%s8757_s24 + $0xc0] sm:$0xff] %vm9988_vm3, %v4184_v60  ;;  %v4906_v55 = vsel %vm9224_vm12, %v4184_v60, 0.0  ;;  %vm10006_vm11 = vmmov %vm9988_vm3  ;;  %v10009_v56 = vld [vmem:[#allocation70_spill] sm:$0xff] }
 0x242   : > { %v5072_v45 = vadd.f32 %v5071_v3, %v5070_v18  ;;  %v4081_v50 = vadd.f32 %v6435_v6, %v8634_v49  ;;  %vm9990_vm9 = vnez %v9989_v63  ;;  %v4965_v27 = vsel %vm9996_vm13, %v4906_v55, 0.0  ;;  %v10011_v3 = vld [vmem:[#allocation69_spill] sm:$0xff]  ;;  %v10012_v1 = vld [vmem:[#allocation62_spill] sm:$0xff]  ;;  %v10022_v6 = vld [vmem:[#allocation71_spill] sm:$0xff] }
 0x243   : > { %v9993_v12 = vsel %vm9990_vm9, %v9991_v35, %v9992_v15  ;;  %v5014_v30 = vmul.f32 %v4906_v55, %v4906_v55  ;;  %v4187_v0 = vsel %vm4115_vm5, %v4079_v42, %v4151_v5  ;;  %vm4114_vm12 = vcmp.ge.f32.partialorder %v4078_v62, 0.0  ;;  %vm10008_vm5 = vmmov %vm9988_vm3  ;;  %v10023_v60 = vld [vmem:[#allocation63_spill] sm:$0xff] }
 0x244   : > { %vm9309_vm2 = vcmp.lt.s32.totalorder %v9993_v12, 16  ;;  %v4966_v11 = vadd.f32 %v4965_v27, %v4964_v61  ;;  %4224 = vst.msk [vmem:[%s8757_s24 + $0xd8] sm:$0xff] %vm9997_vm4, %v4187_v0  ;;  %v4909_v22 = vsel %vm9242_vm14, %v4187_v0, 0.0  ;;  %v4150_v48 = vmul.f32 0.01, %v4078_v62  ;;  %vm10017_vm4 = vmmov %vm9988_vm3  ;;  %v10020_v61 = vld [vmem:[#allocation72_spill] sm:$0xff] }
 0x245   : > { %vm4117_vm7 = vcmp.ge.f32.partialorder %v4081_v50, 0.0  ;;  %vm9999_vm1 = vnez %v9998_v36  ;;  %v4967_v13 = vsel %vm10005_vm6, %v4907_v57, 0.0  ;;  %v5073_v51 = vsel %vm10006_vm11, %v5014_v30, 0.0 }
 0x246   : > { %v10002_v47 = vsel %vm9999_vm1, %v10000_v14, %v10001_v44  ;;  %v5017_v8 = vmul.f32 %v4909_v22, %v4909_v22  ;;  %v4153_v2 = vmul.f32 0.01, %v4081_v50  ;;  %vm4701_vm14 = vcmp.ne.s32.totalorder %v10007_v28, 0  ;;  %vm10018_vm1 = vmmov %vm9988_vm3 }
 0x247   : > { %vm9323_vm15 = vcmp.lt.s32.totalorder %v10002_v47, 16  ;;  %vm4737_vm8 = vcmp.lt.s32.totalorder %v10007_v28, 0  ;;  %v5074_v53 = vadd.f32 %v5073_v51, %v5072_v45  ;;  %v4186_v34 = vsel %vm4114_vm12, %v4078_v62, %v4150_v48  ;;  %vm10016_vm12 = vmmov %vm9988_vm3 }
 0x248   : > { %v4968_v58 = vadd.f32 %v4967_v13, %v4966_v11  ;;  %v4080_v39 = vadd.f32 %v6436_v43, %v8634_v49  ;;  %v5075_v7 = vsel %vm10008_vm5, %v5015_v26, 0.0  ;;  %4223 = vst.msk [vmem:[%s8757_s24 + $0xd0] sm:$0xff] %vm9988_vm3, %v4186_v34  ;;  %v4908_v37 = vsel %vm9270_vm10, %v4186_v34, 0.0  ;;  %vm10019_vm6 = vmmov %vm10018_vm1 }
 0x249   : > { %v4189_v57 = vsel %vm4117_vm7, %v4081_v50, %v4153_v2  ;;  %v6437_v38 = vadd.f32 %v9193_v19, %v9191_v21  ;;  %vm10010_vm9 = vnez %v10009_v56  ;;  %v4969_v42 = vsel %vm10016_vm12, %v4908_v37, 0.0 }
 0x24a   : > { %v10013_v41 = vsel %vm10010_vm9, %v10011_v3, %v10012_v1  ;;  %v5016_v54 = vmul.f32 %v4908_v37, %v4908_v37  ;;  %v5076_v18 = vadd.f32 %v5075_v7, %v5074_v53  ;;  %4226 = vst.msk [vmem:[%s8757_s24 + $0xe8] sm:$0xff] %vm10017_vm4, %v4189_v57  ;;  %v4911_v46 = vsel %vm9284_vm0, %v4189_v57, 0.0  ;;  %vm10027_vm0 = vmmov %vm10018_vm1 }
 0x24b   : > { %vm9344_vm13 = vcmp.lt.s32.totalorder %v10013_v41, 16  ;;  %vm4700_vm10 = vcmp.ne.s32.totalorder %v8902_v24, 0  ;;  %vm4736_vm7 = vcmp.lt.s32.totalorder %v8902_v24, 0  ;;  %v4971_v21 = vsel %vm10018_vm1, %v4909_v22, 0.0  ;;  %vm10028_vm12 = vmmov %vm10027_vm0  ;;  %v10029_v22 = vld [vmem:[#allocation74_spill] sm:$0xff]  ;;  %v10045_v41 = vld [vmem:[#allocation4_spill] sm:$0xff] }
 0x24c   : > { %v5079_v19 = vsel %vm10019_vm6, %v5017_v8, 0.0  ;;  %v4970_v26 = vadd.f32 %v4969_v42, %v4968_v58  ;;  %vm4116_vm11 = vcmp.ge.f32.partialorder %v4080_v39, 0.0  ;;  %vm10021_vm5 = vnez %v10020_v61  ;;  %vm10036_vm6 = vmmov %vm10027_vm0 }
 0x24d   : > { %v10024_v5 = vsel %vm10021_vm5, %v10022_v6, %v10023_v60  ;;  %v5077_v10 = vsel %vm10027_vm0, %v5016_v54, 0.0  ;;  %v4152_v55 = vmul.f32 0.01, %v4080_v39  ;;  %v4083_v45 = vadd.f32 %v6437_v38, %v8634_v49 }
 0x24e   : > { %vm9362_vm3 = vcmp.lt.s32.totalorder %v10024_v5, 16  ;;  %v6438_v50 = vadd.f32 %v9199_v4, %v9197_v29  ;;  %v5078_v43 = vadd.f32 %v5077_v10, %v5076_v18  ;;  %v5019_v63 = vmul.f32 %v4911_v46, %v4911_v46 }
 0x24f   : > { %v4972_v35 = vadd.f32 %v4971_v21, %v4970_v26  ;;  %v6439_v15 = vadd.f32 %v9210_v52, %v9208_v23  ;;  %v4188_v12 = vsel %vm4116_vm11, %v4080_v39, %v4152_v55  ;;  %vm4119_vm9 = vcmp.ge.f32.partialorder %v4083_v45, 0.0  ;;  %v10031_v23 = vld [vmem:[#allocation73_spill] sm:$0xff]  ;;  %v10032_v52 = vld [vmem:[#allocation64_spill] sm:$0xff]  ;;  %vm10037_vm11 = vmmov %vm10027_vm0 }
 0x250   : > { %v4155_v27 = vmul.f32 0.01, %v4083_v45  ;;  %v4082_v30 = vadd.f32 %v6438_v50, %v8634_v49  ;;  %4225 = vst.msk [vmem:[%s8757_s24 + $0xe0] sm:$0xff] %vm10028_vm12, %v4188_v12  ;;  %v4910_v0 = vsel %vm9309_vm2, %v4188_v12, 0.0  ;;  %v5080_v11 = vadd.f32 %v5079_v19, %v5078_v43  ;;  %vm10038_vm12 = vmmov %vm10027_vm0 }
 0x251   : > { %v4085_v29 = vadd.f32 %v6439_v15, %v8634_v49  ;;  %v6440_v4 = vadd.f32 %v9230_v25, %v9228_v20  ;;  %vm10030_vm4 = vnez %v10029_v22  ;;  %v4973_v14 = vsel %vm10036_vm6, %v4910_v0, 0.0  ;;  %vm10043_vm6 = vmmov %vm10027_vm0 }
 0x252   : > { %v10033_v48 = vsel %vm10030_vm4, %v10031_v23, %v10032_v52  ;;  %v5018_v44 = vmul.f32 %v4910_v0, %v4910_v0  ;;  %v4191_v40 = vsel %vm4119_vm9, %v4083_v45, %v4155_v27  ;;  %vm4118_vm2 = vcmp.ge.f32.partialorder %v4082_v30, 0.0  ;;  %vm10039_vm4 = vmmov %vm10027_vm0 }
 0x253   : > { %vm9385_vm1 = vcmp.lt.s32.totalorder %v10033_v48, 16  ;;  %v4974_v47 = vadd.f32 %v4973_v14, %v4972_v35  ;;  %4228 = vst.msk [vmem:[%s8757_s24 + $0xf8] sm:$0xff] %vm10037_vm11, %v4191_v40  ;;  %v4913_v20 = vsel %vm9323_vm15, %v4191_v40, 0.0  ;;  %v4154_v25 = vmul.f32 0.01, %v4082_v30  ;;  %vm9401_vm9 = vmand %vm4737_vm8, %vm4701_vm14 }
 0x254   : > { %vm4121_vm5 = vcmp.ge.f32.partialorder %v4085_v29, 0.0  ;;  %v4975_v13 = vsel %vm10027_vm0, %v4911_v46, 0.0  ;;  %v5083_v51 = vsel %vm10038_vm12, %v5019_v63, 0.0  ;;  %v5081_v8 = vsel %vm10039_vm4, %v5018_v44, 0.0  ;;  %vm10042_vm15 = vmmov %vm10027_vm0 }
 0x255   : > { %v4157_v2 = vmul.f32 0.01, %v4085_v29  ;;  %v5082_v17 = vadd.f32 %v5081_v8, %v5080_v11  ;;  %v4190_v34 = vsel %vm4118_vm2, %v4082_v30, %v4154_v25  ;;  %v4976_v58 = vadd.f32 %v4975_v13, %v4974_v47  ;;  %vm10044_vm14 = vmmov %vm10027_vm0 }
 0x256   : > { %v4084_v39 = vadd.f32 %v6440_v4, %v8634_v49  ;;  %v5021_v7 = vmul.f32 %v4913_v20, %v4913_v20  ;;  %4227 = vst.msk [vmem:[%s8757_s24 + $0xf0] sm:$0xff] %vm10042_vm15, %v4190_v34  ;;  %v4912_v37 = vsel %vm9344_vm13, %v4190_v34, 0.0  ;;  %v6441_v38 = vadd.f32 %v9250_v9, %v9248_v32  ;;  %vm9423_vm8 = vmand %vm4736_vm7, %vm4700_vm10 }
 0x257   : > { %v4193_v57 = vsel %vm4121_vm5, %v4085_v29, %v4157_v2  ;;  %v4977_v56 = vsel %vm10043_vm6, %v4912_v37, 0.0  ;;  %v5020_v3 = vmul.f32 %v4912_v37, %v4912_v37  ;;  %v5084_v1 = vadd.f32 %v5083_v51, %v5082_v17  ;;  %vm10048_vm13 = vmmov %vm10027_vm0 }
 0x258   : > { %4230 = vst.msk [vmem:[%s8757_s24 + $0x108] sm:$0xff] %vm10044_vm14, %v4193_v57  ;;  %v4845_v49 = vsel %vm9401_vm9, %v10045_v41, %v10007_v28  ;;  %v4979_v32 = vsel %vm10048_vm13, %v4913_v20, 0.0  ;;  %v4978_v9 = vadd.f32 %v4977_v56, %v4976_v58  ;;  %v4915_v42 = vsel %vm9362_vm3, %v4193_v57, 0.0  ;;  %vm10049_vm11 = vmmov %vm10027_vm0  ;;  %v6777_v28 = vld [vmem:[%s9471_s2] ss:$0 sm:$0xff] }
 0x259   : > { %vm4120_vm2 = vcmp.ge.f32.partialorder %v4084_v39, 0.0  ;;  %v5085_v54 = vsel %vm10049_vm11, %v5020_v3, 0.0  ;;  %v4156_v18 = vmul.f32 0.01, %v4084_v39  ;;  %v4087_v46 = vadd.f32 %v6777_v28, %v6441_v38  ;;  %vm10050_vm10 = vmmov %vm10027_vm0 }
 0x25a   : > { %v6442_v21 = vadd.f32 %v9255_v16, %v9253_v31  ;;  %v5087_v19 = vsel %vm10050_vm10, %v5021_v7, 0.0  ;;  %v5086_v26 = vadd.f32 %v5085_v54, %v5084_v1  ;;  %v4980_v61 = vadd.f32 %v4979_v32, %v4978_v9  ;;  %vm10051_vm3 = vmmov %vm10027_vm0 }
 0x25b   : > { %v4844_v6 = vsel %vm9423_vm8, %v8935_v59, %v8902_v24  ;;  %v4192_v60 = vsel %vm4120_vm2, %v4084_v39, %v4156_v18  ;;  %vm4123_vm7 = vcmp.ge.f32.partialorder %v4087_v46, 0.0  ;;  %v4159_v5 = vmul.f32 0.01, %v4087_v46  ;;  %vm10052_vm4 = vmmov %vm10027_vm0 }
 0x25c   : > { %v4086_v62 = vadd.f32 %v6777_v28, %v6442_v21  ;;  %v5023_v10 = vmul.f32 %v4915_v42, %v4915_v42  ;;  %4229 = vst.msk [vmem:[%s8757_s24 + $0x100] sm:$0xff] %vm10051_vm3, %v4192_v60  ;;  %v4914_v31 = vsel %vm9385_vm1, %v4192_v60, 0.0  ;;  %v5088_v16 = vadd.f32 %v5087_v19, %v5086_v26  ;;  %vm10053_vm15 = vmmov %vm10027_vm0 }
 0x25d   : > { %vm4881_vm5 = vcmp.lt.s32.totalorder %v4845_v49, 16  ;;  %v4981_v55 = vsel %vm10027_vm0, %v4914_v31, 0.0  ;;  %v5022_v45 = vmul.f32 %v4914_v31, %v4914_v31  ;;  %v4195_v50 = vsel %vm4123_vm7, %v4087_v46, %v4159_v5  ;;  %vm10054_vm6 = vmmov %vm10027_vm0 }
 0x25e   : > { %vm4122_vm12 = vcmp.ge.f32.partialorder %v4086_v62, 0.0  ;;  %v4982_v24 = vadd.f32 %v4981_v55, %v4980_v61  ;;  %4232 = vst.msk [vmem:[%s8757_s24 + $0x118] sm:$0xff] %vm10052_vm4, %v4195_v50  ;;  %v4158_v59 = vmul.f32 0.01, %v4086_v62  ;;  %vm4880_vm9 = vcmp.lt.s32.totalorder %v4844_v6, 16  ;;  %vm10055_vm1 = vmmov %vm10027_vm0 }
 0x25f   : > { %v4983_v43 = vsel %vm10053_vm15, %v4915_v42, 0.0  ;;  %v5089_v63 = vsel %vm10054_vm6, %v5022_v45, 0.0  ;;  %v4917_v35 = vsel %vm4881_vm5, %v4195_v50, 0.0  ;;  %v5091_v30 = vsel %vm10055_vm1, %v5023_v10, 0.0  ;;  %vm10056_vm14 = vmmov %vm10027_vm0 }
 0x260   : > { %v5090_v15 = vadd.f32 %v5089_v63, %v5088_v16  ;;  %v4194_v12 = vsel %vm4122_vm12, %v4086_v62, %v4158_v59  ;;  %v4984_v27 = vadd.f32 %v4983_v43, %v4982_v24  ;;  %v5025_v11 = vmul.f32 %v4917_v35, %v4917_v35  ;;  %vm10057_vm8 = vmmov %vm10027_vm0 }
 0x261   : > { %4231 = vst.msk [vmem:[%s8757_s24 + $0x110] sm:$0xff] %vm10056_vm14, %v4194_v12  ;;  %v4916_v0 = vsel %vm4880_vm9, %v4194_v12, 0.0  ;;  %vm10058_vm13 = vmmov %vm10027_vm0 }
 0x262   : > { %v4985_v29 = vsel %vm10057_vm8, %v4916_v0, 0.0  ;;  %v5024_v4 = vmul.f32 %v4916_v0, %v4916_v0  ;;  %v5092_v22 = vadd.f32 %v5091_v30, %v5090_v15  ;;  %v4987_v52 = vsel %vm10058_vm13, %v4917_v35, 0.0  ;;  %vm10059_vm2 = vmmov %vm10027_vm0 }
 0x263   : > { %v4986_v23 = vadd.f32 %v4985_v29, %v4984_v27  ;;  %vm10060_vm11 = vmmov %vm10027_vm0 }
 0x264   : > { %v5093_v48 = vsel %vm10059_vm2, %v5024_v4, 0.0  ;;  %v5095_v44 = vsel %vm10060_vm11, %v5025_v11, 0.0  ;;  %vm10061_vm10 = vmmov %vm10027_vm0 }
 0x265   : > { %v4988_v36 = vadd.f32 %v4987_v52, %v4986_v23  ;;  %v5094_v14 = vadd.f32 %v5093_v48, %v5092_v22  ;;  %vm10062_vm7 = vmmov %vm10027_vm0 }
 0x267   : > { %4989 = vst.msk [vmem:[%s241_s30] sm:$0xff] %vm10061_vm10, %v4988_v36  ;;  %v5096_v40 = vadd.f32 %v5095_v44, %v5094_v14 }
 0x269   : > { %5097 = vst.msk [vmem:[%s245_s7] sm:$0xff] %vm10062_vm7, %v5096_v40 }
 0x26a PF: > { %s16_s18 = sadd.s32 1, %s6784_s18  }
 0x26b   : > { %p13_p4 = scmp.ge.s32.totalorder %s16_s18, 4  }
 0x26d   :  { %15 = sbr.rel (!%p13_p4) target bundleno = 1 (0x1), region = 94 }

// kernel: _convolution_block.3
= control target key start
LH: loop header
LB: loop body
LE: loop exit
PB: predicated region body
PF: predicated region fallthrough
CT: control target
= control target key end

     0   :  { %s2980_s18 = smov 0   ;;  %s4102_s0 = inlined_call_operand.vmem [shape: f32[2,171,16], index: 0, kind: input, shape index: {}]   ;;  %s4103_s1 = inlined_call_operand.vmem [shape: f32[6,16,8], index: 1, kind: input, shape index: {}]   ;;  %s4104_s2 = inlined_call_operand.vmem [shape: f32[1,8], index: 2, kind: input, shape index: {}]   ;;  %s4105_s3 = inlined_call_operand.vmem [shape: f32[2,144,8], index: 3, kind: output, shape index: {0}]   ;;  %s4106_s4 = inlined_call_operand.vmem [shape: f32[16,8], index: 4, kind: output, shape index: {1}]   ;;  %s4107_s5 = inlined_call_operand.vmem [shape: f32[16,8], index: 5, kind: output, shape index: {2}]  }
   0x1 LB: > { %s2346_s19 = sadd.s32 4294967295, %s2948_s18   ;;  %p2350_p0 = scmp.ge.s32.totalorder %s2948_s18, 1  ;;  %s2948_s18 = sphi %s2980_s18, %s16_s18  }
   0x2   : > { %p192_p1 = scmp.lt.s32.totalorder %s2948_s18, 3 }
   0x4   : > { %p193_p2 = pnand %p2350_p0, %p192_p1 }
   0x5   : > { %v2355_v0 = vld [vmem:[%s4103_s1 + $0x10] sm:$0xff] (!%p193_p2)  ;;  %v2356_v1 = vld [vmem:[%s4103_s1 + $0x18] sm:$0xff] (!%p193_p2)  ;;  %p228_p3 = scmp.lt.s32.totalorder (!%p193_p2), %s2346_s19, 1  ;;  %v264_v5 = vld [vmem:[%s4103_s1] sm:$0xff] (!%p193_p2)  ;;  %vm287_vm0 = vcmask (!%p193_p2), 130048  }
   0x6   : > { %196 = sbr.rel (%p193_p2) target bundleno = 370 (0x172), region = 32  ;;  %v2413_v2 = vld [vmem:[%s4103_s1 + $0x30] sm:$0xff] (!%p193_p2)  ;;  %v2782_v3 = vpack.c.bf16 (!%p193_p2), %v2356_v1, %v2355_v0  ;;  %v2414_v4 = vld [vmem:[%s4103_s1 + $0x38] sm:$0xff] (!%p193_p2)  ;;  %v265_v6 = vld [vmem:[%s4103_s1 + $0x8] sm:$0xff] (!%p193_p2) }
   0x7   : > { %v2794_v7 = vpack.c.bf16 (!%p193_p2), %v2414_v4, %v2413_v2  ;;  %v2786_v8 = vpack.c.bf16 (!%p193_p2), %v265_v6, %v264_v5  ;;  %v2433_v9 = vld [vmem:[%s4103_s1 + $0x40] sm:$0xff] (!%p193_p2)  ;;  %v2434_v10 = vld [vmem:[%s4103_s1 + $0x48] sm:$0xff] (!%p193_p2)  ;;  %v2453_v14 = vld [vmem:[%s4103_s1 + $0x50] sm:$0xff] (!%p193_p2) }
   0x8   : > { %2783 = vmatprep.subr.bf16.mxu1 (!%p193_p2), %v2782_v3  ;;  %v2798_v11 = vpack.c.bf16 (!%p193_p2), %v2434_v10, %v2433_v9  ;;  %v2393_v12 = vld [vmem:[%s4103_s1 + $0x20] sm:$0xff] (!%p193_p2)  ;;  %v2394_v13 = vld [vmem:[%s4103_s1 + $0x28] sm:$0xff] (!%p193_p2)  ;;  %v2454_v15 = vld [vmem:[%s4103_s1 + $0x58] sm:$0xff] (!%p193_p2) }
   0x9   : > { %2795 = vmatprep.subr.bf16.mxu0 (!%p193_p2), %v2794_v7  ;;  %2785 = vmatpush3.bf16.msra.mxu1 (!%p193_p2), %v2782_v3  ;;  %v3048_v22 = vpack.c.bf16 (!%p193_p2), %v2394_v13, %v2393_v12  ;;  %v3050_v23 = vpack.c.bf16 (!%p193_p2), %v2454_v15, %v2453_v14 }
   0xa   : > { %2797 = vmatpush3.bf16.msra.mxu0 (!%p193_p2), %v2794_v7  ;;  %2787 = vmatprep.subr.bf16.mxu1 (!%p193_p2), %v2786_v8 }
   0xb   : > { %2799 = vmatprep.subr.bf16.mxu0 (!%p193_p2), %v2798_v11 }
   0xd   : > { %s4260_s19 = smov (!%p228_p3, %s2346_s19), 1 }
   0xe   : > { %s2896_s11 = smul.u32 176, %s4260_s19  ;;  %s2353_s6 = sshll.u32 %s4260_s19, 3 }
   0xf   : > { %s2897_s27 = smul.u32 144, %s4260_s19  ;;  %s241_s9 = scalar_lea.vmem %s4106_s4, %s2353_s6 }
  0x10   : > { %s3030_s24 = scalar_lea.vmem %s4102_s0, %s2896_s11  ;;  %s245_s11 = scalar_lea.vmem %s4107_s5, %s2353_s6 }
  0x11   : > { %v266_v16 = vld [vmem:[%s3030_s24 + $0x1] sm:$0xff]  ;;  %v954_v17 = vld [vmem:[%s3030_s24 + $0xa] sm:$0xff]  ;;  %v3040_v19 = vld [vmem:[%s3030_s24 + $0x12] sm:$0xff]  ;;  %s3797_s30 = scalar_lea.vmem %s4105_s3, %s2897_s27 }
  0x12   : > { %v3035_v18 = vld [vmem:[%s3030_s24 + $0x9] sm:$0xff]  ;;  %2600 = vmatprep.mubr.msk.f32.mxu1 %vm287_vm0, %v266_v16  ;;  %2693 = vmatprep.mubr.msk.f32.mxu0 %vm287_vm0, %v954_v17  ;;  %v3043_v20 = vld [vmem:[%s3030_s24 + $0x11] sm:$0xff]  ;;  %v3046_v21 = vld [vmem:[%s3030_s24 + $0x1a] sm:$0xff] }
  0x13   : > { %2601 = vmatmul.mubr.msk.f32.vlgmr.msra.gmra.mrb[0].mxu1 %vm287_vm0, %v3035_v18  ;;  %2694 = vmatmul.mubr.msk.f32.vlgmr.msra.gmra.mrb[0].mxu0 %vm287_vm0, %v3040_v19  ;;  %v3057_v24 = vld [vmem:[%s3030_s24 + $0x19] sm:$0xff]  ;;  %v3060_v25 = vld [vmem:[%s3030_s24 + $0x22] sm:$0xff]  ;;  %v3070_v27 = vld [vmem:[%s3030_s24 + $0x2a] sm:$0xff] }
  0x14   : > { %2789 = vmatpush3.bf16.msra.mxu1 %v2786_v8  ;;  %2801 = vmatpush3.bf16.msra.mxu0 %v2798_v11  ;;  %v3067_v26 = vld [vmem:[%s3030_s24 + $0x21] sm:$0xff]  ;;  %v3083_v28 = vld [vmem:[%s3030_s24 + $0x29] sm:$0xff]  ;;  %v3086_v29 = vld [vmem:[%s3030_s24 + $0x32] sm:$0xff] }
  0x15   : > { %2603 = vmatprep.mubr.msk.f32.mxu1 %vm287_vm0, %v3043_v20  ;;  %2696 = vmatprep.mubr.msk.f32.mxu0 %vm287_vm0, %v3046_v21  ;;  %v3089_v30 = vld [vmem:[%s3030_s24 + $0x31] sm:$0xff]  ;;  %v3092_v31 = vld [vmem:[%s3030_s24 + $0x3a] sm:$0xff]  ;;  %v3106_v33 = vld [vmem:[%s3030_s24 + $0x42] sm:$0xff] }
  0x16   : > { %2791 = vmatprep.subr.bf16.mxu1 %v3048_v22  ;;  %2803 = vmatprep.subr.bf16.mxu0 %v3050_v23  ;;  %v3103_v32 = vld [vmem:[%s3030_s24 + $0x39] sm:$0xff]  ;;  %v3109_v34 = vld [vmem:[%s3030_s24 + $0x41] sm:$0xff]  ;;  %v3112_v35 = vld [vmem:[%s3030_s24 + $0x4a] sm:$0xff] }
  0x17   : > { %2604 = vmatmul.mubr.msk.f32.gmra.mrb[2].mxu1 %vm287_vm0, %v3057_v24  ;;  %2697 = vmatmul.mubr.msk.f32.gmra.mrb[2].mxu0 %vm287_vm0, %v3060_v25  ;;  %v3123_v36 = vld [vmem:[%s3030_s24 + $0x49] sm:$0xff]  ;;  %v3126_v37 = vld [vmem:[%s3030_s24 + $0x52] sm:$0xff]  ;;  %v3132_v39 = vld [vmem:[%s3030_s24 + $0x5a] sm:$0xff] }
  0x18   : > { %2606 = vmatprep.mubr.msk.f32.mxu1 %vm287_vm0, %v3067_v26  ;;  %2699 = vmatprep.mubr.msk.f32.mxu0 %vm287_vm0, %v3070_v27  ;;  %v3129_v38 = vld [vmem:[%s3030_s24 + $0x51] sm:$0xff]  ;;  %v3143_v40 = vld [vmem:[%s3030_s24 + $0x59] sm:$0xff]  ;;  %v965_v41 = vld [vmem:[%s3030_s24 + $0x62] sm:$0xff] }
  0x19   : > { %v3147_v42 = vld [vmem:[%s3030_s24 + $0x61] sm:$0xff]  ;;  %v3150_v43 = vld [vmem:[%s3030_s24 + $0x6a] sm:$0xff]  ;;  %v967_v45 = vld [vmem:[%s3030_s24 + $0x72] sm:$0xff] }
  0x1a   : > { %v3160_v44 = vld [vmem:[%s3030_s24 + $0x69] sm:$0xff]  ;;  %v3164_v46 = vld [vmem:[%s3030_s24 + $0x71] sm:$0xff]  ;;  %v968_v47 = vld [vmem:[%s3030_s24 + $0x7a] sm:$0xff] }
  0x1b   : > { %2607 = vmatmul.mubr.msk.f32.gmra.mrb[4].mxu1 %vm287_vm0, %v3083_v28  ;;  %2700 = vmatmul.mubr.msk.f32.gmra.mrb[4].mxu0 %vm287_vm0, %v3086_v29  ;;  %v3174_v48 = vld [vmem:[%s3030_s24 + $0x79] sm:$0xff]  ;;  %v969_v49 = vld [vmem:[%s3030_s24 + $0x82] sm:$0xff]  ;;  %v970_v51 = vld [vmem:[%s3030_s24 + $0x8a] sm:$0xff] }
  0x1c   : > { %2609 = vmatprep.mubr.msk.f32.mxu1 %vm287_vm0, %v3089_v30  ;;  %2702 = vmatprep.mubr.msk.f32.mxu0 %vm287_vm0, %v3092_v31  ;;  %v3178_v50 = vld [vmem:[%s3030_s24 + $0x81] sm:$0xff]  ;;  %v3188_v52 = vld [vmem:[%s3030_s24 + $0x89] sm:$0xff]  ;;  %v971_v53 = vld [vmem:[%s3030_s24 + $0x92] sm:$0xff] }
  0x1d   : > { %v246_v54 = vld [vmem:[%s3030_s24] sm:$0xff]  ;;  %v247_v55 = vld [vmem:[%s3030_s24 + $0x8] sm:$0xff]  ;;  %v248_v56 = vld [vmem:[%s3030_s24 + $0x10] sm:$0xff] }
  0x1e   : > { %v249_v57 = vld [vmem:[%s3030_s24 + $0x18] sm:$0xff]  ;;  %v250_v58 = vld [vmem:[%s3030_s24 + $0x20] sm:$0xff]  ;;  %v251_v59 = vld [vmem:[%s3030_s24 + $0x28] sm:$0xff] }
  0x1f   : > { %2610 = vmatmul.mubr.msk.f32.gmra.mrb[6].mxu1 %vm287_vm0, %v3103_v32  ;;  %2703 = vmatmul.mubr.msk.f32.gmra.mrb[6].mxu0 %vm287_vm0, %v3106_v33  ;;  %v252_v60 = vld [vmem:[%s3030_s24 + $0x30] sm:$0xff]  ;;  %v253_v61 = vld [vmem:[%s3030_s24 + $0x38] sm:$0xff]  ;;  %v254_v62 = vld [vmem:[%s3030_s24 + $0x40] sm:$0xff] }
  0x20   : > { %2612 = vmatprep.mubr.msk.f32.mxu1 %vm287_vm0, %v3109_v34  ;;  %2705 = vmatprep.mubr.msk.f32.mxu0 %vm287_vm0, %v3112_v35  ;;  %v255_v63 = vld [vmem:[%s3030_s24 + $0x48] sm:$0xff]  ;;  %v256_v0 = vld [vmem:[%s3030_s24 + $0x50] sm:$0xff]  ;;  %v257_v1 = vld [vmem:[%s3030_s24 + $0x58] sm:$0xff] }
  0x21   : > { %v258_v2 = vld [vmem:[%s3030_s24 + $0x60] sm:$0xff]  ;;  %v259_v3 = vld [vmem:[%s3030_s24 + $0x68] sm:$0xff]  ;;  %v260_v4 = vld [vmem:[%s3030_s24 + $0x70] sm:$0xff] }
  0x22   : > { %v261_v5 = vld [vmem:[%s3030_s24 + $0x78] sm:$0xff]  ;;  %v262_v6 = vld [vmem:[%s3030_s24 + $0x80] sm:$0xff]  ;;  %v263_v7 = vld [vmem:[%s3030_s24 + $0x88] sm:$0xff] }
  0x23   : > { %2613 = vmatmul.mubr.msk.f32.gmra.mrb[8].mxu1 %vm287_vm0, %v3123_v36  ;;  %2706 = vmatmul.mubr.msk.f32.gmra.mrb[8].mxu0 %vm287_vm0, %v3126_v37  ;;  %v1219_v8 = vld [vmem:[%s3030_s24 + $0x9a] sm:$0xff]  ;;  %v1452_v11 = vld [vmem:[%s3030_s24 + $0x23] sm:$0xff]  ;;  %v1453_v12 = vld [vmem:[%s3030_s24 + $0x2b] sm:$0xff] }
  0x24   : > { %2615 = vmatprep.mubr.msk.f32.mxu1 %vm287_vm0, %v3129_v38  ;;  %2708 = vmatprep.mubr.msk.f32.mxu0 %vm287_vm0, %v3132_v39  ;;  %v1450_v9 = vld [vmem:[%s3030_s24 + $0x13] sm:$0xff]  ;;  %v1451_v10 = vld [vmem:[%s3030_s24 + $0x1b] sm:$0xff]  ;;  %v1456_v15 = vld [vmem:[%s3030_s24 + $0x43] sm:$0xff] }
  0x25   : > { %v1454_v13 = vld [vmem:[%s3030_s24 + $0x33] sm:$0xff]  ;;  %v1455_v14 = vld [vmem:[%s3030_s24 + $0x3b] sm:$0xff]  ;;  %v1457_v16 = vld [vmem:[%s3030_s24 + $0x4b] sm:$0xff] }
  0x26   : > { %v1458_v17 = vld [vmem:[%s3030_s24 + $0x53] sm:$0xff] }
  0x27   : > { %2616 = vmatmul.mubr.msk.f32.gmra.mrb[10].mxu1 %vm287_vm0, %v3143_v40  ;;  %2709 = vmatmul.mubr.msk.f32.gmra.mrb[10].mxu0 %vm287_vm0, %v965_v41 }
  0x28   : > { %2618 = vmatprep.mubr.msk.f32.mxu1 %vm287_vm0, %v3147_v42  ;;  %2711 = vmatprep.mubr.msk.f32.mxu0 %vm287_vm0, %v3150_v43 }
  0x2b   : > { %2619 = vmatmul.mubr.msk.f32.gmra.mrb[12].mxu1 %vm287_vm0, %v3160_v44  ;;  %2712 = vmatmul.mubr.msk.f32.gmra.mrb[12].mxu0 %vm287_vm0, %v967_v45 }
  0x2c   : > { %2621 = vmatprep.mubr.msk.f32.mxu1 %vm287_vm0, %v3164_v46  ;;  %2714 = vmatprep.mubr.msk.f32.mxu0 %vm287_vm0, %v968_v47 }
  0x2f   : > { %2622 = vmatmul.mubr.msk.f32.gmra.mrb[14].mxu1 %vm287_vm0, %v3174_v48  ;;  %2715 = vmatmul.mubr.msk.f32.gmra.mrb[14].mxu0 %vm287_vm0, %v969_v49 }
  0x30   : > { %2624 = vmatprep.mubr.msk.f32.mxu1 %vm287_vm0, %v3178_v50  ;;  %2717 = vmatprep.mubr.msk.f32.mxu0 %vm287_vm0, %v970_v51 }
  0x33   : > { %2625 = vmatmul.mubr.msk.f32.gmra.mrb[16].mxu1 %vm287_vm0, %v3188_v52  ;;  %2718 = vmatmul.mubr.msk.f32.gmra.mrb[16].mxu0 %vm287_vm0, %v971_v53 }
  0x34   : > { %2631 = vmatprep.mubr.msk.f32.mxu1 %vm287_vm0, %v246_v54  ;;  %2724 = vmatprep.mubr.msk.f32.mxu0 %vm287_vm0, %v3040_v19  ;;  %v1460_v19 = vld [vmem:[%s3030_s24 + $0x63] sm:$0xff] }
  0x37   : > { %2632 = vmatmul.mubr.msk.f32.vlgmr.msra.gmra.mrb[0].mxu1 %vm287_vm0, %v247_v55  ;;  %2725 = vmatmul.mubr.msk.f32.vlgmr.msra.gmra.mrb[0].mxu0 %vm287_vm0, %v3046_v21  ;;  %v1462_v21 = vld [vmem:[%s3030_s24 + $0x73] sm:$0xff] }
  0x38   : > { %2793 = vmatpush3.bf16.msra.mxu1 %v3048_v22  ;;  %2805 = vmatpush3.bf16.msra.mxu0 %v3050_v23  ;;  %v1463_v22 = vld [vmem:[%s3030_s24 + $0x7b] sm:$0xff]  ;;  %v1464_v23 = vld [vmem:[%s3030_s24 + $0x83] sm:$0xff] }
  0x39   : > { %2634 = vmatprep.mubr.msk.f32.mxu1 %vm287_vm0, %v248_v56  ;;  %2727 = vmatprep.mubr.msk.f32.mxu0 %vm287_vm0, %v3060_v25  ;;  %v1466_v25 = vld [vmem:[%s3030_s24 + $0x93] sm:$0xff] }
  0x3b   : > { %2635 = vmatmul.mubr.msk.f32.gmra.mrb[2].mxu1 %vm287_vm0, %v249_v57  ;;  %2728 = vmatmul.mubr.msk.f32.gmra.mrb[2].mxu0 %vm287_vm0, %v3070_v27  ;;  %v1467_v27 = vld [vmem:[%s3030_s24 + $0x9b] sm:$0xff] }
  0x3c   : > { %2637 = vmatprep.mubr.msk.f32.mxu1 %vm287_vm0, %v250_v58  ;;  %2730 = vmatprep.mubr.msk.f32.mxu0 %vm287_vm0, %v3086_v29 }
  0x3f   : > { %2638 = vmatmul.mubr.msk.f32.gmra.mrb[4].mxu1 %vm287_vm0, %v251_v59  ;;  %2731 = vmatmul.mubr.msk.f32.gmra.mrb[4].mxu0 %vm287_vm0, %v3092_v31 }
  0x40   : > { %2640 = vmatprep.mubr.msk.f32.mxu1 %vm287_vm0, %v252_v60  ;;  %2733 = vmatprep.mubr.msk.f32.mxu0 %vm287_vm0, %v3106_v33 }
  0x43   : > { %2641 = vmatmul.mubr.msk.f32.gmra.mrb[6].mxu1 %vm287_vm0, %v253_v61  ;;  %2734 = vmatmul.mubr.msk.f32.gmra.mrb[6].mxu0 %vm287_vm0, %v3112_v35 }
  0x44   : > { %2643 = vmatprep.mubr.msk.f32.mxu1 %vm287_vm0, %v254_v62  ;;  %2736 = vmatprep.mubr.msk.f32.mxu0 %vm287_vm0, %v3126_v37 }
  0x47   : > { %2644 = vmatmul.mubr.msk.f32.gmra.mrb[8].mxu1 %vm287_vm0, %v255_v63  ;;  %2737 = vmatmul.mubr.msk.f32.gmra.mrb[8].mxu0 %vm287_vm0, %v3132_v39 }
  0x48   : > { %2646 = vmatprep.mubr.msk.f32.mxu1 %vm287_vm0, %v256_v0  ;;  %2739 = vmatprep.mubr.msk.f32.mxu0 %vm287_vm0, %v965_v41 }
  0x4b   : > { %2647 = vmatmul.mubr.msk.f32.gmra.mrb[10].mxu1 %vm287_vm0, %v257_v1  ;;  %2740 = vmatmul.mubr.msk.f32.gmra.mrb[10].mxu0 %vm287_vm0, %v3150_v43 }
  0x4c   : > { %2649 = vmatprep.mubr.msk.f32.mxu1 %vm287_vm0, %v258_v2  ;;  %2742 = vmatprep.mubr.msk.f32.mxu0 %vm287_vm0, %v967_v45 }
  0x4f   : > { %2650 = vmatmul.mubr.msk.f32.gmra.mrb[12].mxu1 %vm287_vm0, %v259_v3  ;;  %2743 = vmatmul.mubr.msk.f32.gmra.mrb[12].mxu0 %vm287_vm0, %v968_v47 }
  0x50   : > { %2652 = vmatprep.mubr.msk.f32.mxu1 %vm287_vm0, %v260_v4  ;;  %2745 = vmatprep.mubr.msk.f32.mxu0 %vm287_vm0, %v969_v49 }
  0x53   : > { %2653 = vmatmul.mubr.msk.f32.gmra.mrb[14].mxu1 %vm287_vm0, %v261_v5  ;;  %2746 = vmatmul.mubr.msk.f32.gmra.mrb[14].mxu0 %vm287_vm0, %v970_v51 }
  0x54   : > { %2655 = vmatprep.mubr.msk.f32.mxu1 %vm287_vm0, %v262_v6  ;;  %2748 = vmatprep.mubr.msk.f32.mxu0 %vm287_vm0, %v971_v53 }
  0x57   : > { %2656 = vmatmul.mubr.msk.f32.gmra.mrb[16].mxu1 %vm287_vm0, %v263_v7  ;;  %2749 = vmatmul.mubr.msk.f32.gmra.mrb[16].mxu0 %vm287_vm0, %v1219_v8 }
  0x58   : > { %2662 = vmatprep.mubr.msk.f32.mxu1 %vm287_vm0, %v3035_v18  ;;  %2755 = vmatprep.mubr.msk.f32.mxu0 %vm287_vm0, %v1450_v9  ;;  %v1459_v18 = vld [vmem:[%s3030_s24 + $0x5b] sm:$0xff] }
  0x5b   : > { %2663 = vmatmul.mubr.msk.f32.vlgmr.msra.gmra.mrb[0].mxu1 %vm287_vm0, %v3043_v20  ;;  %2756 = vmatmul.mubr.msk.f32.vlgmr.msra.gmra.mrb[0].mxu0 %vm287_vm0, %v1451_v10  ;;  %v1461_v20 = vld [vmem:[%s3030_s24 + $0x6b] sm:$0xff] }
  0x5c   : > { %2665 = vmatprep.mubr.msk.f32.mxu1 %vm287_vm0, %v3057_v24  ;;  %2758 = vmatprep.mubr.msk.f32.mxu0 %vm287_vm0, %v1452_v11  ;;  %v1465_v24 = vld [vmem:[%s3030_s24 + $0x8b] sm:$0xff] }
  0x5f   : > { %2666 = vmatmul.mubr.msk.f32.gmra.mrb[2].mxu1 %vm287_vm0, %v3067_v26  ;;  %2759 = vmatmul.mubr.msk.f32.gmra.mrb[2].mxu0 %vm287_vm0, %v1453_v12  ;;  %v723_v26 = vld [vmem:[%s3030_s24 + $0x91] sm:$0xff] }
  0x60   : > { %2668 = vmatprep.mubr.msk.f32.mxu1 %vm287_vm0, %v3083_v28  ;;  %2761 = vmatprep.mubr.msk.f32.mxu0 %vm287_vm0, %v1454_v13  ;;  %v1796_v28 = vlaneseq }
  0x62   : > { %v3334_v29 = vshrl.u32 %v1796_v28, 7 }
  0x63   : > { %2669 = vmatmul.mubr.msk.f32.gmra.mrb[4].mxu1 %vm287_vm0, %v3089_v30  ;;  %2762 = vmatmul.mubr.msk.f32.gmra.mrb[4].mxu0 %vm287_vm0, %v1455_v14 }
  0x64   : > { %2671 = vmatprep.mubr.msk.f32.mxu1 %vm287_vm0, %v3103_v32  ;;  %2764 = vmatprep.mubr.msk.f32.mxu0 %vm287_vm0, %v1456_v15  ;;  %v1798_v30 = vadd.s32 8, %v3334_v29  ;;  %v1800_v35 = vadd.s32 24, %v3334_v29  ;;  %v1802_v41 = vadd.s32 40, %v3334_v29  ;;  %v1801_v43 = vadd.s32 32, %v3334_v29 }
  0x65   : > { %v3357_v47 = vadd.s32 56, %v3334_v29  ;;  %v3376_v57 = vadd.s32 48, %v3334_v29  ;;  %v3381_v58 = vadd.s32 72, %v3334_v29  ;;  %v3388_v61 = vadd.s32 64, %v3334_v29 }
  0x66   : > { %v3337_v31 = vmul.u32.u64.low 3817748708, %v1798_v30  ;;  %v3338_v32 = vmul.u32.u64.high 3817748708, %v1798_v30, %v3337_v31  ;;  %v3405_v4 = vadd.s32 88, %v3334_v29  ;;  %v3413_v8 = vadd.s32 80, %v3334_v29 }
  0x67   : > { %2672 = vmatmul.mubr.msk.f32.gmra.mrb[6].mxu1 %vm287_vm0, %v3109_v34  ;;  %2765 = vmatmul.mubr.msk.f32.gmra.mrb[6].mxu0 %vm287_vm0, %v1457_v16  ;;  %v3341_v33 = vmul.u32.u64.low 3817748708, %v3334_v29  ;;  %v3342_v34 = vmul.u32.u64.high 3817748708, %v3334_v29, %v3341_v33  ;;  %v3372_v55 = vmul.u32.u64.low 3817748708, %v3357_v47  ;;  %v3373_v56 = vmul.u32.u64.high 3817748708, %v3357_v47, %v3372_v55 }
  0x68   : > { %2674 = vmatprep.mubr.msk.f32.mxu1 %vm287_vm0, %v3123_v36  ;;  %2767 = vmatprep.mubr.msk.f32.mxu0 %vm287_vm0, %v1458_v17  ;;  %v1832_v36 = vshrl.u32 %v3338_v32, 4  ;;  %v3392_v63 = vmul.u32.u64.low 3817748708, %v3376_v57  ;;  %v3393_v0 = vmul.u32.u64.high 3817748708, %v3376_v57, %v3392_v63  ;;  %v3420_v12 = vadd.s32 104, %v3334_v29 }
  0x69   : > { %v1821_v37 = vshrl.u32 %v3342_v34, 4  ;;  %v3409_v6 = vmul.u32.u64.low 3817748708, %v3381_v58  ;;  %v3410_v7 = vmul.u32.u64.high 3817748708, %v3381_v58, %v3409_v6  ;;  %v1898_v16 = vshrl.u32 %v3373_v56, 4 }
  0x6a   : > { %v3416_v10 = vmul.u32.u64.low 3817748708, %v3388_v61  ;;  %v3417_v11 = vmul.u32.u64.high 3817748708, %v3388_v61, %v3416_v10  ;;  %v3436_v17 = vadd.s32 96, %v3334_v29  ;;  %v1887_v32 = vshrl.u32 %v3393_v0, 4 }
  0x6b   : > { %2675 = vmatmul.mubr.msk.f32.gmra.mrb[8].mxu1 %vm287_vm0, %v3129_v38  ;;  %2768 = vmatmul.mubr.msk.f32.gmra.mrb[8].mxu0 %vm287_vm0, %v1459_v18  ;;  %v1799_v38 = vadd.s32 16, %v3334_v29  ;;  %v1899_v31 = vmul.u32 18, %v1898_v16 }
  0x6c   : > { %2677 = vmatprep.mubr.msk.f32.mxu1 %vm287_vm0, %v3143_v40  ;;  %2770 = vmatprep.mubr.msk.f32.mxu0 %vm287_vm0, %v1460_v19  ;;  %v3348_v39 = vmul.u32.u64.low 3817748708, %v1800_v35  ;;  %v3349_v40 = vmul.u32.u64.high 3817748708, %v1800_v35, %v3348_v39  ;;  %v3464_v33 = vmul.u32.u64.low 3817748708, %v3436_v17  ;;  %v3465_v34 = vmul.u32.u64.high 3817748708, %v3436_v17, %v3464_v33 }
  0x6e   : > { %v1854_v54 = vshrl.u32 %v3349_v40, 4  ;;  %v1953_v0 = vshrl.u32 %v3465_v34, 4 }
  0x6f   : > { %2678 = vmatmul.mubr.msk.f32.gmra.mrb[10].mxu1 %vm287_vm0, %v3147_v42  ;;  %2771 = vmatmul.mubr.msk.f32.gmra.mrb[10].mxu0 %vm287_vm0, %v1461_v20  ;;  %v1833_v42 = vmul.u32 18, %v1832_v36  ;;  %v3439_v19 = vmul.u32.u64.low 3817748708, %v3405_v4  ;;  %v3440_v20 = vmul.u32.u64.high 3817748708, %v3405_v4, %v3439_v19 }
  0x70   : > { %2680 = vmatprep.mubr.msk.f32.mxu1 %vm287_vm0, %v3160_v44  ;;  %2773 = vmatprep.mubr.msk.f32.mxu0 %vm287_vm0, %v1462_v21  ;;  %v1822_v44 = vmul.u32 18, %v1821_v37  ;;  %v1855_v62 = vmul.u32 18, %v1854_v54  ;;  %v3443_v21 = vadd.s32 120, %v3334_v29 }
  0x72   : > { %v3368_v53 = vsub.s32 %v3334_v29, %v1822_v44  ;;  %v3432_v15 = vsub.s32 %v1800_v35, %v1855_v62  ;;  %v3471_v36 = vmul.u32.u64.low 3817748708, %v3443_v21  ;;  %v3472_v37 = vmul.u32.u64.high 3817748708, %v3443_v21, %v3471_v36 }
  0x73   : > { %2681 = vmatmul.mubr.msk.f32.gmra.mrb[12].mxu1 %vm287_vm0, %v3164_v46  ;;  %2774 = vmatmul.mubr.msk.f32.gmra.mrb[12].mxu0 %vm287_vm0, %v1463_v22  ;;  %v3353_v45 = vmul.u32.u64.low 3817748708, %v1799_v38  ;;  %v3354_v46 = vmul.u32.u64.high 3817748708, %v1799_v38, %v3353_v45  ;;  %v1909_v44 = vshrl.u32 %v3417_v11, 4 }
  0x74   : > { %2683 = vmatprep.mubr.msk.f32.mxu1 %vm287_vm0, %v3174_v48  ;;  %2776 = vmatprep.mubr.msk.f32.mxu0 %vm287_vm0, %v1464_v23  ;;  %v3359_v48 = vmul.u32.u64.low 3817748708, %v1802_v41  ;;  %v3360_v49 = vmul.u32.u64.high 3817748708, %v1802_v41, %v3359_v48  ;;  %vm2013_vm3 = vcmp.ne.s32.totalorder %v3368_v53, 0  ;;  %vm2031_vm5 = vcmp.lt.s32.totalorder %v3368_v53, 0 }
  0x75   : > { %v1843_v60 = vshrl.u32 %v3354_v46, 4  ;;  %v3401_v2 = vadd.s32 18, %v3368_v53  ;;  %vm3428_vm6 = vmand %vm2031_vm5, %vm2013_vm3  ;;  %vm2016_vm7 = vcmp.ne.s32.totalorder %v3432_v15, 0  ;;  %vm2034_vm8 = vcmp.lt.s32.totalorder %v3432_v15, 0 }
  0x76   : > { %v1876_v3 = vshrl.u32 %v3360_v49, 4  ;;  %v1888_v46 = vmul.u32 18, %v1887_v32  ;;  %v1942_v48 = vshrl.u32 %v3440_v20, 4  ;;  %v3498_v49 = vadd.s32 136, %v3334_v29  ;;  %vm3510_vm15 = vmand %vm2034_vm8, %vm2016_vm7 }
  0x77   : > { %2684 = vmatmul.mubr.msk.f32.gmra.mrb[14].mxu1 %vm287_vm0, %v3178_v50  ;;  %2777 = vmatmul.mubr.msk.f32.gmra.mrb[14].mxu0 %vm287_vm0, %v1465_v24  ;;  %v3362_v50 = vsub.s32 %v1798_v30, %v1833_v42  ;;  %v1844_v9 = vmul.u32 18, %v1843_v60  ;;  %v3446_v23 = vmul.u32.u64.low 3817748708, %v3413_v8  ;;  %v3447_v24 = vmul.u32.u64.high 3817748708, %v3413_v8, %v3446_v23 }
  0x78   : > { %2686 = vmatprep.mubr.msk.f32.mxu1 %vm287_vm0, %v3188_v52  ;;  %2779 = vmatprep.mubr.msk.f32.mxu0 %vm287_vm0, %v1466_v25  ;;  %v3364_v51 = vmul.u32.u64.low 3817748708, %v1801_v43  ;;  %v3365_v52 = vmul.u32.u64.high 3817748708, %v1801_v43, %v3364_v51  ;;  %v1877_v18 = vmul.u32 18, %v1876_v3  ;;  %v3450_v25 = vadd.s32 112, %v3334_v29 }
  0x79   : > { %vm2014_vm1 = vcmp.ne.s32.totalorder %v3362_v50, 0  ;;  %vm2032_vm2 = vcmp.lt.s32.totalorder %v3362_v50, 0  ;;  %v3384_v59 = vadd.s32 18, %v3362_v50  ;;  %v3482_v42 = vadd.s32 18, %v3432_v15 }
  0x7a   : > { %vm3395_vm4 = vmand %vm2032_vm2, %vm2014_vm1  ;;  %v1865_v5 = vshrl.u32 %v3365_v52, 4  ;;  %v3459_v28 = vmul.u32.u64.low 3817748708, %v3420_v12  ;;  %v3460_v30 = vmul.u32.u64.high 3817748708, %v3420_v12, %v3459_v28  ;;  %v3468_v35 = vsub.s32 %v1802_v41, %v1877_v18 }
  0x7b   : > { %2687 = vmatmul.mubr.msk.f32.gmra.mrb[16].mxu1 %vm287_vm0, %v723_v26  ;;  %2780 = vmatmul.mubr.msk.f32.gmra.mrb[16].mxu0 %vm287_vm0, %v1467_v27  ;;  %v2086_v13 = vsel %vm3395_vm4, %v3384_v59, %v3362_v50  ;;  %v2085_v26 = vsel %vm3428_vm6, %v3401_v2, %v3368_v53  ;;  %v3456_v27 = vsub.s32 %v1799_v38, %v1844_v9  ;;  %v1920_v41 = vshrl.u32 %v3410_v7, 4  ;;  %v3675_v53 = vld [vmem:[%s4104_s2] ss:$0 sm:$0xff] }
  0x7c   : > { %v1866_v22 = vmul.u32 18, %v1865_v5  ;;  %v3478_v39 = vmul.u32.u64.low 3817748708, %v3450_v25  ;;  %v3479_v40 = vmul.u32.u64.high 3817748708, %v3450_v25, %v3478_v39  ;;  %vm2018_vm11 = vcmp.ne.s32.totalorder %v3468_v35, 0 }
  0x7d   : > { %vm2015_vm9 = vcmp.ne.s32.totalorder %v3456_v27, 0  ;;  %vm2033_vm10 = vcmp.lt.s32.totalorder %v3456_v27, 0  ;;  %v3489_v45 = vadd.s32 18, %v3456_v27  ;;  %vm2036_vm12 = vcmp.lt.s32.totalorder %v3468_v35, 0 }
  0x7e   : > { %v3475_v38 = vsub.s32 %v1801_v43, %v1866_v22  ;;  %v3492_v43 = vsub.s32 %v3357_v47, %v1899_v31  ;;  %v3501_v51 = vadd.s32 18, %v3468_v35  ;;  %v1931_v47 = vshrl.u32 %v3447_v24, 4  ;;  %vm3522_vm0 = vmand %vm2033_vm10, %vm2015_vm9 }
  0x7f   : > { %v1921_v55 = vmul.u32 18, %v1920_v41  ;;  %v1910_v56 = vmul.u32 18, %v1909_v44  ;;  %v1964_v60 = vshrl.u32 %v3460_v30, 4  ;;  %v3529_v63 = vsub.s32 %v3376_v57, %v1888_v46  ;;  %vm3536_vm3 = vmand %vm2036_vm12, %vm2018_vm11 }
  0x80   : > { %vm2017_vm13 = vcmp.ne.s32.totalorder %v3475_v38, 0  ;;  %vm2035_vm14 = vcmp.lt.s32.totalorder %v3475_v38, 0  ;;  %v3515_v54 = vadd.s32 18, %v3475_v38  ;;  %vm2020_vm1 = vcmp.ne.s32.totalorder %v3492_v43, 0 }
  0x81   : > { %vm2038_vm2 = vcmp.lt.s32.totalorder %v3492_v43, 0  ;;  %v1943_v5 = vmul.u32 18, %v1942_v48  ;;  %v1986_v6 = vshrl.u32 %v3472_v37, 4  ;;  %v2088_v57 = vsel %vm3510_vm15, %v3482_v42, %v3432_v15  ;;  %vm3553_vm5 = vmand %vm2035_vm14, %vm2017_vm13 }
  0x82   : > { %v3542_v7 = vmul.u32.u64.low 3817748708, %v3498_v49  ;;  %v3543_v9 = vmul.u32.u64.high 3817748708, %v3498_v49, %v3542_v7  ;;  %v3558_v11 = vadd.s32 18, %v3492_v43  ;;  %v1932_v16 = vmul.u32 18, %v1931_v47  ;;  %vm3565_vm7 = vmand %vm2038_vm2, %vm2020_vm1 }
  0x83   : > { %v1975_v18 = vshrl.u32 %v3479_v40, 4  ;;  %v2087_v19 = vsel %vm3522_vm0, %v3489_v45, %v3456_v27  ;;  %v3570_v22 = vsub.s32 %v3381_v58, %v1921_v55  ;;  %v3573_v23 = vsub.s32 %v3388_v61, %v1910_v56 }
  0x84   : > { %v1965_v24 = vmul.u32 18, %v1964_v60  ;;  %vm2019_vm8 = vcmp.ne.s32.totalorder %v3529_v63, 0  ;;  %vm2037_vm9 = vcmp.lt.s32.totalorder %v3529_v63, 0  ;;  %v1954_v28 = vmul.u32 18, %v1953_v0 }
  0x85   : > { %v3578_v30 = vadd.s32 128, %v3334_v29  ;;  %v2090_v31 = vsel %vm3536_vm3, %v3501_v51, %v3468_v35  ;;  %v2089_v58 = vsel %vm3553_vm5, %v3515_v54, %v3475_v38  ;;  %v3589_v61 = vsub.s32 %v3405_v4, %v1943_v5  ;;  %vm3601_vm10 = vmand %vm2037_vm9, %vm2019_vm8 }
  0x86   : > { %v1987_v32 = vmul.u32 18, %v1986_v6  ;;  %v2092_v29 = vsel %vm3565_vm7, %v3558_v11, %v3492_v43  ;;  %v3596_v33 = vadd.s32 18, %v3529_v63  ;;  %v3599_v34 = vsub.s32 %v3413_v8, %v1932_v16 }
  0x87   : > { %v1976_v36 = vmul.u32 18, %v1975_v18  ;;  %vm2022_vm11 = vcmp.ne.s32.totalorder %v3570_v22, 0  ;;  %vm2040_vm12 = vcmp.lt.s32.totalorder %v3570_v22, 0  ;;  %vm2021_vm13 = vcmp.ne.s32.totalorder %v3573_v23, 0 }
  0x88   : > { %v3609_v4 = vsub.s32 %v3420_v12, %v1965_v24  ;;  %vm2039_vm14 = vcmp.lt.s32.totalorder %v3573_v23, 0  ;;  %v3613_v39 = vsub.s32 %v3436_v17, %v1954_v28  ;;  %v3622_v41 = vsub.s32 %v3443_v21, %v1987_v32  ;;  %vm3638_vm2 = vmand %vm2040_vm12, %vm2022_vm11 }
  0x89   : > { %v3616_v8 = vmul.u32.u64.low 3817748708, %v3578_v30  ;;  %v3617_v40 = vmul.u32.u64.high 3817748708, %v3578_v30, %v3616_v8  ;;  %v2008_v44 = vshrl.u32 %v3543_v9, 4  ;;  %vm3630_vm9 = vcmp.lt.s32.totalorder %v2086_v13, 8  ;;  %vm3663_vm11 = vmand %vm2039_vm14, %vm2021_vm13 }
  0x8a   : > { %v2091_v17 = vsel %vm3601_vm10, %v3596_v33, %v3529_v63  ;;  %vm2023_vm8 = vcmp.ne.s32.totalorder %v3599_v34, 0  ;;  %v3645_v1 = vsub.s32 %v3450_v25, %v1976_v36  ;;  %vm3652_vm4 = vcmp.lt.s32.totalorder %v2085_v26, 8 }
  0x8b   : > { %v3657_v59 = vadd.s32 18, %v3570_v22  ;;  %v3668_v14 = vadd.s32 18, %v3573_v23  ;;  %vm4138_vm1 = vcmp.ne.s32.totalorder %v3589_v61, 0  ;;  %vm4139_vm13 = vcmp.lt.s32.totalorder %v3589_v61, 0 }
  0x8c   : > { %vm3681_vm14 = vmand %vm4139_vm13, %vm4138_vm1  ;;  %v3686_v25 = vadd.s32 18, %v3589_v61  ;;  %v3689_v26 = vadd.s32 18, %v3599_v34  ;;  %vm4142_vm10 = vcmp.lt.s32.totalorder %v3599_v34, 0  ;;  %v4143_v47 = vmov 0 }
  0x8d   : > { %vm3697_vm1 = vmand %vm4142_vm10, %vm2023_vm8  ;;  %v3702_v55 = vadd.s32 18, %v3609_v4  ;;  %v2009_v56 = vmul.u32 18, %v2008_v44  ;;  %vm4145_vm6 = vcmp.ne.s32.totalorder %v3609_v4, 0  ;;  %vm4146_vm12 = vcmp.lt.s32.totalorder %v3609_v4, 0 }
  0x8e   : > { %v4144_v47 = vsel %vm3697_vm1, 4294967295, %v4143_v47  ;;  %vm3711_vm10 = vmand %vm4146_vm12, %vm4145_vm6  ;;  %v3716_v7 = vadd.s32 18, %v3613_v39  ;;  %vm3725_vm13 = vcmp.lt.s32.totalorder %v2088_v57, 8  ;;  %v2094_v18 = vsel %vm3638_vm2, %v3657_v59, %v3570_v22 }
  0x8f   : > { %vm4151_vm6 = vcmp.ne.s32.totalorder %v3613_v39, 0  ;;  %vm4152_vm12 = vcmp.lt.s32.totalorder %v3613_v39, 0  ;;  %v4153_v15 = vmov 0  ;;  %v3746_v42 = vadd.s32 18, %v3622_v41 }
  0x90   : > { %vm3741_vm7 = vmand %vm4152_vm12, %vm4151_vm6  ;;  %vm3754_vm15 = vcmp.lt.s32.totalorder %v2087_v19, 8  ;;  %vm4157_vm6 = vcmp.ne.s32.totalorder %v3622_v41, 0  ;;  %vm4158_vm12 = vcmp.lt.s32.totalorder %v3622_v41, 0  ;;  %v4159_v32 = vmov 0 }
  0x91   : > { %v4154_v15 = vsel %vm3741_vm7, 4294967295, %v4153_v15  ;;  %vm3766_vm8 = vmand %vm4158_vm12, %vm4157_vm6  ;;  %v3771_v62 = vadd.s32 18, %v3645_v1  ;;  %v1997_v27 = vshrl.u32 %v3617_v40, 4  ;;  %vm4161_vm0 = vcmp.ne.s32.totalorder %v3645_v1, 0 }
  0x92   : > { %v4160_v32 = vsel %vm3766_vm8, 4294967295, %v4159_v32  ;;  %vm4162_vm6 = vcmp.lt.s32.totalorder %v3645_v1, 0  ;;  %v4163_v40 = vmov 0  ;;  %vm4167_vm8 = vcmask 64512  }
  0x93   : > { %vm3787_vm12 = vmand %vm4162_vm6, %vm4161_vm0  ;;  %vm3813_vm6 = vcmp.lt.s32.totalorder %v2090_v31, 8  ;;  %vm3831_vm3 = vcmp.lt.s32.totalorder %v2089_v58, 8  ;;  %v4192_v51 = vsel %vm3663_vm11, %v3668_v14, %v3573_v23 }
  0x94   : > { %v4164_v40 = vsel %vm3787_vm12, 4294967295, %v4163_v40 }
 0x12e   : > { %v2664_v46 = vpop.f32.mrb[0].mxu1  ;;  %v2757_v48 = vpop.f32.mrb[0].mxu0 }
 0x12f   : > { %v2806_v60 = vadd.f32 %v2757_v48, %v2664_v46  ;;  %v847_v0 = vpop.f32.mrb[1].mxu1  ;;  %v1591_v5 = vpop.f32.mrb[1].mxu0  ;;  %v3792_v46 = vsub.s32 %v3498_v49, %v2009_v56 }
 0x130   : > { %v2807_v9 = vadd.f32 %v1591_v5, %v847_v0 }
 0x131   : > { %v1706_v52 = vadd.f32 %v2806_v60, %v3675_v53  ;;  %v3836_v31 = vadd.s32 18, %v3792_v46 }
 0x132   : > { %v1705_v45 = vadd.f32 %v2807_v9, %v3675_v53  ;;  %v2667_v19 = vpop.f32.mrb[2].mxu1  ;;  %v2760_v36 = vpop.f32.mrb[2].mxu0 }
 0x133   : > { %vm1724_vm1 = vcmp.ge.f32.partialorder %v1706_v52, 0.0  ;;  %v1742_v48 = vmul.f32 0.01, %v1706_v52  ;;  %v2808_v60 = vadd.f32 %v2760_v36, %v2667_v19  ;;  %v857_v0 = vpop.f32.mrb[3].mxu1  ;;  %v1601_v5 = vpop.f32.mrb[3].mxu0 }
 0x134   : > { %vm1723_vm0 = vcmp.ge.f32.partialorder %v1705_v45, 0.0  ;;  %v1741_v44 = vmul.f32 0.01, %v1705_v45  ;;  %v2809_v49 = vadd.f32 %v1601_v5, %v857_v0  ;;  %v1998_v0 = vmul.u32 18, %v1997_v27 }
 0x135   : > { %v1760_v8 = vsel %vm1724_vm1, %v1706_v52, %v1742_v48  ;;  %v1708_v28 = vadd.f32 %v2808_v60, %v3675_v53  ;;  %vm4170_vm1 = vmmov %vm4167_vm8 }
 0x136   : > { %1779 = vst.msk [vmem:[%s3797_s30 + $0x8] sm:$0xff] %vm4167_vm8, %v1760_v8  ;;  %v2122_v52 = vsel %vm3630_vm9, %v1760_v8, 0.0  ;;  %v1759_v48 = vsel %vm1723_vm0, %v1705_v45, %v1741_v44  ;;  %v1707_v3 = vadd.f32 %v2809_v49, %v3675_v53  ;;  %v2670_v60 = vpop.f32.mrb[4].mxu1  ;;  %v2763_v35 = vpop.f32.mrb[4].mxu0  ;;  %vm4171_vm9 = vmmov %vm4170_vm1 }
 0x137   : > { %v2140_v12 = vsel %vm4170_vm1, %v2122_v52, 0.0  ;;  %v2176_v27 = vmul.f32 %v2122_v52, %v2122_v52  ;;  %1778 = vst.msk [vmem:[%s3797_s30] sm:$0xff] %vm4171_vm9, %v1759_v48  ;;  %v2121_v45 = vsel %vm3652_vm4, %v1759_v48, 0.0  ;;  %vm1726_vm8 = vcmp.ge.f32.partialorder %v1708_v28, 0.0  ;;  %v867_v10 = vpop.f32.mrb[5].mxu1  ;;  %v1611_v8 = vpop.f32.mrb[5].mxu0  ;;  %vm4172_vm0 = vmmov %vm4170_vm1 }
 0x138   : > { %v2139_v38 = vsel %vm4172_vm0, %v2121_v45, 0.0  ;;  %v2175_v54 = vmul.f32 %v2121_v45, %v2121_v45  ;;  %v1744_v58 = vmul.f32 0.01, %v1708_v28  ;;  %vm1725_vm5 = vcmp.ge.f32.partialorder %v1707_v3, 0.0  ;;  %vm4173_vm12 = vmmov %vm4172_vm0 }
 0x139   : > { %v2194_v44 = vsel %vm4173_vm12, %v2176_v27, 0.0  ;;  %v2141_v5 = vadd.f32 %v2140_v12, %v2139_v38  ;;  %v1743_v49 = vmul.f32 0.01, %v1707_v3  ;;  %v2810_v36 = vadd.f32 %v2763_v35, %v2670_v60  ;;  %vm4174_vm7 = vmmov %vm4172_vm0 }
 0x13a   : > { %vm2030_vm1 = vcmp.ne.s32.totalorder %v3792_v46, 0  ;;  %vm2048_vm9 = vcmp.lt.s32.totalorder %v3792_v46, 0  ;;  %v2193_v50 = vsel %vm4174_vm7, %v2175_v54, 0.0  ;;  %v1762_v52 = vsel %vm1726_vm8, %v1708_v28, %v1744_v58  ;;  %v2673_v56 = vpop.f32.mrb[6].mxu1  ;;  %v2766_v9 = vpop.f32.mrb[6].mxu0  ;;  %vm4175_vm4 = vmmov %vm4172_vm0 }
 0x13b   : > { %v2811_v48 = vadd.f32 %v1611_v8, %v867_v10  ;;  %v3849_v45 = vsub.s32 %v3578_v30, %v1998_v0  ;;  %v2195_v24 = vadd.f32 %v2194_v44, %v2193_v50  ;;  %1781 = vst.msk [vmem:[%s3797_s30 + $0x18] sm:$0xff] %vm4175_vm4, %v1762_v52  ;;  %v2124_v60 = vsel %vm3725_vm13, %v1762_v52, 0.0  ;;  %v877_v30 = vpop.f32.mrb[7].mxu1  ;;  %v1621_v0 = vpop.f32.mrb[7].mxu0  ;;  %vm4179_vm8 = vmmov %vm4172_vm0 }
 0x13c   : > { %v1761_v35 = vsel %vm1725_vm5, %v1707_v3, %v1743_v49  ;;  %v1710_v12 = vadd.f32 %v2810_v36, %v3675_v53  ;;  %vm3862_vm12 = vcmp.lt.s32.totalorder %v2092_v29, 8  ;;  %v2144_v27 = vsel %vm4179_vm8, %v2124_v60, 0.0  ;;  %vm4183_vm4 = vmmov %vm4172_vm0 }
 0x13d   : > { %v2178_v10 = vmul.f32 %v2124_v60, %v2124_v60  ;;  %1780 = vst.msk [vmem:[%s3797_s30 + $0x10] sm:$0xff] %vm4172_vm0, %v1761_v35  ;;  %v2123_v16 = vsel %vm3754_vm15, %v1761_v35, 0.0  ;;  %v1709_v36 = vadd.f32 %v2811_v48, %v3675_v53  ;;  %vm3877_vm5 = vcmp.lt.s32.totalorder %v2091_v17, 8  ;;  %vm4184_vm8 = vmmov %vm4172_vm0 }
 0x13e   : > { %v2142_v11 = vsel %vm4183_vm4, %v2123_v16, 0.0  ;;  %v2177_v20 = vmul.f32 %v2123_v16, %v2123_v16  ;;  %vm1728_vm7 = vcmp.ge.f32.partialorder %v1710_v12, 0.0  ;;  %v1746_v29 = vmul.f32 0.01, %v1710_v12  ;;  %v2676_v38 = vpop.f32.mrb[8].mxu1  ;;  %v2769_v37 = vpop.f32.mrb[8].mxu0  ;;  %vm4185_vm13 = vmmov %vm4172_vm0 }
 0x13f   : > { %v2198_v57 = vsel %vm4184_vm8, %v2178_v10, 0.0  ;;  %v2143_v3 = vadd.f32 %v2142_v11, %v2141_v5  ;;  %vm1727_vm15 = vcmp.ge.f32.partialorder %v1709_v36, 0.0  ;;  %v1745_v8 = vmul.f32 0.01, %v1709_v36  ;;  %v887_v58 = vpop.f32.mrb[9].mxu1  ;;  %v1631_v44 = vpop.f32.mrb[9].mxu0  ;;  %vm4189_vm8 = vmmov %vm4172_vm0 }
 0x140   : > { %v2196_v63 = vsel %vm4172_vm0, %v2177_v20, 0.0  ;;  %v1764_v33 = vsel %vm1728_vm7, %v1710_v12, %v1746_v29  ;;  %v2812_v17 = vadd.f32 %v2766_v9, %v2673_v56  ;;  %v2813_v54 = vadd.f32 %v1621_v0, %v877_v30  ;;  %vm4188_vm7 = vmmov %vm4172_vm0 }
 0x141   : > { %v2197_v49 = vadd.f32 %v2196_v63, %v2195_v24  ;;  %1783 = vst.msk [vmem:[%s3797_s30 + $0x28] sm:$0xff] %vm4185_vm13, %v1764_v33  ;;  %v2126_v50 = vsel %vm3813_vm6, %v1764_v33, 0.0  ;;  %v1763_v52 = vsel %vm1727_vm15, %v1709_v36, %v1745_v8  ;;  %v2145_v5 = vadd.f32 %v2144_v27, %v2143_v3  ;;  %vm4190_vm6 = vmmov %vm4172_vm0 }
 0x142   : > { %vm3893_vm4 = vcmp.lt.s32.totalorder %v2094_v18, 8  ;;  %v2148_v9 = vsel %vm4188_vm7, %v2126_v50, 0.0  ;;  %v2180_v56 = vmul.f32 %v2126_v50, %v2126_v50  ;;  %1782 = vst.msk [vmem:[%s3797_s30 + $0x20] sm:$0xff] %vm4189_vm8, %v1763_v52  ;;  %v2125_v24 = vsel %vm3831_vm3, %v1763_v52, 0.0  ;;  %v2679_v59 = vpop.f32.mrb[10].mxu1  ;;  %v2772_v18 = vpop.f32.mrb[10].mxu0  ;;  %vm4191_vm2 = vmmov %vm4172_vm0 }
 0x143   : > { %v1712_v19 = vadd.f32 %v2812_v17, %v3675_v53  ;;  %v2146_v60 = vsel %vm4190_vm6, %v2125_v24, 0.0  ;;  %v2179_v21 = vmul.f32 %v2125_v24, %v2125_v24  ;;  %v2199_v35 = vadd.f32 %v2198_v57, %v2197_v49  ;;  %v897_v10 = vpop.f32.mrb[11].mxu1  ;;  %v1641_v16 = vpop.f32.mrb[11].mxu0  ;;  %vm3920_vm7 = vmand %vm2048_vm9, %vm2030_vm1 }
 0x144   : > { %v1711_v22 = vadd.f32 %v2813_v54, %v3675_v53  ;;  %v2202_v12 = vsel %vm4191_vm2, %v2180_v56, 0.0  ;;  %v2147_v30 = vadd.f32 %v2146_v60, %v2145_v5  ;;  %vm3911_vm3 = vcmp.lt.s32.totalorder %v4192_v51, 8  ;;  %vm4200_vm8 = vmmov %vm4172_vm0 }
 0x145   : > { %vm1730_vm15 = vcmp.ge.f32.partialorder %v1712_v19, 0.0  ;;  %v1748_v0 = vmul.f32 0.01, %v1712_v19  ;;  %v2200_v36 = vsel %vm4172_vm0, %v2179_v21, 0.0  ;;  %v2814_v20 = vadd.f32 %v2769_v37, %v2676_v38  ;;  %vm4201_vm1 = vmmov %vm4172_vm0 }
 0x146   : > { %vm1729_vm13 = vcmp.ge.f32.partialorder %v1711_v22, 0.0  ;;  %v1747_v11 = vmul.f32 0.01, %v1711_v22  ;;  %v2201_v23 = vadd.f32 %v2200_v36, %v2199_v35  ;;  %v2149_v29 = vadd.f32 %v2148_v9, %v2147_v30  ;;  %v2682_v17 = vpop.f32.mrb[12].mxu1  ;;  %v2775_v54 = vpop.f32.mrb[12].mxu0  ;;  %vm4207_vm6 = vmmov %vm4172_vm0 }
 0x147   : > { %v1766_v14 = vsel %vm1730_vm15, %v1712_v19, %v1748_v0  ;;  %v2815_v57 = vadd.f32 %v1631_v44, %v887_v58  ;;  %v4197_v3 = vsel %vm3681_vm14, %v3686_v25, %v3589_v61  ;;  %v1714_v63 = vadd.f32 %v2814_v20, %v3675_v53  ;;  %v907_v25 = vpop.f32.mrb[13].mxu1  ;;  %v1651_v44 = vpop.f32.mrb[13].mxu0  ;;  %vm4202_vm14 = vmmov %vm4172_vm0 }
 0x148   : > { %vm3929_vm11 = vcmp.lt.s32.totalorder %v4197_v3, 8  ;;  %1785 = vst.msk [vmem:[%s3797_s30 + $0x38] sm:$0xff] %vm4200_vm8, %v1766_v14  ;;  %v2128_v38 = vsel %vm3862_vm12, %v1766_v14, 0.0  ;;  %v1765_v37 = vsel %vm1729_vm13, %v1711_v22, %v1747_v11  ;;  %v2816_v33 = vadd.f32 %v2772_v18, %v2679_v59  ;;  %vm4211_vm15 = vmmov %vm4172_vm0 }
 0x149   : > { %v2182_v58 = vmul.f32 %v2128_v38, %v2128_v38  ;;  %1784 = vst.msk [vmem:[%s3797_s30 + $0x30] sm:$0xff] %vm4201_vm1, %v1765_v37  ;;  %v2127_v61 = vsel %vm3877_vm5, %v1765_v37, 0.0  ;;  %v2203_v2 = vadd.f32 %v2202_v12, %v2201_v23  ;;  %v2102_v28 = vsel %vm3920_vm7, %v3836_v31, %v3792_v46  ;;  %vm4213_vm1 = vmmov %vm4172_vm0 }
 0x14a   : > { %v2150_v49 = vsel %vm4202_vm14, %v2127_v61, 0.0  ;;  %v2181_v50 = vmul.f32 %v2127_v61, %v2127_v61  ;;  %vm1732_vm9 = vcmp.ge.f32.partialorder %v1714_v63, 0.0  ;;  %v1750_v52 = vmul.f32 0.01, %v1714_v63  ;;  %v2685_v22 = vpop.f32.mrb[14].mxu1  ;;  %v2778_v59 = vpop.f32.mrb[14].mxu0 }
 0x14b   : > { %vm4203_vm12 = vnez %v4144_v47  ;;  %v2152_v9 = vsel %vm4207_vm6, %v2128_v38, 0.0  ;;  %v2151_v56 = vadd.f32 %v2150_v49, %v2149_v29  ;;  %v1713_v24 = vadd.f32 %v2815_v57, %v3675_v53  ;;  %v1661_v12 = vpop.f32.mrb[15].mxu0 }
 0x14c   : > { %v4204_v43 = vsel %vm4203_vm12, %v3689_v26, %v3599_v34  ;;  %v1716_v19 = vadd.f32 %v2816_v33, %v3675_v53  ;;  %v4208_v60 = vsel %vm3711_vm10, %v3702_v55, %v3609_v4  ;;  %v2204_v34 = vsel %vm4211_vm15, %v2181_v50, 0.0  ;;  %v917_v55 = vpop.f32.mrb[15].mxu1  ;;  %vm4212_vm10 = vmmov %vm4172_vm0 }
 0x14d   : > { %vm3952_vm5 = vcmp.lt.s32.totalorder %v4204_v43, 8  ;;  %vm3964_vm2 = vcmp.lt.s32.totalorder %v4208_v60, 8  ;;  %v1768_v26 = vsel %vm1732_vm9, %v1714_v63, %v1750_v52  ;;  %v2817_v21 = vadd.f32 %v1641_v16, %v897_v10  ;;  %vm4218_vm9 = vmmov %vm4172_vm0 }
 0x14e   : > { %v2818_v35 = vadd.f32 %v2775_v54, %v2682_v17  ;;  %v2205_v18 = vadd.f32 %v2204_v34, %v2203_v2  ;;  %1787 = vst.msk [vmem:[%s3797_s30 + $0x48] sm:$0xff] %vm4172_vm0, %v1768_v26  ;;  %v2130_v6 = vsel %vm3893_vm4, %v1768_v26, 0.0  ;;  %vm1731_vm13 = vcmp.ge.f32.partialorder %v1713_v24, 0.0  ;;  %v2688_v3 = vpop.f32.mrb[16].mxu1  ;;  %v2781_v38 = vpop.f32.mrb[16].mxu0  ;;  %vm4219_vm12 = vmmov %vm4172_vm0 }
 0x14f   : > { %v1749_v4 = vmul.f32 0.01, %v1713_v24  ;;  %v2206_v30 = vsel %vm4212_vm10, %v2182_v58, 0.0  ;;  %v2153_v0 = vadd.f32 %v2152_v9, %v2151_v56  ;;  %vm1734_vm8 = vcmp.ge.f32.partialorder %v1716_v19, 0.0  ;;  %v927_v33 = vpop.f32.mrb[17].mxu1  ;;  %v1671_v17 = vpop.f32.mrb[17].mxu0  ;;  %vm4221_vm10 = vmmov %vm4213_vm1 }
 0x150   : > { %v3975_v51 = vadd.s32 18, %v3849_v45  ;;  %v2207_v16 = vadd.f32 %v2206_v30, %v2205_v18  ;;  %v1752_v36 = vmul.f32 0.01, %v1716_v19  ;;  %v1715_v11 = vadd.f32 %v2817_v21, %v3675_v53 }
 0x151   : > { %v1767_v10 = vsel %vm1731_vm13, %v1713_v24, %v1749_v4  ;;  %v2184_v20 = vmul.f32 %v2130_v6, %v2130_v6  ;;  %v1718_v23 = vadd.f32 %v2818_v35, %v3675_v53  ;;  %v2819_v14 = vadd.f32 %v1651_v44, %v907_v25  ;;  %vm4220_vm13 = vmmov %vm4213_vm1 }
 0x152   : > { %1786 = vst.msk [vmem:[%s3797_s30 + $0x40] sm:$0xff] %vm4213_vm1, %v1767_v10  ;;  %v2129_v48 = vsel %vm3911_vm3, %v1767_v10, 0.0  ;;  %vm4214_vm4 = vnez %v4154_v15  ;;  %v1770_v27 = vsel %vm1734_vm8, %v1716_v19, %v1752_v36  ;;  %vm1733_vm3 = vcmp.ge.f32.partialorder %v1715_v11, 0.0 }
 0x153   : > { %v4215_v29 = vsel %vm4214_vm4, %v3716_v7, %v3613_v39  ;;  %v2154_v37 = vsel %vm4218_vm9, %v2129_v48, 0.0  ;;  %v2183_v63 = vmul.f32 %v2129_v48, %v2129_v48  ;;  %1789 = vst.msk [vmem:[%s3797_s30 + $0x58] sm:$0xff] %vm4219_vm12, %v1770_v27  ;;  %v2132_v39 = vsel %vm3929_vm11, %v1770_v27, 0.0  ;;  %vm4226_vm11 = vmmov %vm4218_vm9 }
 0x154   : > { %vm3988_vm14 = vcmp.lt.s32.totalorder %v4215_v29, 8  ;;  %v2155_v54 = vadd.f32 %v2154_v37, %v2153_v0  ;;  %v1751_v7 = vmul.f32 0.01, %v1715_v11  ;;  %vm1736_vm6 = vcmp.ge.f32.partialorder %v1718_v23, 0.0  ;;  %vm4227_vm4 = vmmov %vm4218_vm9 }
 0x155   : > { %vm2029_vm15 = vcmp.ne.s32.totalorder %v3849_v45, 0  ;;  %vm2047_vm0 = vcmp.lt.s32.totalorder %v3849_v45, 0  ;;  %v2156_v15 = vsel %vm4220_vm13, %v2130_v6, 0.0  ;;  %v2208_v58 = vsel %vm4221_vm10, %v2183_v63, 0.0 }
 0x156   : > { %v2186_v61 = vmul.f32 %v2132_v39, %v2132_v39  ;;  %v1754_v2 = vmul.f32 0.01, %v1718_v23  ;;  %vm4222_vm8 = vnez %v4160_v32  ;;  %v2209_v44 = vadd.f32 %v2208_v58, %v2207_v16 }
 0x157   : > { %v4223_v8 = vsel %vm4222_vm8, %v3746_v42, %v3622_v41  ;;  %v1769_v49 = vsel %vm1733_vm3, %v1715_v11, %v1751_v7  ;;  %v2157_v50 = vadd.f32 %v2156_v15, %v2155_v54  ;;  %v1717_v52 = vadd.f32 %v2819_v14, %v3675_v53  ;;  %vm4232_vm3 = vmmov %vm4227_vm4 }
 0x158   : > { %vm4007_vm1 = vcmp.lt.s32.totalorder %v4223_v8, 8  ;;  %v2210_v43 = vsel %vm4226_vm11, %v2184_v20, 0.0  ;;  %1788 = vst.msk [vmem:[%s3797_s30 + $0x50] sm:$0xff] %vm4227_vm4, %v1769_v49  ;;  %v2131_v32 = vsel %vm3952_vm5, %v1769_v49, 0.0  ;;  %v1772_v9 = vsel %vm1736_vm6, %v1718_v23, %v1754_v2  ;;  %vm4233_vm13 = vmmov %vm4232_vm3 }
 0x159   : > { %v2820_v56 = vadd.f32 %v2778_v59, %v2685_v22  ;;  %vm4228_vm9 = vnez %v4164_v40  ;;  %v2158_v24 = vsel %vm4232_vm3, %v2131_v32, 0.0  ;;  %v2185_v19 = vmul.f32 %v2131_v32, %v2131_v32  ;;  %1791 = vst.msk [vmem:[%s3797_s30 + $0x68] sm:$0xff] %vm4233_vm13, %v1772_v9  ;;  %vm4234_vm5 = vmmov %vm4232_vm3 }
 0x15a   : > { %v4229_v41 = vsel %vm4228_vm9, %v3771_v62, %v3645_v1  ;;  %v2211_v60 = vadd.f32 %v2210_v43, %v2209_v44  ;;  %v2134_v5 = vsel %vm3964_vm2, %v1772_v9, 0.0  ;;  %v2160_v34 = vsel %vm4234_vm5, %v2132_v39, 0.0  ;;  %vm4235_vm6 = vmmov %vm4232_vm3 }
 0x15b   : > { %vm4023_vm12 = vcmp.lt.s32.totalorder %v4229_v41, 8  ;;  %v2214_v40 = vsel %vm4235_vm6, %v2186_v61, 0.0  ;;  %v2159_v26 = vadd.f32 %v2158_v24, %v2157_v50  ;;  %vm1735_vm10 = vcmp.ge.f32.partialorder %v1717_v52, 0.0  ;;  %vm4236_vm8 = vmmov %vm4232_vm3 }
 0x15c   : > { %v2212_v1 = vsel %vm4236_vm8, %v2185_v19, 0.0  ;;  %v1753_v62 = vmul.f32 0.01, %v1717_v52  ;;  %v1720_v21 = vadd.f32 %v2820_v56, %v3675_v53  ;;  %v2821_v35 = vadd.f32 %v1661_v12, %v917_v55  ;;  %vm4237_vm11 = vmmov %vm4232_vm3 }
 0x15d   : > { %v2213_v22 = vadd.f32 %v2212_v1, %v2211_v60  ;;  %v2188_v59 = vmul.f32 %v2134_v5, %v2134_v5  ;;  %v2161_v18 = vadd.f32 %v2160_v34, %v2159_v26  ;;  %v2822_v6 = vadd.f32 %v2781_v38, %v2688_v3  ;;  %vm4238_vm4 = vmmov %vm4232_vm3 }
 0x15e   : > { %v1771_v47 = vsel %vm1735_vm10, %v1717_v52, %v1753_v62  ;;  %vm1738_vm2 = vcmp.ge.f32.partialorder %v1720_v21, 0.0  ;;  %v1756_v4 = vmul.f32 0.01, %v1720_v21  ;;  %v1719_v30 = vadd.f32 %v2821_v35, %v3675_v53  ;;  %vm4058_vm5 = vmand %vm2047_vm0, %vm2029_vm15 }
 0x15f   : > { %1790 = vst.msk [vmem:[%s3797_s30 + $0x60] sm:$0xff] %vm4237_vm11, %v1771_v47  ;;  %v2133_v0 = vsel %vm3988_vm14, %v1771_v47, 0.0  ;;  %v2215_v10 = vadd.f32 %v2214_v40, %v2213_v22  ;;  %v1722_v16 = vadd.f32 %v2822_v6, %v3675_v53  ;;  %v2823_v36 = vadd.f32 %v1671_v17, %v927_v33  ;;  %vm4243_vm6 = vmmov %vm4232_vm3 }
 0x160   : > { %v2162_v55 = vsel %vm4238_vm4, %v2133_v0, 0.0  ;;  %v2187_v12 = vmul.f32 %v2133_v0, %v2133_v0  ;;  %v1774_v11 = vsel %vm1738_vm2, %v1720_v21, %v1756_v4  ;;  %vm1737_vm9 = vcmp.ge.f32.partialorder %v1719_v30, 0.0  ;;  %vm4244_vm10 = vmmov %vm4232_vm3 }
 0x161   : > { %v2163_v20 = vadd.f32 %v2162_v55, %v2161_v18  ;;  %1793 = vst.msk [vmem:[%s3797_s30 + $0x78] sm:$0xff] %vm4232_vm3, %v1774_v11  ;;  %v1755_v48 = vmul.f32 0.01, %v1719_v30  ;;  %vm1740_vm13 = vcmp.ge.f32.partialorder %v1722_v16, 0.0  ;;  %vm4050_vm14 = vcmp.lt.s32.totalorder %v2102_v28, 8  ;;  %vm4245_vm7 = vmmov %vm4232_vm3 }
 0x162   : > { %v2164_v29 = vsel %vm4243_vm6, %v2134_v5, 0.0  ;;  %v2216_v57 = vsel %vm4244_vm10, %v2187_v12, 0.0  ;;  %v2136_v46 = vsel %vm4007_vm1, %v1774_v11, 0.0  ;;  %v1758_v31 = vmul.f32 0.01, %v1722_v16  ;;  %vm4246_vm15 = vmmov %vm4232_vm3 }
 0x163   : > { %v2217_v13 = vadd.f32 %v2216_v57, %v2215_v10  ;;  %v1773_v28 = vsel %vm1737_vm9, %v1719_v30, %v1755_v48  ;;  %v2165_v3 = vadd.f32 %v2164_v29, %v2163_v20  ;;  %v1721_v38 = vadd.f32 %v2823_v36, %v3675_v53  ;;  %vm4247_vm0 = vmmov %vm4232_vm3 }
 0x164   : > { %v2218_v37 = vsel %vm4245_vm7, %v2188_v59, 0.0  ;;  %1792 = vst.msk [vmem:[%s3797_s30 + $0x70] sm:$0xff] %vm4246_vm15, %v1773_v28  ;;  %v2135_v63 = vsel %vm4023_vm12, %v1773_v28, 0.0  ;;  %v1776_v27 = vsel %vm1740_vm13, %v1722_v16, %v1758_v31  ;;  %v2101_v33 = vsel %vm4058_vm5, %v3975_v51, %v3849_v45  ;;  %vm4248_vm1 = vmmov %vm4247_vm0 }
 0x165   : > { %v2190_v17 = vmul.f32 %v2136_v46, %v2136_v46  ;;  %v2166_v54 = vsel %vm4247_vm0, %v2135_v63, 0.0  ;;  %v2189_v39 = vmul.f32 %v2135_v63, %v2135_v63  ;;  %v2219_v53 = vadd.f32 %v2218_v37, %v2217_v13  ;;  %1795 = vst.msk [vmem:[%s3797_s30 + $0x88] sm:$0xff] %vm4248_vm1, %v1776_v27  ;;  %vm4249_vm2 = vmmov %vm4247_vm0 }
 0x166   : > { %v2167_v7 = vadd.f32 %v2166_v54, %v2165_v3  ;;  %vm1739_vm8 = vcmp.ge.f32.partialorder %v1721_v38, 0.0  ;;  %v2168_v15 = vsel %vm4249_vm2, %v2136_v46, 0.0  ;;  %vm4250_vm12 = vmmov %vm4247_vm0  ;;  %v1757_v61 = vmul.f32 0.01, %v1721_v38 }
 0x167   : > { %v2220_v58 = vsel %vm4250_vm12, %v2189_v39, 0.0  ;;  %vm2119_vm11 = vcmp.lt.s32.totalorder %v2101_v33, 8  ;;  %v2138_v45 = vsel %vm4050_vm14, %v1776_v27, 0.0  ;;  %vm4251_vm4 = vmmov %vm4247_vm0 }
 0x168   : > { %v2221_v2 = vadd.f32 %v2220_v58, %v2219_v53  ;;  %v2169_v51 = vadd.f32 %v2168_v15, %v2167_v7  ;;  %v2222_v8 = vsel %vm4251_vm4, %v2190_v17, 0.0  ;;  %v1775_v25 = vsel %vm1739_vm8, %v1721_v38, %v1757_v61  ;;  %vm4252_vm9 = vmmov %vm4247_vm0 }
 0x169   : > { %1794 = vst.msk [vmem:[%s3797_s30 + $0x80] sm:$0xff] %vm4252_vm9, %v1775_v25  ;;  %v2137_v44 = vsel %vm2119_vm11, %v1775_v25, 0.0  ;;  %v2192_v50 = vmul.f32 %v2138_v45, %v2138_v45  ;;  %vm4253_vm3 = vmmov %vm4247_vm0 }
 0x16a   : > { %v2223_v49 = vadd.f32 %v2222_v8, %v2221_v2  ;;  %v2170_v52 = vsel %vm4253_vm3, %v2137_v44, 0.0  ;;  %v2191_v43 = vmul.f32 %v2137_v44, %v2137_v44  ;;  %vm4254_vm13 = vmmov %vm4247_vm0 }
 0x16b   : > { %v2171_v32 = vadd.f32 %v2170_v52, %v2169_v51  ;;  %v2172_v9 = vsel %vm4254_vm13, %v2138_v45, 0.0  ;;  %vm4255_vm14 = vmmov %vm4247_vm0 }
 0x16c   : > { %v2224_v56 = vsel %vm4255_vm14, %v2191_v43, 0.0  ;;  %vm4256_vm5 = vmmov %vm4247_vm0 }
 0x16d   : > { %v2173_v41 = vadd.f32 %v2172_v9, %v2171_v32  ;;  %v2225_v42 = vadd.f32 %v2224_v56, %v2223_v49  ;;  %v2226_v24 = vsel %vm4256_vm5, %v2192_v50, 0.0  ;;  %vm4257_vm6 = vmmov %vm4247_vm0 }
 0x16e   : > { %vm4258_vm10 = vmmov %vm4247_vm0 }
 0x16f   : > { %2174 = vst.msk [vmem:[%s241_s9] sm:$0xff] %vm4257_vm6, %v2173_v41  ;;  %v2227_v19 = vadd.f32 %v2226_v24, %v2225_v42 }
 0x171   : > { %2228 = vst.msk [vmem:[%s245_s11] sm:$0xff] %vm4258_vm10, %v2227_v19 }
 0x172 PF: > { %s16_s18 = sadd.s32 1, %s2948_s18  }
 0x173   : > { %p13_p4 = scmp.ge.s32.totalorder %s16_s18, 4  }
 0x175   :  { %15 = sbr.rel (!%p13_p4) target bundleno = 1 (0x1), region = 91 }

</bundles_post_ra>
